<compile_context>
chip_gen: v5e
topology: v5e:2x2
jax: 0.10.0
libtpu: 0.0.40
codegen_flags: <defaults>
</compile_context>

<pallas_src>
import functools

import jax
import jax.numpy as jnp
from jax.experimental import pallas as pl
from jax.experimental.pallas import tpu as pltpu


# ---------------------------------------------------------------------------
# Fused MultiConv kernel (one image per grid step)
# ---------------------------------------------------------------------------
def _multiconv_kernel(*refs, H, W, Cin, Cout, kernel_sizes, Ccat, Cred):
    n_br = len(kernel_sizes)
    x_ref = refs[0]
    pos = 1
    branch_refs = []
    for _ in range(n_br):
        branch_refs.append(refs[pos:pos + 4])        # (w1_2d, b1, w2_2d, b2)
        pos += 4
    wa1_ref, ba1_ref, wa2_ref, ba2_ref = refs[pos:pos + 4]
    pos += 4
    o_ref = refs[pos]
    pad_scr, col_scr, y_scr = refs[pos + 1:pos + 4]

    def conv_lrelu(x_hwc, w_ref, b_ref, K, Ci, Co):
        """reflect-pad conv KxK + bias + LeakyReLU(0.2). x_hwc: (H, W, Ci) f32."""
        p = K // 2
        Hp = H + 2 * p
        # ---- reflect pad into VMEM scratch (interior, then rows, then columns+corners)
        pad_scr[p:p + H, p:p + W, 0:Ci] = x_hwc
        for r in range(p):
            pad_scr[r:r + 1, p:p + W, 0:Ci] = x_hwc[p - r:p - r + 1, :, :]
            pad_scr[p + H + r:p + H + r + 1, p:p + W, 0:Ci] = \
                x_hwc[H - 2 - r:H - 1 - r, :, :]
        for c in range(p):
            pad_scr[0:Hp, c:c + 1, 0:Ci] = pad_scr[0:Hp, 2 * p - c:2 * p - c + 1, 0:Ci]
            pad_scr[0:Hp, p + W + c:p + W + c + 1, 0:Ci] = \
                pad_scr[0:Hp, p + W - 2 - c:p + W - 1 - c, 0:Ci]
        # ---- im2col into VMEM scratch: lane offset t*Ci for tap t = dy*K + dx
        for dy in range(K):
            for dx in range(K):
                t = dy * K + dx
                col_scr[:, :, t * Ci:(t + 1) * Ci] = pad_scr[dy:dy + H, dx:dx + W, 0:Ci]
        patches = col_scr[:, :, 0:K * K * Ci].reshape(H * W, K * K * Ci)
        # ---- single MXU matmul per conv layer (f32 accumulate)
        acc = jnp.dot(patches, w_ref[...].astype(jnp.float32),
                      preferred_element_type=jnp.float32)
        acc = acc + b_ref[...].astype(jnp.float32)                  # (H*W,Co) + (1,Co)
        acc = jnp.where(acc >= 0.0, acc, 0.2 * acc)                 # LeakyReLU(0.2)
        return acc.reshape(H, W, Co)

    x0 = x_ref[0].astype(jnp.float32)                               # (H, W, Cin)
    for b, (K, (w1_ref, b1_ref, w2_ref, b2_ref)) in enumerate(
            zip(kernel_sizes, branch_refs)):
        h = conv_lrelu(x0, w1_ref, b1_ref, K, Cin, Cout)
        h = conv_lrelu(h, w2_ref, b2_ref, K, Cout, Cout)
        y_scr[:, :, b * Cout:(b + 1) * Cout] = h                    # channel concat in VMEM

    # ---- ChannelAttention on the VMEM-resident concat (no HBM round trip)
    y2 = y_scr[...].reshape(H * W, Ccat)
    gap = jnp.mean(y2, axis=0, keepdims=True)                       # (1, Ccat)
    hid = jnp.dot(gap, wa1_ref[...].astype(jnp.float32),
                  preferred_element_type=jnp.float32) + ba1_ref[...].astype(jnp.float32)
    hid = jnp.maximum(hid, 0.0)                                     # ReLU
    s = jnp.dot(hid, wa2_ref[...].astype(jnp.float32),
                preferred_element_type=jnp.float32) + ba2_ref[...].astype(jnp.float32)
    s = jax.nn.sigmoid(s)                                           # (1, Ccat)
    out = y2 * s                                                    # broadcast over H*W
    o_ref[...] = out.reshape(1, H, W, Ccat).astype(o_ref.dtype)


def multiconv_forward(params, x_nchw):
    """NCHW in -> NCHW out (PyTorch convention); kernel works in NHWC internally."""
    x = jnp.transpose(x_nchw, (0, 2, 3, 1))                         # NHWC
    N, H, W, Cin = x.shape
    kernel_sizes = params["kernel_sizes"]
    branches = params["branches"]
    Cout = branches[0][1].shape[0]
    n_br = len(kernel_sizes)
    Ccat = Cout * n_br
    wa1, ba1, wa2, ba2 = params["attention"]
    Cred = wa1.shape[1]

    inputs = [x]
    in_specs = [pl.BlockSpec((1, H, W, Cin), lambda n: (n, 0, 0, 0))]
    for K, (w1, b1, w2, b2) in zip(kernel_sizes, branches):
        # HWIO (K,K,Ci,Co) -> (K*K*Ci, Co); column order matches im2col tap order.
        inputs += [w1.reshape(K * K * Cin, Cout), b1.reshape(1, Cout),
                   w2.reshape(K * K * Cout, Cout), b2.reshape(1, Cout)]
        in_specs += [
            pl.BlockSpec((K * K * Cin, Cout), lambda n: (0, 0)),
            pl.BlockSpec((1, Cout), lambda n: (0, 0)),
            pl.BlockSpec((K * K * Cout, Cout), lambda n: (0, 0)),
            pl.BlockSpec((1, Cout), lambda n: (0, 0)),
        ]
    inputs += [wa1, ba1.reshape(1, Cred), wa2, ba2.reshape(1, Ccat)]
    in_specs += [
        pl.BlockSpec((Ccat, Cred), lambda n: (0, 0)),
        pl.BlockSpec((1, Cred), lambda n: (0, 0)),
        pl.BlockSpec((Cred, Ccat), lambda n: (0, 0)),
        pl.BlockSpec((1, Ccat), lambda n: (0, 0)),
    ]

    p_max = max(K // 2 for K in kernel_sizes)
    c_pad_max = max(Cin, Cout)
    kkc_max = max(K * K * max(Cin, Cout) for K in kernel_sizes)

    kernel = functools.partial(
        _multiconv_kernel, H=H, W=W, Cin=Cin, Cout=Cout,
        kernel_sizes=tuple(kernel_sizes), Ccat=Ccat, Cred=Cred)

    out = pl.pallas_call(
        kernel,
        out_shape=jax.ShapeDtypeStruct((N, H, W, Ccat), x.dtype),
        grid_spec=pltpu.PrefetchScalarGridSpec(
            num_scalar_prefetch=0,
            grid=(N,),
            in_specs=in_specs,
            out_specs=pl.BlockSpec((1, H, W, Ccat), lambda n: (n, 0, 0, 0)),
            scratch_shapes=[
                pltpu.VMEM((H + 2 * p_max, W + 2 * p_max, c_pad_max), jnp.float32),  # pad
                pltpu.VMEM((H, W, kkc_max), jnp.float32),                            # im2col
                pltpu.VMEM((H, W, Ccat), jnp.float32),                               # concat
            ],
        ),
        compiler_params=pltpu.CompilerParams(dimension_semantics=("parallel",)),
    )(*inputs)
    return jnp.transpose(out, (0, 3, 1, 2))                         # back to NCHW


# ---------------------------------------------------------------------------
# Params (instance_norm=False, channel_attention=True)
# ---------------------------------------------------------------------------
def init_multiconv_params(key, in_channels, out_channels, max_kernel_size=3):
    kernel_sizes = list(range(3, max_kernel_size + 1, 2))
    n_branches = len(kernel_sizes)
    cat_channels = out_channels * n_branches
    params = {"branches": [], "kernel_sizes": kernel_sizes}
    keys = jax.random.split(key, 4 * n_branches + 4)
    ki = 0
    for K in kernel_sizes:
        w1 = 0.1 * jax.random.normal(keys[ki], (K, K, in_channels, out_channels), jnp.float32); ki += 1
        b1 = 0.1 * jax.random.normal(keys[ki], (out_channels,), jnp.float32); ki += 1
        w2 = 0.1 * jax.random.normal(keys[ki], (K, K, out_channels, out_channels), jnp.float32); ki += 1
        b2 = 0.1 * jax.random.normal(keys[ki], (out_channels,), jnp.float32); ki += 1
        params["branches"].append((w1, b1, w2, b2))
    red = cat_channels // n_branches                                 # reduction_ratio = n_branches
    wa1 = 0.1 * jax.random.normal(keys[ki], (cat_channels, red), jnp.float32); ki += 1
    ba1 = 0.1 * jax.random.normal(keys[ki], (red,), jnp.float32); ki += 1
    wa2 = 0.1 * jax.random.normal(keys[ki], (red, cat_channels), jnp.float32); ki += 1
    ba2 = 0.1 * jax.random.normal(keys[ki], (cat_channels,), jnp.float32); ki += 1
    params["attention"] = (wa1, ba1, wa2, ba2)
    return params


# ---------------------------------------------------------------------------
# Pure-JAX reference (for correctness check)
# ---------------------------------------------------------------------------
def _ref_conv_lrelu(x_nhwc, w_hwio, b, K):
    p = K // 2
    xp = jnp.pad(x_nhwc, ((0, 0), (p, p), (p, p), (0, 0)), mode="reflect")
    y = jax.lax.conv_general_dilated(
        xp, w_hwio, window_strides=(1, 1), padding="VALID",
        dimension_numbers=("NHWC", "HWIO", "NHWC"),
        precision=jax.lax.Precision.HIGHEST)
    y = y + b.reshape(1, 1, 1, -1)
    return jnp.where(y >= 0.0, y, 0.2 * y)


def multiconv_reference(params, x_nchw):
    x = jnp.transpose(x_nchw, (0, 2, 3, 1))
    outs = []
    for K, (w1, b1, w2, b2) in zip(params["kernel_sizes"], params["branches"]):
        h = _ref_conv_lrelu(x, w1, b1, K)
        h = _ref_conv_lrelu(h, w2, b2, K)
        outs.append(h)
    y = jnp.concatenate(outs, axis=-1)
    wa1, ba1, wa2, ba2 = params["attention"]
    gap = jnp.mean(y, axis=(1, 2))                                   # (N, Ccat)
    h = jnp.maximum(jnp.dot(gap, wa1, precision=jax.lax.Precision.HIGHEST) + ba1, 0.0)
    s = jax.nn.sigmoid(jnp.dot(h, wa2, precision=jax.lax.Precision.HIGHEST) + ba2)
    out = y * s[:, None, None, :]
    return jnp.transpose(out, (0, 3, 1, 2))


if __name__ == "__main__":
    key = jax.random.PRNGKey(0)
    k_param, k_x = jax.random.split(key)

    N, Cin, Cout, H, W = 2, 4, 8, 16, 16
    params = init_multiconv_params(k_param, Cin, Cout, max_kernel_size=3)
    x = jax.random.normal(k_x, (N, Cin, H, W), jnp.float32)

    out = jax.block_until_ready(multiconv_forward(params, x))
    ref = jax.block_until_ready(multiconv_reference(params, x))

    assert out.shape == (N, Cout * len(params["kernel_sizes"]), H, W)
    assert jnp.allclose(out, ref, atol=1e-4, rtol=1e-4), "mismatch vs reference"

    print("KERNEL_OK")
</pallas_src>

<mosaic_0001>
module attributes {stable_mosaic.version = 11 : i64} {
  func.func @_multiconv_kernel(%arg0: i32, %arg1: memref<1x16x16x4xf32, #tpu.memory_space<vmem>>, %arg2: memref<36x8xf32, #tpu.memory_space<vmem>>, %arg3: memref<1x8xf32, #tpu.memory_space<vmem>>, %arg4: memref<72x8xf32, #tpu.memory_space<vmem>>, %arg5: memref<1x8xf32, #tpu.memory_space<vmem>>, %arg6: memref<8x8xf32, #tpu.memory_space<vmem>>, %arg7: memref<1x8xf32, #tpu.memory_space<vmem>>, %arg8: memref<8x8xf32, #tpu.memory_space<vmem>>, %arg9: memref<1x8xf32, #tpu.memory_space<vmem>>, %arg10: memref<1x16x16x8xf32, #tpu.memory_space<vmem>>, %arg11: memref<18x18x8xf32, #tpu.memory_space<vmem>>, %arg12: memref<16x16x72xf32, #tpu.memory_space<vmem>>, %arg13: memref<16x16x8xf32, #tpu.memory_space<vmem>>) attributes {dimension_semantics = [#tpu.dimension_semantics<parallel>], iteration_bounds = array<i64: 2>, scalar_prefetch = 0 : i64, scratch_operands = 3 : i64, tpu.core_type = #tpu.core_type<tc>, window_params = [{transform_indices = @transform_0, window_bounds = array<i64: 1, 16, 16, 4>}, {pipeline_mode = #tpu.pipeline_mode<synchronous>, transform_indices = @transform_1, window_bounds = array<i64: 36, 8>}, {pipeline_mode = #tpu.pipeline_mode<synchronous>, transform_indices = @transform_2, window_bounds = array<i64: 1, 8>}, {pipeline_mode = #tpu.pipeline_mode<synchronous>, transform_indices = @transform_3, window_bounds = array<i64: 72, 8>}, {pipeline_mode = #tpu.pipeline_mode<synchronous>, transform_indices = @transform_4, window_bounds = array<i64: 1, 8>}, {pipeline_mode = #tpu.pipeline_mode<synchronous>, transform_indices = @transform_5, window_bounds = array<i64: 8, 8>}, {pipeline_mode = #tpu.pipeline_mode<synchronous>, transform_indices = @transform_6, window_bounds = array<i64: 1, 8>}, {pipeline_mode = #tpu.pipeline_mode<synchronous>, transform_indices = @transform_7, window_bounds = array<i64: 8, 8>}, {pipeline_mode = #tpu.pipeline_mode<synchronous>, transform_indices = @transform_8, window_bounds = array<i64: 1, 8>}, {transform_indices = @transform_9, window_bounds = array<i64: 1, 16, 16, 8>}]} {
    %c0 = arith.constant 0 : index
    %c0_0 = arith.constant 0 : index
    %c0_1 = arith.constant 0 : index
    %c0_2 = arith.constant 0 : index
    %0 = vector.load %arg1[%c0, %c0_0, %c0_1, %c0_2] : memref<1x16x16x4xf32, #tpu.memory_space<vmem>>, vector<1x16x16x4xf32>
    %1 = vector.shape_cast %0 : vector<1x16x16x4xf32> to vector<16x16x4xf32>
    %c1 = arith.constant 1 : index
    %c1_3 = arith.constant 1 : index
    %c0_4 = arith.constant 0 : index
    %2 = vector.load %arg11[%c1, %c1_3, %c0_4] : memref<18x18x8xf32, #tpu.memory_space<vmem>>, vector<16x16x4xf32>
    tpu.vector_store %arg11[%c1, %c1_3, %c0_4], %1 {strides = array<i32>} : memref<18x18x8xf32, #tpu.memory_space<vmem>>, vector<16x16x4xf32>,
    %3 = vector.extract_strided_slice %1 {offsets = [1, 0, 0], sizes = [1, 16, 4], strides = [1, 1, 1]} : vector<16x16x4xf32> to vector<1x16x4xf32>
    %c0_5 = arith.constant 0 : index
    %c1_6 = arith.constant 1 : index
    %c0_7 = arith.constant 0 : index
    %4 = vector.load %arg11[%c0_5, %c1_6, %c0_7] : memref<18x18x8xf32, #tpu.memory_space<vmem>>, vector<1x16x4xf32>
    tpu.vector_store %arg11[%c0_5, %c1_6, %c0_7], %3 {strides = array<i32>} : memref<18x18x8xf32, #tpu.memory_space<vmem>>, vector<1x16x4xf32>,
    %5 = vector.extract_strided_slice %1 {offsets = [14, 0, 0], sizes = [1, 16, 4], strides = [1, 1, 1]} : vector<16x16x4xf32> to vector<1x16x4xf32>
    %c17 = arith.constant 17 : index
    %c1_8 = arith.constant 1 : index
    %c0_9 = arith.constant 0 : index
    %6 = vector.load %arg11[%c17, %c1_8, %c0_9] : memref<18x18x8xf32, #tpu.memory_space<vmem>>, vector<1x16x4xf32>
    tpu.vector_store %arg11[%c17, %c1_8, %c0_9], %5 {strides = array<i32>} : memref<18x18x8xf32, #tpu.memory_space<vmem>>, vector<1x16x4xf32>,
    %c0_10 = arith.constant 0 : index
    %c2 = arith.constant 2 : index
    %c0_11 = arith.constant 0 : index
    %7 = vector.load %arg11[%c0_10, %c2, %c0_11] : memref<18x18x8xf32, #tpu.memory_space<vmem>>, vector<18x1x4xf32>
    %c0_12 = arith.constant 0 : index
    %c0_13 = arith.constant 0 : index
    %c0_14 = arith.constant 0 : index
    %8 = vector.load %arg11[%c0_12, %c0_13, %c0_14] : memref<18x18x8xf32, #tpu.memory_space<vmem>>, vector<18x1x4xf32>
    tpu.vector_store %arg11[%c0_12, %c0_13, %c0_14], %7 {strides = array<i32>} : memref<18x18x8xf32, #tpu.memory_space<vmem>>, vector<18x1x4xf32>,
    %c0_15 = arith.constant 0 : index
    %c15 = arith.constant 15 : index
    %c0_16 = arith.constant 0 : index
    %9 = vector.load %arg11[%c0_15, %c15, %c0_16] : memref<18x18x8xf32, #tpu.memory_space<vmem>>, vector<18x1x4xf32>
    %c0_17 = arith.constant 0 : index
    %c17_18 = arith.constant 17 : index
    %c0_19 = arith.constant 0 : index
    %10 = vector.load %arg11[%c0_17, %c17_18, %c0_19] : memref<18x18x8xf32, #tpu.memory_space<vmem>>, vector<18x1x4xf32>
    tpu.vector_store %arg11[%c0_17, %c17_18, %c0_19], %9 {strides = array<i32>} : memref<18x18x8xf32, #tpu.memory_space<vmem>>, vector<18x1x4xf32>,
    %c0_20 = arith.constant 0 : index
    %c0_21 = arith.constant 0 : index
    %c0_22 = arith.constant 0 : index
    %11 = vector.load %arg11[%c0_20, %c0_21, %c0_22] : memref<18x18x8xf32, #tpu.memory_space<vmem>>, vector<16x16x4xf32>
    %c0_23 = arith.constant 0 : index
    %c0_24 = arith.constant 0 : index
    %c0_25 = arith.constant 0 : index
    %12 = vector.load %arg12[%c0_23, %c0_24, %c0_25] : memref<16x16x72xf32, #tpu.memory_space<vmem>>, vector<16x16x4xf32>
    tpu.vector_store %arg12[%c0_23, %c0_24, %c0_25], %11 {strides = array<i32>} : memref<16x16x72xf32, #tpu.memory_space<vmem>>, vector<16x16x4xf32>,
    %c0_26 = arith.constant 0 : index
    %c1_27 = arith.constant 1 : index
    %c0_28 = arith.constant 0 : index
    %13 = vector.load %arg11[%c0_26, %c1_27, %c0_28] : memref<18x18x8xf32, #tpu.memory_space<vmem>>, vector<16x16x4xf32>
    %c0_29 = arith.constant 0 : index
    %c0_30 = arith.constant 0 : index
    %c4 = arith.constant 4 : index
    %14 = vector.load %arg12[%c0_29, %c0_30, %c4] : memref<16x16x72xf32, #tpu.memory_space<vmem>>, vector<16x16x4xf32>
    tpu.vector_store %arg12[%c0_29, %c0_30, %c4], %13 {strides = array<i32>} : memref<16x16x72xf32, #tpu.memory_space<vmem>>, vector<16x16x4xf32>,
    %c0_31 = arith.constant 0 : index
    %c2_32 = arith.constant 2 : index
    %c0_33 = arith.constant 0 : index
    %15 = vector.load %arg11[%c0_31, %c2_32, %c0_33] : memref<18x18x8xf32, #tpu.memory_space<vmem>>, vector<16x16x4xf32>
    %c0_34 = arith.constant 0 : index
    %c0_35 = arith.constant 0 : index
    %c8 = arith.constant 8 : index
    %16 = vector.load %arg12[%c0_34, %c0_35, %c8] : memref<16x16x72xf32, #tpu.memory_space<vmem>>, vector<16x16x4xf32>
    tpu.vector_store %arg12[%c0_34, %c0_35, %c8], %15 {strides = array<i32>} : memref<16x16x72xf32, #tpu.memory_space<vmem>>, vector<16x16x4xf32>,
    %c1_36 = arith.constant 1 : index
    %c0_37 = arith.constant 0 : index
    %c0_38 = arith.constant 0 : index
    %17 = vector.load %arg11[%c1_36, %c0_37, %c0_38] : memref<18x18x8xf32, #tpu.memory_space<vmem>>, vector<16x16x4xf32>
    %c0_39 = arith.constant 0 : index
    %c0_40 = arith.constant 0 : index
    %c12 = arith.constant 12 : index
    %18 = vector.load %arg12[%c0_39, %c0_40, %c12] : memref<16x16x72xf32, #tpu.memory_space<vmem>>, vector<16x16x4xf32>
    tpu.vector_store %arg12[%c0_39, %c0_40, %c12], %17 {strides = array<i32>} : memref<16x16x72xf32, #tpu.memory_space<vmem>>, vector<16x16x4xf32>,
    %c1_41 = arith.constant 1 : index
    %c1_42 = arith.constant 1 : index
    %c0_43 = arith.constant 0 : index
    %19 = vector.load %arg11[%c1_41, %c1_42, %c0_43] : memref<18x18x8xf32, #tpu.memory_space<vmem>>, vector<16x16x4xf32>
    %c0_44 = arith.constant 0 : index
    %c0_45 = arith.constant 0 : index
    %c16 = arith.constant 16 : index
    %20 = vector.load %arg12[%c0_44, %c0_45, %c16] : memref<16x16x72xf32, #tpu.memory_space<vmem>>, vector<16x16x4xf32>
    tpu.vector_store %arg12[%c0_44, %c0_45, %c16], %19 {strides = array<i32>} : memref<16x16x72xf32, #tpu.memory_space<vmem>>, vector<16x16x4xf32>,
    %c1_46 = arith.constant 1 : index
    %c2_47 = arith.constant 2 : index
    %c0_48 = arith.constant 0 : index
    %21 = vector.load %arg11[%c1_46, %c2_47, %c0_48] : memref<18x18x8xf32, #tpu.memory_space<vmem>>, vector<16x16x4xf32>
    %c0_49 = arith.constant 0 : index
    %c0_50 = arith.constant 0 : index
    %c20 = arith.constant 20 : index
    %22 = vector.load %arg12[%c0_49, %c0_50, %c20] : memref<16x16x72xf32, #tpu.memory_space<vmem>>, vector<16x16x4xf32>
    tpu.vector_store %arg12[%c0_49, %c0_50, %c20], %21 {strides = array<i32>} : memref<16x16x72xf32, #tpu.memory_space<vmem>>, vector<16x16x4xf32>,
    %c2_51 = arith.constant 2 : index
    %c0_52 = arith.constant 0 : index
    %c0_53 = arith.constant 0 : index
    %23 = vector.load %arg11[%c2_51, %c0_52, %c0_53] : memref<18x18x8xf32, #tpu.memory_space<vmem>>, vector<16x16x4xf32>
    %c0_54 = arith.constant 0 : index
    %c0_55 = arith.constant 0 : index
    %c24 = arith.constant 24 : index
    %24 = vector.load %arg12[%c0_54, %c0_55, %c24] : memref<16x16x72xf32, #tpu.memory_space<vmem>>, vector<16x16x4xf32>
    tpu.vector_store %arg12[%c0_54, %c0_55, %c24], %23 {strides = array<i32>} : memref<16x16x72xf32, #tpu.memory_space<vmem>>, vector<16x16x4xf32>,
    %c2_56 = arith.constant 2 : index
    %c1_57 = arith.constant 1 : index
    %c0_58 = arith.constant 0 : index
    %25 = vector.load %arg11[%c2_56, %c1_57, %c0_58] : memref<18x18x8xf32, #tpu.memory_space<vmem>>, vector<16x16x4xf32>
    %c0_59 = arith.constant 0 : index
    %c0_60 = arith.constant 0 : index
    %c28 = arith.constant 28 : index
    %26 = vector.load %arg12[%c0_59, %c0_60, %c28] : memref<16x16x72xf32, #tpu.memory_space<vmem>>, vector<16x16x4xf32>
    tpu.vector_store %arg12[%c0_59, %c0_60, %c28], %25 {strides = array<i32>} : memref<16x16x72xf32, #tpu.memory_space<vmem>>, vector<16x16x4xf32>,
    %c2_61 = arith.constant 2 : index
    %c2_62 = arith.constant 2 : index
    %c0_63 = arith.constant 0 : index
    %27 = vector.load %arg11[%c2_61, %c2_62, %c0_63] : memref<18x18x8xf32, #tpu.memory_space<vmem>>, vector<16x16x4xf32>
    %c0_64 = arith.constant 0 : index
    %c0_65 = arith.constant 0 : index
    %c32 = arith.constant 32 : index
    %28 = vector.load %arg12[%c0_64, %c0_65, %c32] : memref<16x16x72xf32, #tpu.memory_space<vmem>>, vector<16x16x4xf32>
    tpu.vector_store %arg12[%c0_64, %c0_65, %c32], %27 {strides = array<i32>} : memref<16x16x72xf32, #tpu.memory_space<vmem>>, vector<16x16x4xf32>,
    %c0_66 = arith.constant 0 : index
    %c0_67 = arith.constant 0 : index
    %c0_68 = arith.constant 0 : index
    %29 = vector.load %arg12[%c0_66, %c0_67, %c0_68] : memref<16x16x72xf32, #tpu.memory_space<vmem>>, vector<16x16x36xf32>
    %30 = vector.shape_cast %29 : vector<16x16x36xf32> to vector<256x36xf32>
    %c0_69 = arith.constant 0 : index
    %c0_70 = arith.constant 0 : index
    %31 = vector.load %arg2[%c0_69, %c0_70] : memref<36x8xf32, #tpu.memory_space<vmem>>, vector<36x8xf32>
    %cst = arith.constant dense<0.000000e+00> : vector<256x8xf32>
    %32 = tpu.matmul %30, %31, %cst {dimension_numbers = #tpu.dot_dimension_numbers<[1], [0], [0], [1], [0, 0, 1, 1], [], []>} : vector<256x36xf32>, vector<36x8xf32>, vector<256x8xf32> -> vector<256x8xf32>
    %c0_71 = arith.constant 0 : index
    %c0_72 = arith.constant 0 : index
    %33 = vector.load %arg3[%c0_71, %c0_72] : memref<1x8xf32, #tpu.memory_space<vmem>>, vector<1x8xf32>
    %34 = vector.broadcast %33 : vector<1x8xf32> to vector<256x8xf32>
    %35 = arith.addf %32, %34 : vector<256x8xf32>
    %cst_73 = arith.constant 0.000000e+00 : f32
    %36 = vector.broadcast %cst_73 : f32 to vector<256x8xf32>
    %37 = arith.cmpf oge, %35, %36 : vector<256x8xf32>
    %cst_74 = arith.constant 2.000000e-01 : f32
    %38 = vector.broadcast %cst_74 : f32 to vector<256x8xf32>
    %39 = arith.mulf %38, %35 : vector<256x8xf32>
    %40 = arith.select %37, %35, %39 : vector<256x8xi1>, vector<256x8xf32>
    %41 = vector.shape_cast %40 : vector<256x8xf32> to vector<16x16x8xf32>
    %c1_75 = arith.constant 1 : index
    %c1_76 = arith.constant 1 : index
    %c0_77 = arith.constant 0 : index
    %42 = vector.load %arg11[%c1_75, %c1_76, %c0_77] : memref<18x18x8xf32, #tpu.memory_space<vmem>>, vector<16x16x8xf32>
    tpu.vector_store %arg11[%c1_75, %c1_76, %c0_77], %41 {strides = array<i32>} : memref<18x18x8xf32, #tpu.memory_space<vmem>>, vector<16x16x8xf32>,
    %43 = vector.extract_strided_slice %41 {offsets = [1, 0, 0], sizes = [1, 16, 8], strides = [1, 1, 1]} : vector<16x16x8xf32> to vector<1x16x8xf32>
    %c0_78 = arith.constant 0 : index
    %c1_79 = arith.constant 1 : index
    %c0_80 = arith.constant 0 : index
    %44 = vector.load %arg11[%c0_78, %c1_79, %c0_80] : memref<18x18x8xf32, #tpu.memory_space<vmem>>, vector<1x16x8xf32>
    tpu.vector_store %arg11[%c0_78, %c1_79, %c0_80], %43 {strides = array<i32>} : memref<18x18x8xf32, #tpu.memory_space<vmem>>, vector<1x16x8xf32>,
    %45 = vector.extract_strided_slice %41 {offsets = [14, 0, 0], sizes = [1, 16, 8], strides = [1, 1, 1]} : vector<16x16x8xf32> to vector<1x16x8xf32>
    %c17_81 = arith.constant 17 : index
    %c1_82 = arith.constant 1 : index
    %c0_83 = arith.constant 0 : index
    %46 = vector.load %arg11[%c17_81, %c1_82, %c0_83] : memref<18x18x8xf32, #tpu.memory_space<vmem>>, vector<1x16x8xf32>
    tpu.vector_store %arg11[%c17_81, %c1_82, %c0_83], %45 {strides = array<i32>} : memref<18x18x8xf32, #tpu.memory_space<vmem>>, vector<1x16x8xf32>,
    %c0_84 = arith.constant 0 : index
    %c2_85 = arith.constant 2 : index
    %c0_86 = arith.constant 0 : index
    %47 = vector.load %arg11[%c0_84, %c2_85, %c0_86] : memref<18x18x8xf32, #tpu.memory_space<vmem>>, vector<18x1x8xf32>
    %c0_87 = arith.constant 0 : index
    %c0_88 = arith.constant 0 : index
    %c0_89 = arith.constant 0 : index
    %48 = vector.load %arg11[%c0_87, %c0_88, %c0_89] : memref<18x18x8xf32, #tpu.memory_space<vmem>>, vector<18x1x8xf32>
    tpu.vector_store %arg11[%c0_87, %c0_88, %c0_89], %47 {strides = array<i32>} : memref<18x18x8xf32, #tpu.memory_space<vmem>>, vector<18x1x8xf32>,
    %c0_90 = arith.constant 0 : index
    %c15_91 = arith.constant 15 : index
    %c0_92 = arith.constant 0 : index
    %49 = vector.load %arg11[%c0_90, %c15_91, %c0_92] : memref<18x18x8xf32, #tpu.memory_space<vmem>>, vector<18x1x8xf32>
    %c0_93 = arith.constant 0 : index
    %c17_94 = arith.constant 17 : index
    %c0_95 = arith.constant 0 : index
    %50 = vector.load %arg11[%c0_93, %c17_94, %c0_95] : memref<18x18x8xf32, #tpu.memory_space<vmem>>, vector<18x1x8xf32>
    tpu.vector_store %arg11[%c0_93, %c17_94, %c0_95], %49 {strides = array<i32>} : memref<18x18x8xf32, #tpu.memory_space<vmem>>, vector<18x1x8xf32>,
    %c0_96 = arith.constant 0 : index
    %c0_97 = arith.constant 0 : index
    %c0_98 = arith.constant 0 : index
    %51 = vector.load %arg11[%c0_96, %c0_97, %c0_98] : memref<18x18x8xf32, #tpu.memory_space<vmem>>, vector<16x16x8xf32>
    %c0_99 = arith.constant 0 : index
    %c0_100 = arith.constant 0 : index
    %c0_101 = arith.constant 0 : index
    %52 = vector.load %arg12[%c0_99, %c0_100, %c0_101] : memref<16x16x72xf32, #tpu.memory_space<vmem>>, vector<16x16x8xf32>
    tpu.vector_store %arg12[%c0_99, %c0_100, %c0_101], %51 {strides = array<i32>} : memref<16x16x72xf32, #tpu.memory_space<vmem>>, vector<16x16x8xf32>,
    %c0_102 = arith.constant 0 : index
    %c1_103 = arith.constant 1 : index
    %c0_104 = arith.constant 0 : index
    %53 = vector.load %arg11[%c0_102, %c1_103, %c0_104] : memref<18x18x8xf32, #tpu.memory_space<vmem>>, vector<16x16x8xf32>
    %c0_105 = arith.constant 0 : index
    %c0_106 = arith.constant 0 : index
    %c8_107 = arith.constant 8 : index
    %54 = vector.load %arg12[%c0_105, %c0_106, %c8_107] : memref<16x16x72xf32, #tpu.memory_space<vmem>>, vector<16x16x8xf32>
    tpu.vector_store %arg12[%c0_105, %c0_106, %c8_107], %53 {strides = array<i32>} : memref<16x16x72xf32, #tpu.memory_space<vmem>>, vector<16x16x8xf32>,
    %c0_108 = arith.constant 0 : index
    %c2_109 = arith.constant 2 : index
    %c0_110 = arith.constant 0 : index
    %55 = vector.load %arg11[%c0_108, %c2_109, %c0_110] : memref<18x18x8xf32, #tpu.memory_space<vmem>>, vector<16x16x8xf32>
    %c0_111 = arith.constant 0 : index
    %c0_112 = arith.constant 0 : index
    %c16_113 = arith.constant 16 : index
    %56 = vector.load %arg12[%c0_111, %c0_112, %c16_113] : memref<16x16x72xf32, #tpu.memory_space<vmem>>, vector<16x16x8xf32>
    tpu.vector_store %arg12[%c0_111, %c0_112, %c16_113], %55 {strides = array<i32>} : memref<16x16x72xf32, #tpu.memory_space<vmem>>, vector<16x16x8xf32>,
    %c1_114 = arith.constant 1 : index
    %c0_115 = arith.constant 0 : index
    %c0_116 = arith.constant 0 : index
    %57 = vector.load %arg11[%c1_114, %c0_115, %c0_116] : memref<18x18x8xf32, #tpu.memory_space<vmem>>, vector<16x16x8xf32>
    %c0_117 = arith.constant 0 : index
    %c0_118 = arith.constant 0 : index
    %c24_119 = arith.constant 24 : index
    %58 = vector.load %arg12[%c0_117, %c0_118, %c24_119] : memref<16x16x72xf32, #tpu.memory_space<vmem>>, vector<16x16x8xf32>
    tpu.vector_store %arg12[%c0_117, %c0_118, %c24_119], %57 {strides = array<i32>} : memref<16x16x72xf32, #tpu.memory_space<vmem>>, vector<16x16x8xf32>,
    %c1_120 = arith.constant 1 : index
    %c1_121 = arith.constant 1 : index
    %c0_122 = arith.constant 0 : index
    %59 = vector.load %arg11[%c1_120, %c1_121, %c0_122] : memref<18x18x8xf32, #tpu.memory_space<vmem>>, vector<16x16x8xf32>
    %c0_123 = arith.constant 0 : index
    %c0_124 = arith.constant 0 : index
    %c32_125 = arith.constant 32 : index
    %60 = vector.load %arg12[%c0_123, %c0_124, %c32_125] : memref<16x16x72xf32, #tpu.memory_space<vmem>>, vector<16x16x8xf32>
    tpu.vector_store %arg12[%c0_123, %c0_124, %c32_125], %59 {strides = array<i32>} : memref<16x16x72xf32, #tpu.memory_space<vmem>>, vector<16x16x8xf32>,
    %c1_126 = arith.constant 1 : index
    %c2_127 = arith.constant 2 : index
    %c0_128 = arith.constant 0 : index
    %61 = vector.load %arg11[%c1_126, %c2_127, %c0_128] : memref<18x18x8xf32, #tpu.memory_space<vmem>>, vector<16x16x8xf32>
    %c0_129 = arith.constant 0 : index
    %c0_130 = arith.constant 0 : index
    %c40 = arith.constant 40 : index
    %62 = vector.load %arg12[%c0_129, %c0_130, %c40] : memref<16x16x72xf32, #tpu.memory_space<vmem>>, vector<16x16x8xf32>
    tpu.vector_store %arg12[%c0_129, %c0_130, %c40], %61 {strides = array<i32>} : memref<16x16x72xf32, #tpu.memory_space<vmem>>, vector<16x16x8xf32>,
    %c2_131 = arith.constant 2 : index
    %c0_132 = arith.constant 0 : index
    %c0_133 = arith.constant 0 : index
    %63 = vector.load %arg11[%c2_131, %c0_132, %c0_133] : memref<18x18x8xf32, #tpu.memory_space<vmem>>, vector<16x16x8xf32>
    %c0_134 = arith.constant 0 : index
    %c0_135 = arith.constant 0 : index
    %c48 = arith.constant 48 : index
    %64 = vector.load %arg12[%c0_134, %c0_135, %c48] : memref<16x16x72xf32, #tpu.memory_space<vmem>>, vector<16x16x8xf32>
    tpu.vector_store %arg12[%c0_134, %c0_135, %c48], %63 {strides = array<i32>} : memref<16x16x72xf32, #tpu.memory_space<vmem>>, vector<16x16x8xf32>,
    %c2_136 = arith.constant 2 : index
    %c1_137 = arith.constant 1 : index
    %c0_138 = arith.constant 0 : index
    %65 = vector.load %arg11[%c2_136, %c1_137, %c0_138] : memref<18x18x8xf32, #tpu.memory_space<vmem>>, vector<16x16x8xf32>
    %c0_139 = arith.constant 0 : index
    %c0_140 = arith.constant 0 : index
    %c56 = arith.constant 56 : index
    %66 = vector.load %arg12[%c0_139, %c0_140, %c56] : memref<16x16x72xf32, #tpu.memory_space<vmem>>, vector<16x16x8xf32>
    tpu.vector_store %arg12[%c0_139, %c0_140, %c56], %65 {strides = array<i32>} : memref<16x16x72xf32, #tpu.memory_space<vmem>>, vector<16x16x8xf32>,
    %c2_141 = arith.constant 2 : index
    %c2_142 = arith.constant 2 : index
    %c0_143 = arith.constant 0 : index
    %67 = vector.load %arg11[%c2_141, %c2_142, %c0_143] : memref<18x18x8xf32, #tpu.memory_space<vmem>>, vector<16x16x8xf32>
    %c0_144 = arith.constant 0 : index
    %c0_145 = arith.constant 0 : index
    %c64 = arith.constant 64 : index
    %68 = vector.load %arg12[%c0_144, %c0_145, %c64] : memref<16x16x72xf32, #tpu.memory_space<vmem>>, vector<16x16x8xf32>
    tpu.vector_store %arg12[%c0_144, %c0_145, %c64], %67 {strides = array<i32>} : memref<16x16x72xf32, #tpu.memory_space<vmem>>, vector<16x16x8xf32>,
    %c0_146 = arith.constant 0 : index
    %c0_147 = arith.constant 0 : index
    %c0_148 = arith.constant 0 : index
    %69 = vector.load %arg12[%c0_146, %c0_147, %c0_148] : memref<16x16x72xf32, #tpu.memory_space<vmem>>, vector<16x16x72xf32>
    %70 = vector.shape_cast %69 : vector<16x16x72xf32> to vector<256x72xf32>
    %c0_149 = arith.constant 0 : index
    %c0_150 = arith.constant 0 : index
    %71 = vector.load %arg4[%c0_149, %c0_150] : memref<72x8xf32, #tpu.memory_space<vmem>>, vector<72x8xf32>
    %cst_151 = arith.constant dense<0.000000e+00> : vector<256x8xf32>
    %72 = tpu.matmul %70, %71, %cst_151 {dimension_numbers = #tpu.dot_dimension_numbers<[1], [0], [0], [1], [0, 0, 1, 1], [], []>} : vector<256x72xf32>, vector<72x8xf32>, vector<256x8xf32> -> vector<256x8xf32>
    %c0_152 = arith.constant 0 : index
    %c0_153 = arith.constant 0 : index
    %73 = vector.load %arg5[%c0_152, %c0_153] : memref<1x8xf32, #tpu.memory_space<vmem>>, vector<1x8xf32>
    %74 = vector.broadcast %73 : vector<1x8xf32> to vector<256x8xf32>
    %75 = arith.addf %72, %74 : vector<256x8xf32>
    %cst_154 = arith.constant 0.000000e+00 : f32
    %76 = vector.broadcast %cst_154 : f32 to vector<256x8xf32>
    %77 = arith.cmpf oge, %75, %76 : vector<256x8xf32>
    %cst_155 = arith.constant 2.000000e-01 : f32
    %78 = vector.broadcast %cst_155 : f32 to vector<256x8xf32>
    %79 = arith.mulf %78, %75 : vector<256x8xf32>
    %80 = arith.select %77, %75, %79 : vector<256x8xi1>, vector<256x8xf32>
    %81 = vector.shape_cast %80 : vector<256x8xf32> to vector<16x16x8xf32>
    %c0_156 = arith.constant 0 : index
    %c0_157 = arith.constant 0 : index
    %c0_158 = arith.constant 0 : index
    %82 = vector.load %arg13[%c0_156, %c0_157, %c0_158] : memref<16x16x8xf32, #tpu.memory_space<vmem>>, vector<16x16x8xf32>
    tpu.vector_store %arg13[%c0_156, %c0_157, %c0_158], %81 {strides = array<i32>} : memref<16x16x8xf32, #tpu.memory_space<vmem>>, vector<16x16x8xf32>,
    %c0_159 = arith.constant 0 : index
    %c0_160 = arith.constant 0 : index
    %c0_161 = arith.constant 0 : index
    %83 = vector.load %arg13[%c0_159, %c0_160, %c0_161] : memref<16x16x8xf32, #tpu.memory_space<vmem>>, vector<16x16x8xf32>
    %84 = vector.shape_cast %83 : vector<16x16x8xf32> to vector<256x8xf32>
    %cst_162 = arith.constant dense<0.000000e+00> : vector<8xf32>
    %85 = vector.multi_reduction <add>, %84, %cst_162 [0] : vector<256x8xf32> to vector<8xf32>
    %86 = vector.shape_cast %85 : vector<8xf32> to vector<1x8xf32>
    %cst_163 = arith.constant 2.560000e+02 : f32
    %87 = vector.broadcast %cst_163 : f32 to vector<1x8xf32>
    %88 = arith.divf %86, %87 : vector<1x8xf32>
    %c0_164 = arith.constant 0 : index
    %c0_165 = arith.constant 0 : index
    %89 = vector.load %arg6[%c0_164, %c0_165] : memref<8x8xf32, #tpu.memory_space<vmem>>, vector<8x8xf32>
    %cst_166 = arith.constant dense<0.000000e+00> : vector<1x8xf32>
    %90 = tpu.matmul %88, %89, %cst_166 {dimension_numbers = #tpu.dot_dimension_numbers<[1], [0], [0], [1], [0, 0, 1, 1], [], []>} : vector<1x8xf32>, vector<8x8xf32>, vector<1x8xf32> -> vector<1x8xf32>
    %c0_167 = arith.constant 0 : index
    %c0_168 = arith.constant 0 : index
    %91 = vector.load %arg7[%c0_167, %c0_168] : memref<1x8xf32, #tpu.memory_space<vmem>>, vector<1x8xf32>
    %92 = arith.addf %90, %91 : vector<1x8xf32>
    %cst_169 = arith.constant 0.000000e+00 : f32
    %93 = vector.broadcast %cst_169 : f32 to vector<1x8xf32>
    %94 = arith.maximumf %92, %93 : vector<1x8xf32>
    %c0_170 = arith.constant 0 : index
    %c0_171 = arith.constant 0 : index
    %95 = vector.load %arg8[%c0_170, %c0_171] : memref<8x8xf32, #tpu.memory_space<vmem>>, vector<8x8xf32>
    %cst_172 = arith.constant dense<0.000000e+00> : vector<1x8xf32>
    %96 = tpu.matmul %94, %95, %cst_172 {dimension_numbers = #tpu.dot_dimension_numbers<[1], [0], [0], [1], [0, 0, 1, 1], [], []>} : vector<1x8xf32>, vector<8x8xf32>, vector<1x8xf32> -> vector<1x8xf32>
    %c0_173 = arith.constant 0 : index
    %c0_174 = arith.constant 0 : index
    %97 = vector.load %arg9[%c0_173, %c0_174] : memref<1x8xf32, #tpu.memory_space<vmem>>, vector<1x8xf32>
    %98 = arith.addf %96, %97 : vector<1x8xf32>
    %99 = arith.negf %98 : vector<1x8xf32>
    %100 = math.exp %99 : vector<1x8xf32>
    %cst_175 = arith.constant 1.000000e+00 : f32
    %101 = vector.broadcast %cst_175 : f32 to vector<1x8xf32>
    %102 = arith.addf %101, %100 : vector<1x8xf32>
    %103 = arith.divf %101, %102 : vector<1x8xf32>
    %104 = vector.broadcast %103 : vector<1x8xf32> to vector<256x8xf32>
    %105 = arith.mulf %84, %104 : vector<256x8xf32>
    %106 = vector.shape_cast %105 : vector<256x8xf32> to vector<1x16x16x8xf32>
    %c0_176 = arith.constant 0 : index
    %c0_177 = arith.constant 0 : index
    %c0_178 = arith.constant 0 : index
    %c0_179 = arith.constant 0 : index
    %107 = vector.load %arg10[%c0_176, %c0_177, %c0_178, %c0_179] : memref<1x16x16x8xf32, #tpu.memory_space<vmem>>, vector<1x16x16x8xf32>
    tpu.vector_store %arg10[%c0_176, %c0_177, %c0_178, %c0_179], %106 {strides = array<i32>} : memref<1x16x16x8xf32, #tpu.memory_space<vmem>>, vector<1x16x16x8xf32>,
    return
  }
  func.func @transform_0(%arg0: i32) -> (i32, i32, i32, i32) {
    %c0_i32 = arith.constant 0 : i32
    %c0_i32_0 = arith.constant 0 : i32
    %c0_i32_1 = arith.constant 0 : i32
    %c0_i32_2 = arith.constant 0 : i32
    return %arg0, %c0_i32, %c0_i32_0, %c0_i32_1 : i32, i32, i32, i32
  }
  func.func @transform_1(%arg0: i32) -> (i32, i32) {
    %c0_i32 = arith.constant 0 : i32
    %c0_i32_0 = arith.constant 0 : i32
    %c0_i32_1 = arith.constant 0 : i32
    return %c0_i32, %c0_i32_0 : i32, i32
  }
  func.func @transform_2(%arg0: i32) -> (i32, i32) {
    %c0_i32 = arith.constant 0 : i32
    %c0_i32_0 = arith.constant 0 : i32
    %c0_i32_1 = arith.constant 0 : i32
    return %c0_i32, %c0_i32_0 : i32, i32
  }
  func.func @transform_3(%arg0: i32) -> (i32, i32) {
    %c0_i32 = arith.constant 0 : i32
    %c0_i32_0 = arith.constant 0 : i32
    %c0_i32_1 = arith.constant 0 : i32
    return %c0_i32, %c0_i32_0 : i32, i32
  }
  func.func @transform_4(%arg0: i32) -> (i32, i32) {
    %c0_i32 = arith.constant 0 : i32
    %c0_i32_0 = arith.constant 0 : i32
    %c0_i32_1 = arith.constant 0 : i32
    return %c0_i32, %c0_i32_0 : i32, i32
  }
  func.func @transform_5(%arg0: i32) -> (i32, i32) {
    %c0_i32 = arith.constant 0 : i32
    %c0_i32_0 = arith.constant 0 : i32
    %c0_i32_1 = arith.constant 0 : i32
    return %c0_i32, %c0_i32_0 : i32, i32
  }
  func.func @transform_6(%arg0: i32) -> (i32, i32) {
    %c0_i32 = arith.constant 0 : i32
    %c0_i32_0 = arith.constant 0 : i32
    %c0_i32_1 = arith.constant 0 : i32
    return %c0_i32, %c0_i32_0 : i32, i32
  }
  func.func @transform_7(%arg0: i32) -> (i32, i32) {
    %c0_i32 = arith.constant 0 : i32
    %c0_i32_0 = arith.constant 0 : i32
    %c0_i32_1 = arith.constant 0 : i32
    return %c0_i32, %c0_i32_0 : i32, i32
  }
  func.func @transform_8(%arg0: i32) -> (i32, i32) {
    %c0_i32 = arith.constant 0 : i32
    %c0_i32_0 = arith.constant 0 : i32
    %c0_i32_1 = arith.constant 0 : i32
    return %c0_i32, %c0_i32_0 : i32, i32
  }
  func.func @transform_9(%arg0: i32) -> (i32, i32, i32, i32) {
    %c0_i32 = arith.constant 0 : i32
    %c0_i32_0 = arith.constant 0 : i32
    %c0_i32_1 = arith.constant 0 : i32
    %c0_i32_2 = arith.constant 0 : i32
    return %arg0, %c0_i32, %c0_i32_0, %c0_i32_1 : i32, i32, i32, i32
  }
}

</mosaic_0001>

<bundles_post_ra>
// kernel: tpu_custom_call.1
= control target key start
LH: loop header
LB: loop body
LE: loop exit
PB: predicated region body
PF: predicated region fallthrough
CT: control target
= control target key end

     0   :  { %s5043_s30 = smov 0   ;;  %s7560_s0 = inlined_call_operand.vmem [shape: f32[2,16,16,4], index: 0, kind: input, shape index: {}]   ;;  %s7561_s1 = inlined_call_operand.vmem [shape: f32[36,8], index: 1, kind: input, shape index: {}]   ;;  %s7562_s2 = inlined_call_operand.vmem [shape: f32[1,8], index: 2, kind: input, shape index: {}]   ;;  %s7563_s3 = inlined_call_operand.vmem [shape: f32[72,8], index: 3, kind: input, shape index: {}]   ;;  %s7564_s4 = inlined_call_operand.vmem [shape: f32[1,8], index: 4, kind: input, shape index: {}]   ;;  %s7565_s5 = inlined_call_operand.vmem [shape: f32[8,8], index: 5, kind: input, shape index: {}]   ;;  %s7566_s6 = inlined_call_operand.vmem [shape: f32[1,8], index: 6, kind: input, shape index: {}]   ;;  %s7567_s7 = inlined_call_operand.vmem [shape: f32[8,8], index: 7, kind: input, shape index: {}]   ;;  %s7568_s8 = inlined_call_operand.vmem [shape: f32[1,8], index: 8, kind: input, shape index: {}]   ;;  %s7569_s9 = inlined_call_operand.vmem [shape: f32[2,16,16,8], index: 9, kind: output, shape index: {}]  }
   0x1 LB: > { %s4837_s10 = sadd.s32 4294967295, %s4978_s30   ;;  %p4841_p0 = scmp.ge.s32.totalorder %s4978_s30, 1  ;;  %s4978_s30 = sphi %s5043_s30, %s19_s30  }
   0x2   : > { %p287_p1 = scmp.lt.s32.totalorder %s4978_s30, 3 }
   0x4   : > { %p288_p2 = pnand %p4841_p0, %p287_p1 }
   0x6   : > { %291 = sbr.rel (%p288_p2) target bundleno = 2226 (0x8b2), region = 56 }
   0xb   : > { %p323_p3 = scmp.lt.s32.totalorder %s4837_s10, 1  ;;  %vm366_vm0 = vcmask 31744   ;;  %s4980_s15 = smov 4   ;;  %vm422_vm1 = vcmask 24576   ;;  %vm701_vm2 = vcmask 64544   ;;  %vm894_vm3 = vcmask 97344  }
   0xc   : > { %s4981_s16 = smov 8   ;;  %s4982_s17 = smov 12   ;;  %vm1087_vm4 = vcmask 130144   ;;  %vm1280_vm5 = vcmask 162944   ;;  %vm1473_vm6 = vcmask 195744   ;;  %vm1667_vm7 = vcmask 228544  }
   0xd   : > { %s7583_s10 = smov (!%p323_p3, %s4837_s10), 1  ;;  %s4983_s18 = smov 16   ;;  %vm2224_vm8 = vcmask 1043456   ;;  %vm1860_vm9 = vcmask 261344   ;;  %vm2053_vm10 = vcmask 294144   ;;  %vm2127_vm11 = vcmask 293888  }
   0xe   : > { %s4916_s11 = sshll.u32 %s7583_s10, 8  ;;  %s4984_s19 = smov 20   ;;  %vm2437_vm13 = vcmask 64512   ;;  %vm2492_vm15 = vcmask 57344  }
   0xf   : > { %s5059_s14 = scalar_lea.vmem %s7560_s0, %s4916_s11  ;;  %s4985_s20 = smov 24  }
  0x10   : > { %v335_v0 = vld [vmem:[%s5059_s14 + $0x10] sm:$0xff]  ;;  %v336_v1 = vld [vmem:[%s5059_s14 + $0x18] sm:$0xff]  ;;  %v333_v2 = vld [vmem:[%s5059_s14] sm:$0xff]  ;;  %s4986_s21 = smov 28   ;;  %s4987_s22 = smov 32  }
  0x11   : > { %399 = vst.msk [vmem:[#allocation2 + $0x1] sm:$0xff] %vm366_vm0, %v335_v0  ;;  %v337_v3 = vld [vmem:[%s5059_s14 + $0x20] sm:$0xff]  ;;  %v334_v4 = vld [vmem:[%s5059_s14 + $0x8] sm:$0xff]  ;;  %v340_v5 = vld [vmem:[%s5059_s14 + $0x38] sm:$0xff]  ;;  %s4991_s23 = smov 56   ;;  %s7459_s29 = scalar_lea.vmem %s7569_s9, %s4916_s11 }
  0x12   : > { %369 = vst.msk [vmem:[#allocation2 + $0x31] sm:$0xff] %vm366_vm0, %v335_v0  ;;  %v338_v6 = vld [vmem:[%s5059_s14 + $0x28] sm:$0xff]  ;;  %v343_v7 = vld [vmem:[%s5059_s14 + $0x50] sm:$0xff]  ;;  %v341_v9 = vld [vmem:[%s5059_s14 + $0x40] sm:$0xff] }
  0x13   : > { %400 = vst.msk [vmem:[#allocation2 + $0x9] sm:$0xff] %vm366_vm0, %v336_v1  ;;  %v346_v11 = vld [vmem:[%s5059_s14 + $0x68] sm:$0xff]  ;;  %v344_v12 = vld [vmem:[%s5059_s14 + $0x58] sm:$0xff]  ;;  %v349_v16 = vld [vmem:[%s5059_s14 + $0x80] sm:$0xff] }
  0x14   : > { %370 = vst.msk [vmem:[#allocation2 + $0x39] sm:$0xff] %vm366_vm0, %v336_v1  ;;  %v339_v17 = vld [vmem:[%s5059_s14 + $0x30] sm:$0xff]  ;;  %v352_v21 = vld [vmem:[%s5059_s14 + $0x98] sm:$0xff]  ;;  %v342_v22 = vld [vmem:[%s5059_s14 + $0x48] sm:$0xff] }
  0x15   : > { %367 = vst.msk [vmem:[#allocation2 + $0x19] sm:$0xff] %vm366_vm0, %v333_v2  ;;  %v347_v18 = vld [vmem:[%s5059_s14 + $0x70] sm:$0xff]  ;;  %v350_v24 = vld [vmem:[%s5059_s14 + $0x88] sm:$0xff]  ;;  %v345_v28 = vld [vmem:[%s5059_s14 + $0x60] sm:$0xff] }
  0x16   : > { %371 = vst.msk [vmem:[#allocation2 + $0x49] sm:$0xff] %vm366_vm0, %v337_v3  ;;  %v355_v27 = vld [vmem:[%s5059_s14 + $0xb0] sm:$0xff]  ;;  %v353_v30 = vld [vmem:[%s5059_s14 + $0xa0] sm:$0xff]  ;;  %v358_v33 = vld [vmem:[%s5059_s14 + $0xc8] sm:$0xff] }
  0x17   : > { %368 = vst.msk [vmem:[#allocation2 + $0x21] sm:$0xff] %vm366_vm0, %v334_v4  ;;  %v348_v34 = vld [vmem:[%s5059_s14 + $0x78] sm:$0xff]  ;;  %v361_v39 = vld [vmem:[%s5059_s14 + $0xe0] sm:$0xff]  ;;  %v351_v40 = vld [vmem:[%s5059_s14 + $0x90] sm:$0xff] }
  0x18   : > { %v541_v8 = vld [vmem:[#allocation2 + $0x1] sm:$0xff]  ;;  %374 = vst.msk [vmem:[#allocation2 + $0x69] sm:$0xff] %vm366_vm0, %v340_v5  ;;  %v356_v36 = vld [vmem:[%s5059_s14 + $0xb8] sm:$0xff]  ;;  %v359_v42 = vld [vmem:[%s5059_s14 + $0xd0] sm:$0xff] }
  0x19   : > { %605 = vrot.lane.b32.xlu0 %v541_v8, %s4980_s15  ;;  %372 = vst.msk [vmem:[#allocation2 + $0x51] sm:$0xff] %vm366_vm0, %v338_v6  ;;  %v5080_v10 = vld [vmem:[#allocation2 + $0x31] sm:$0xff]  ;;  %v354_v46 = vld [vmem:[%s5059_s14 + $0xa8] sm:$0xff]  ;;  %v357_v51 = vld [vmem:[%s5059_s14 + $0xc0] sm:$0xff] }
  0x1a   : > { %377 = vst.msk [vmem:[#allocation2 + $0x91] sm:$0xff] %vm366_vm0, %v343_v7  ;;  %613 = vrot.lane.b32.xlu2 %v5080_v10, %s4980_s15  ;;  %v542_v14 = vld [vmem:[#allocation2 + $0x9] sm:$0xff]  ;;  %v360_v57 = vld [vmem:[%s5059_s14 + $0xd8] sm:$0xff]  ;;  %v404_v63 = vld [vmem:[#allocation2 + $0x2] sm:$0x1] }
  0x1b   : > { %375 = vst.msk [vmem:[#allocation2 + $0x79] sm:$0xff] %vm366_vm0, %v341_v9  ;;  %v5094_v15 = vld [vmem:[#allocation2 + $0x39] sm:$0xff]  ;;  %v441_v45 = vld [vmem:[#allocation2 + $0xf] sm:$0x1]  ;;  %v734_v1 = vld [vmem:[#allocation2 + $0x2] sm:$0xff] }
  0x1c   : > { %v5088_v13 = vld [vmem:[#allocation2 + $0x19] sm:$0xff]  ;;  %380 = vst.msk [vmem:[#allocation2 + $0xb1] sm:$0xff] %vm366_vm0, %v346_v11  ;;  %v362_v47 = vld [vmem:[%s5059_s14 + $0xe8] sm:$0xff]  ;;  %v406_v7 = vld [vmem:[#allocation2 + $0x32] sm:$0x1] }
  0x1d   : > { %609 = vrot.lane.b32.xlu1 %v5088_v13, %s4980_s15  ;;  %378 = vst.msk [vmem:[#allocation2 + $0x99] sm:$0xff] %vm366_vm0, %v344_v12  ;;  %v5109_v20 = vld [vmem:[#allocation2 + $0x49] sm:$0xff]  ;;  %v443_v58 = vld [vmem:[#allocation2 + $0x3f] sm:$0x1] }
  0x1e   : > { %383 = vst.msk [vmem:[#allocation2 + $0xd9] sm:$0xff] %vm366_vm0, %v349_v16  ;;  %v5101_v19 = vld [vmem:[#allocation2 + $0x21] sm:$0xff] }
  0x1f   : > { %373 = vst.msk [vmem:[#allocation2 + $0x61] sm:$0xff] %vm366_vm0, %v339_v17  ;;  %v5124_v26 = vld [vmem:[#allocation2 + $0x69] sm:$0xff]  ;;  %v442_v3 = vld [vmem:[#allocation2 + $0x27] sm:$0x1]  ;;  %v736_v11 = vld [vmem:[#allocation2 + $0x1a] sm:$0xff] }
  0x20   : > { %381 = vst.msk [vmem:[#allocation2 + $0xc1] sm:$0xff] %vm366_vm0, %v347_v18  ;;  %v548_v25 = vld [vmem:[#allocation2 + $0x51] sm:$0xff]  ;;  %v478_v12 = vld [vmem:[#allocation2 + $0x8] sm:$0xff] }
  0x21   : > { %607 = vrot.lane.b32.xlu0 %v542_v14, %s4980_s15  ;;  %386 = vst.msk [vmem:[#allocation2 + $0xf9] sm:$0xff] %vm366_vm0, %v352_v21  ;;  %v5139_v32 = vld [vmem:[#allocation2 + $0x91] sm:$0xff]  ;;  %v405_v14 = vld [vmem:[#allocation2 + $0x1a] sm:$0x1]  ;;  %v407_v18 = vld [vmem:[#allocation2 + $0x4a] sm:$0x1] }
  0x22   : > { %615 = vrot.lane.b32.xlu2 %v5094_v15, %s4980_s15  ;;  %376 = vst.msk [vmem:[#allocation2 + $0x81] sm:$0xff] %vm366_vm0, %v342_v22  ;;  %v551_v31 = vld [vmem:[#allocation2 + $0x79] sm:$0xff]  ;;  %v444_v56 = vld [vmem:[#allocation2 + $0x57] sm:$0x1]  ;;  %v5226_v22 = vld [vmem:[#allocation2 + $0x4a] sm:$0xff] }
  0x23   : > { %384 = vst.msk [vmem:[#allocation2 + $0xe1] sm:$0xff] %vm366_vm0, %v350_v24  ;;  %v556_v38 = vld [vmem:[#allocation2 + $0xb1] sm:$0xff] }
  0x24   : > { %389 = vst.msk [vmem:[#allocation2 + $0x121] sm:$0xff] %vm366_vm0, %v355_v27  ;;  %v554_v37 = vld [vmem:[#allocation2 + $0x99] sm:$0xff] }
  0x25   : > { %611 = vrot.lane.b32.xlu1 %v5101_v19, %s4980_s15  ;;  %379 = vst.msk [vmem:[#allocation2 + $0xa9] sm:$0xff] %vm366_vm0, %v345_v28  ;;  %v559_v44 = vld [vmem:[#allocation2 + $0xd9] sm:$0xff] }
  0x26   : > { %v5115_v23 = vld [vmem:[#allocation2 + $0x61] sm:$0xff]  ;;  %387 = vst.msk [vmem:[#allocation2 + $0x109] sm:$0xff] %vm366_vm0, %v353_v30  ;;  %v447_v2 = vld [vmem:[#allocation2 + $0x9f] sm:$0x1]  ;;  %v738_v21 = vld [vmem:[#allocation2 + $0x32] sm:$0xff] }
  0x27   : > { %392 = vst.msk [vmem:[#allocation2 + $0x141] sm:$0xff] %vm366_vm0, %v358_v33  ;;  %v557_v43 = vld [vmem:[#allocation2 + $0xc1] sm:$0xff]  ;;  %v5230_v28 = vld [vmem:[#allocation2 + $0x38] sm:$0xff] }
  0x28   : > { %382 = vst.msk [vmem:[#allocation2 + $0xc9] sm:$0xff] %vm366_vm0, %v348_v34  ;;  %v562_v50 = vld [vmem:[#allocation2 + $0xf9] sm:$0xff] }
  0x29   : > { %617 = vrot.lane.b32.xlu0 %v5109_v20, %s4980_s15  ;;  %v5130_v29 = vld [vmem:[#allocation2 + $0x81] sm:$0xff]  ;;  %390 = vst.msk [vmem:[#allocation2 + $0x129] sm:$0xff] %vm366_vm0, %v356_v36 }
  0x2a   : > { %621 = vrot.lane.b32.xlu2 %v5115_v23, %s4980_s15  ;;  %395 = vst.msk [vmem:[#allocation2 + $0x169] sm:$0xff] %vm366_vm0, %v361_v39  ;;  %v560_v48 = vld [vmem:[#allocation2 + $0xe1] sm:$0xff] }
  0x2b   : > { %402 = vst.msk [vmem:[#allocation2 + $0x199] sm:$0xff] %vm366_vm0, %v361_v39  ;;  %v565_v54 = vld [vmem:[#allocation2 + $0x121] sm:$0xff] }
  0x2c   : > { %v5145_v35 = vld [vmem:[#allocation2 + $0xa9] sm:$0xff]  ;;  %385 = vst.msk [vmem:[#allocation2 + $0xf1] sm:$0xff] %vm366_vm0, %v351_v40  ;;  %v446_v6 = vld [vmem:[#allocation2 + $0x87] sm:$0x1] }
  0x2d   : > { %619 = vrot.lane.b32.xlu1 %v548_v25, %s4980_s15  ;;  %393 = vst.msk [vmem:[#allocation2 + $0x151] sm:$0xff] %vm366_vm0, %v359_v42  ;;  %v563_v53 = vld [vmem:[#allocation2 + $0x109] sm:$0xff]  ;;  %v450_v24 = vld [vmem:[#allocation2 + $0xe7] sm:$0x1] }
  0x2e   : > { %459 = vst.msk [vmem:[#allocation2 + $0x11] sm:$0x1] %vm422_vm1, %v441_v45  ;;  %v568_v60 = vld [vmem:[#allocation2 + $0x141] sm:$0xff]  ;;  %v445_v25 = vld [vmem:[#allocation2 + $0x6f] sm:$0x1]  ;;  %v5263_v45 = vld [vmem:[#allocation2 + $0x50] sm:$0xff] }
  0x2f   : > { %v5157_v41 = vld [vmem:[#allocation2 + $0xc9] sm:$0xff]  ;;  %388 = vst.msk [vmem:[#allocation2 + $0x111] sm:$0xff] %vm366_vm0, %v354_v46  ;;  %v5241_v33 = vld [vmem:[#allocation2 + $0x20] sm:$0xff] }
  0x30   : > { %396 = vst.msk [vmem:[#allocation2 + $0x171] sm:$0xff] %vm366_vm0, %v362_v47  ;;  %v566_v59 = vld [vmem:[#allocation2 + $0x129] sm:$0xff]  ;;  %v744_v46 = vld [vmem:[#allocation2 + $0x7a] sm:$0xff] }
  0x31   : > { %623 = vrot.lane.b32.xlu0 %v5124_v26, %s4980_s15  ;;  %403 = vst.msk [vmem:[#allocation2 + $0x1a1] sm:$0xff] %vm366_vm0, %v362_v47  ;;  %v571_v0 = vld [vmem:[#allocation2 + $0x169] sm:$0xff] }
  0x32   : > { %627 = vrot.lane.b32.xlu2 %v5130_v29, %s4980_s15  ;;  %391 = vst.msk [vmem:[#allocation2 + $0x139] sm:$0xff] %vm366_vm0, %v357_v51  ;;  %v449_v34 = vld [vmem:[#allocation2 + $0xcf] sm:$0x1]  ;;  %v742_v42 = vld [vmem:[#allocation2 + $0x62] sm:$0xff] }
  0x33   : > { %v5171_v49 = vld [vmem:[#allocation2 + $0xf1] sm:$0xff]  ;;  %462 = vst.msk [vmem:[#allocation2 + $0x59] sm:$0x1] %vm422_vm1, %v444_v56  ;;  %v5255_v40 = vld [vmem:[#allocation2 + $0x68] sm:$0xff] }
  0x34   : > { %394 = vst.msk [vmem:[#allocation2 + $0x159] sm:$0xff] %vm366_vm0, %v360_v57  ;;  %v569_v62 = vld [vmem:[#allocation2 + $0x151] sm:$0xff]  ;;  %v409_v57 = vld [vmem:[#allocation2 + $0x7a] sm:$0x1] }
  0x35   : > { %625 = vrot.lane.b32.xlu1 %v551_v31, %s4980_s15  ;;  %461 = vst.msk [vmem:[#allocation2 + $0x41] sm:$0x1] %vm422_vm1, %v443_v58  ;;  %v735_v8 = vld [vmem:[#allocation2 + $0xa] sm:$0xff] }
  0x36   : > { %v5181_v52 = vld [vmem:[#allocation2 + $0x111] sm:$0xff]  ;;  %423 = vst.msk [vmem:[#allocation2] sm:$0x1] %vm422_vm1, %v404_v63 }
  0x37   : > { %465 = vst.msk [vmem:[#allocation2 + $0xa1] sm:$0x1] %vm422_vm1, %v447_v2  ;;  %v572_v4 = vld [vmem:[#allocation2 + $0x171] sm:$0xff] }
  0x38   : > { %460 = vst.msk [vmem:[#allocation2 + $0x29] sm:$0x1] %vm422_vm1, %v442_v3  ;;  %v452_v63 = vld [vmem:[#allocation2 + $0x117] sm:$0x1]  ;;  %v411_v3 = vld [vmem:[#allocation2 + $0xaa] sm:$0x1] }
  0x39   : > { %629 = vrot.lane.b32.xlu0 %v5139_v32, %s4980_s15  ;;  %v5187_v55 = vld [vmem:[#allocation2 + $0x139] sm:$0xff]  ;;  %464 = vst.msk [vmem:[#allocation2 + $0x89] sm:$0x1] %vm422_vm1, %v446_v6 }
  0x3a   : > { %633 = vrot.lane.b32.xlu2 %v5145_v35, %s4980_s15  ;;  %425 = vst.msk [vmem:[#allocation2 + $0x30] sm:$0x1] %vm422_vm1, %v406_v7  ;;  %v741_v36 = vld [vmem:[#allocation2 + $0x52] sm:$0xff] }
  0x3b   : > { %v5198_v61 = vld [vmem:[#allocation2 + $0x159] sm:$0xff]  ;;  %510 = vst.msk [vmem:[#allocation3 + $0x8] sm:$0xff] %vm366_vm0, %v478_v12 }
  0x3c   : > { %424 = vst.msk [vmem:[#allocation2 + $0x18] sm:$0x1] %vm422_vm1, %v405_v14  ;;  %v739_v27 = vld [vmem:[#allocation2 + $0x3a] sm:$0xff] }
  0x3d   : > { %631 = vrot.lane.b32.xlu1 %v554_v37, %s4980_s15  ;;  %v477_v5 = vld [vmem:[#allocation2] sm:$0xff]  ;;  %426 = vst.msk [vmem:[#allocation2 + $0x48] sm:$0x1] %vm422_vm1, %v407_v18  ;;  %v5306_v7 = vld [vmem:[#allocation2 + $0x98] sm:$0xff] }
  0x3e   : > { %509 = vst.msk [vmem:[#allocation3] sm:$0xff] %vm366_vm0, %v477_v5  ;;  %v747_v58 = vld [vmem:[#allocation2 + $0x9a] sm:$0xff]  ;;  %v5301_v5 = vld [vmem:[#allocation2 + $0xc2] sm:$0xff] }
  0x3f   : > { %v5213_v9 = vld [vmem:[#allocation2 + $0x22] sm:$0xff]  ;;  %468 = vst.msk [vmem:[#allocation2 + $0xe9] sm:$0x1] %vm422_vm1, %v450_v24 }
  0x40   : > { %463 = vst.msk [vmem:[#allocation2 + $0x71] sm:$0x1] %vm422_vm1, %v445_v25 }
  0x41   : > { %635 = vrot.lane.b32.xlu0 %v556_v38, %s4980_s15  ;;  %v5218_v17 = vld [vmem:[#allocation2 + $0x30] sm:$0xff]  ;;  %514 = vst.msk [vmem:[#allocation3 + $0x28] sm:$0xff] %vm366_vm0, %v5230_v28  ;;  %v408_v38 = vld [vmem:[#allocation2 + $0x62] sm:$0x1] }
  0x42   : > { %639 = vrot.lane.b32.xlu2 %v5157_v41, %s4980_s15  ;;  %513 = vst.msk [vmem:[#allocation3 + $0x20] sm:$0xff] %vm366_vm0, %v5218_v17 }
  0x43   : > { %v5233_v30 = vld [vmem:[#allocation2 + $0x18] sm:$0xff]  ;;  %512 = vst.msk [vmem:[#allocation3 + $0x18] sm:$0xff] %vm366_vm0, %v5241_v33 }
  0x44   : > { %511 = vst.msk [vmem:[#allocation3 + $0x10] sm:$0xff] %vm366_vm0, %v5233_v30  ;;  %v5245_v37 = vld [vmem:[#allocation2 + $0x48] sm:$0xff] }
  0x45   : > { %637 = vrot.lane.b32.xlu1 %v557_v43, %s4980_s15  ;;  %515 = vst.msk [vmem:[#allocation3 + $0x30] sm:$0xff] %vm366_vm0, %v5245_v37  ;;  %v410_v43 = vld [vmem:[#allocation2 + $0x92] sm:$0x1] }
  0x46   : > { %467 = vst.msk [vmem:[#allocation2 + $0xd1] sm:$0x1] %vm422_vm1, %v449_v34  ;;  %v5332_v25 = vld [vmem:[#allocation2 + $0xe2] sm:$0xff]  ;;  %v5337_v34 = vld [vmem:[#allocation2 + $0xda] sm:$0xff] }
  0x47   : > { %v5253_v39 = vld [vmem:[#allocation2 + $0x6a] sm:$0xff]  ;;  %427 = vst.msk [vmem:[#allocation2 + $0x60] sm:$0x1] %vm422_vm1, %v408_v38 }
  0x48   : > { %518 = vst.msk [vmem:[#allocation3 + $0x48] sm:$0xff] %vm366_vm0, %v5255_v40 }
  0x49   : > { %641 = vrot.lane.b32.xlu0 %v559_v44, %s4980_s15  ;;  %429 = vst.msk [vmem:[#allocation2 + $0x90] sm:$0x1] %vm422_vm1, %v410_v43  ;;  %v451_v43 = vld [vmem:[#allocation2 + $0xff] sm:$0x1] }
  0x4a   : > { %645 = vrot.lane.b32.xlu2 %v5171_v49, %s4980_s15  ;;  %516 = vst.msk [vmem:[#allocation3 + $0x38] sm:$0xff] %vm366_vm0, %v5263_v45 }
  0x4b   : > { %428 = vst.msk [vmem:[#allocation2 + $0x78] sm:$0x1] %vm422_vm1, %v409_v57 }
  0x4c   : > { %470 = vst.msk [vmem:[#allocation2 + $0x119] sm:$0x1] %vm422_vm1, %v452_v63  ;;  %v416_v63 = vld [vmem:[#allocation2 + $0x122] sm:$0x1] }
  0x4d   : > { %643 = vrot.lane.b32.xlu1 %v560_v48, %s4980_s15  ;;  %v5270_v48 = vld [vmem:[#allocation2 + $0x92] sm:$0xff]  ;;  %430 = vst.msk [vmem:[#allocation2 + $0xa8] sm:$0x1] %vm422_vm1, %v411_v3  ;;  %v5317_v14 = vld [vmem:[#allocation2 + $0xca] sm:$0xff] }
  0x4e   : > { %v5268_v47 = vld [vmem:[#allocation2 + $0x60] sm:$0xff]  ;;  %522 = vst.msk [vmem:[#allocation3 + $0x68] sm:$0xff] %vm366_vm0, %v5306_v7 }
  0x4f   : > { %517 = vst.msk [vmem:[#allocation3 + $0x40] sm:$0xff] %vm366_vm0, %v5268_v47 }
  0x50   : > { %v5276_v51 = vld [vmem:[#allocation2 + $0x90] sm:$0xff]  ;;  %469 = vst.msk [vmem:[#allocation2 + $0x101] sm:$0x1] %vm422_vm1, %v451_v43  ;;  %v454_v43 = vld [vmem:[#allocation2 + $0x147] sm:$0x1] }
  0x51   : > { %647 = vrot.lane.b32.xlu0 %v562_v50, %s4980_s15  ;;  %v745_v50 = vld [vmem:[#allocation2 + $0x82] sm:$0xff]  ;;  %521 = vst.msk [vmem:[#allocation3 + $0x60] sm:$0xff] %vm366_vm0, %v5276_v51 }
  0x52   : > { %651 = vrot.lane.b32.xlu2 %v5181_v52, %s4980_s15  ;;  %v5303_v6 = vld [vmem:[#allocation2 + $0x78] sm:$0xff]  ;;  %435 = vst.msk [vmem:[#allocation2 + $0x120] sm:$0x1] %vm422_vm1, %v416_v63 }
  0x53   : > { %519 = vst.msk [vmem:[#allocation3 + $0x50] sm:$0xff] %vm366_vm0, %v5303_v6  ;;  %v417_v63 = vld [vmem:[#allocation2 + $0x13a] sm:$0x1] }
  0x54   : > { %v5329_v24 = vld [vmem:[#allocation2 + $0xa8] sm:$0xff]  ;;  %472 = vst.msk [vmem:[#allocation2 + $0x149] sm:$0x1] %vm422_vm1, %v454_v43  ;;  %v5435_v43 = vld [vmem:[#allocation2 + $0x158] sm:$0xff] }
  0x55   : > { %649 = vrot.lane.b32.xlu1 %v563_v53, %s4980_s15  ;;  %v5278_v53 = vld [vmem:[#allocation2 + $0x80] sm:$0xff]  ;;  %523 = vst.msk [vmem:[#allocation3 + $0x70] sm:$0xff] %vm366_vm0, %v5329_v24 }
  0x56   : > { %520 = vst.msk [vmem:[#allocation3 + $0x58] sm:$0xff] %vm366_vm0, %v5278_v53 }
  0x57   : > { %v5380_v3 = vld [vmem:[#allocation2 + $0xfa] sm:$0xff]  ;;  %436 = vst.msk [vmem:[#allocation2 + $0x138] sm:$0x1] %vm422_vm1, %v417_v63  ;;  %v418_v63 = vld [vmem:[#allocation2 + $0x152] sm:$0x1] }
  0x58   : > { %538 = vst.msk [vmem:[#allocation3 + $0xe8] sm:$0xff] %vm366_vm0, %v5435_v43 }
  0x59   : > { %653 = vrot.lane.b32.xlu0 %v565_v54, %s4980_s15  ;;  %437 = vst.msk [vmem:[#allocation2 + $0x150] sm:$0x1] %vm422_vm1, %v418_v63 }
  0x5a   : > { %657 = vrot.lane.b32.xlu2 %v5187_v55, %s4980_s15 }
  0x5d   : > { %655 = vrot.lane.b32.xlu1 %v566_v59, %s4980_s15  ;;  %v453_v59 = vld [vmem:[#allocation2 + $0x12f] sm:$0x1] }
  0x5e   : > { %471 = vst.msk [vmem:[#allocation2 + $0x131] sm:$0x1] %vm422_vm1, %v453_v59 }
  0x61   : > { %659 = vrot.lane.b32.xlu0 %v568_v60, %s4980_s15 }
  0x62   : > { %663 = vrot.lane.b32.xlu2 %v5198_v61, %s4980_s15 }
  0x65   : > { %661 = vrot.lane.b32.xlu1 %v569_v62, %s4980_s15  ;;  %v448_v62 = vld [vmem:[#allocation2 + $0xb7] sm:$0x1] }
  0x66   : > { %466 = vst.msk [vmem:[#allocation2 + $0xb9] sm:$0x1] %vm422_vm1, %v448_v62  ;;  %v5372_v62 = vld [vmem:[#allocation2 + $0x112] sm:$0xff] }
  0x67   : > { %7574 = vst [vmem:[#allocation5_spill] sm:$0xff] %v5372_v62 }
  0x69   : > { %665 = vrot.lane.b32.xlu0 %v571_v0, %s4980_s15  ;;  %v748_v0 = vld [vmem:[#allocation2 + $0xaa] sm:$0xff] }
  0x6a   : > { %798 = vrot.lane.b32.xlu2 %v734_v1, %s4981_s16  ;;  %v5294_v1 = vld [vmem:[#allocation2 + $0xb0] sm:$0xff] }
  0x6b   : > { %524 = vst.msk [vmem:[#allocation3 + $0x78] sm:$0xff] %vm366_vm0, %v5294_v1 }
  0x6d   : > { %667 = vrot.lane.b32.xlu1 %v572_v4, %s4980_s15  ;;  %v5313_v12 = vld [vmem:[#allocation2 + $0xb2] sm:$0xff] }
  0x71   : > { %800 = vrot.lane.b32.xlu0 %v735_v8, %s4981_s16 }
  0x72   : > { %804 = vrot.lane.b32.xlu2 %v5213_v9, %s4981_s16 }
  0x74   : > { %v614_v16 = vpop.permute.xlu2 %613 }
  0x75   : > { %802 = vrot.lane.b32.xlu1 %v736_v11, %s4981_s16  ;;  %706 = vst.msk [vmem:[#allocation3 + $0x20] sm:$0xff] %vm701_vm2, %v614_v16  ;;  %v413_v11 = vld [vmem:[#allocation2 + $0xda] sm:$0x1]  ;;  %v5322_v16 = vld [vmem:[#allocation2 + $0xc8] sm:$0xff] }
  0x76   : > { %432 = vst.msk [vmem:[#allocation2 + $0xd8] sm:$0x1] %vm422_vm1, %v413_v11  ;;  %v415_v11 = vld [vmem:[#allocation2 + $0x10a] sm:$0x1] }
  0x77   : > { %526 = vst.msk [vmem:[#allocation3 + $0x88] sm:$0xff] %vm366_vm0, %v5322_v16 }
  0x78   : > { %434 = vst.msk [vmem:[#allocation2 + $0x108] sm:$0x1] %vm422_vm1, %v415_v11 }
  0x79   : > { %806 = vrot.lane.b32.xlu0 %v738_v21, %s4981_s16 }
  0x7a   : > { %810 = vrot.lane.b32.xlu2 %v5226_v22, %s4981_s16 }
  0x7c   : > { %v616_v31 = vpop.permute.xlu2 %615 }
  0x7d   : > { %808 = vrot.lane.b32.xlu1 %v739_v27, %s4981_s16  ;;  %707 = vst.msk [vmem:[#allocation3 + $0x28] sm:$0xff] %vm701_vm2, %v616_v31  ;;  %v412_v27 = vld [vmem:[#allocation2 + $0xc2] sm:$0x1]  ;;  %v5342_v38 = vld [vmem:[#allocation2 + $0xd8] sm:$0xff] }
  0x7e   : > { %431 = vst.msk [vmem:[#allocation2 + $0xc0] sm:$0x1] %vm422_vm1, %v412_v27  ;;  %v5398_v27 = vld [vmem:[#allocation2 + $0x13a] sm:$0xff] }
  0x7f   : > { %527 = vst.msk [vmem:[#allocation3 + $0x90] sm:$0xff] %vm366_vm0, %v5342_v38 }
  0x80   : > { %7575 = vst [vmem:[#allocation6_spill] sm:$0xff] %v5398_v27 }
  0x81   : > { %812 = vrot.lane.b32.xlu0 %v741_v36, %s4981_s16  ;;  %v456_v36 = vld [vmem:[#allocation2 + $0x177] sm:$0x1] }
  0x82   : > { %816 = vrot.lane.b32.xlu2 %v5253_v39, %s4981_s16  ;;  %474 = vst.msk [vmem:[#allocation2 + $0x179] sm:$0x1] %vm422_vm1, %v456_v36 }
  0x84   : > { %v622_v44 = vpop.permute.xlu2 %621 }
  0x85   : > { %814 = vrot.lane.b32.xlu1 %v742_v42, %s4981_s16  ;;  %710 = vst.msk [vmem:[#allocation3 + $0x40] sm:$0xff] %vm701_vm2, %v622_v44  ;;  %v5345_v42 = vld [vmem:[#allocation2 + $0xf2] sm:$0xff]  ;;  %v5364_v59 = vld [vmem:[#allocation2 + $0xc0] sm:$0xff] }
  0x86   : > { %525 = vst.msk [vmem:[#allocation3 + $0x80] sm:$0xff] %vm366_vm0, %v5364_v59 }
  0x89   : > { %818 = vrot.lane.b32.xlu0 %v744_v46, %s4981_s16  ;;  %v455_v46 = vld [vmem:[#allocation2 + $0x15f] sm:$0x1] }
  0x8a   : > { %822 = vrot.lane.b32.xlu2 %v5270_v48, %s4981_s16  ;;  %473 = vst.msk [vmem:[#allocation2 + $0x161] sm:$0x1] %vm422_vm1, %v455_v46  ;;  %v5408_v46 = vld [vmem:[#allocation2 + $0x140] sm:$0xff] }
  0x8b   : > { %v606_v54 = vpop.permute.xlu0 %605  ;;  %536 = vst.msk [vmem:[#allocation3 + $0xd8] sm:$0xff] %vm366_vm0, %v5408_v46 }
  0x8c   : > { %702 = vst.msk [vmem:[#allocation3] sm:$0xff] %vm701_vm2, %v606_v54  ;;  %v628_v56 = vpop.permute.xlu2 %627 }
  0x8d   : > { %820 = vrot.lane.b32.xlu1 %v745_v50, %s4981_s16  ;;  %713 = vst.msk [vmem:[#allocation3 + $0x58] sm:$0xff] %vm701_vm2, %v628_v56  ;;  %v5353_v50 = vld [vmem:[#allocation2 + $0xf8] sm:$0xff]  ;;  %v5358_v56 = vld [vmem:[#allocation2 + $0x10a] sm:$0xff] }
  0x8e   : > { %530 = vst.msk [vmem:[#allocation3 + $0xa8] sm:$0xff] %vm366_vm0, %v5353_v50 }
  0x8f   : > { %v610_v60 = vpop.permute.xlu1 %609 }
  0x90   : > { %704 = vst.msk [vmem:[#allocation3 + $0x10] sm:$0xff] %vm701_vm2, %v610_v60  ;;  %v5366_v60 = vld [vmem:[#allocation2 + $0xe0] sm:$0xff] }
  0x91   : > { %824 = vrot.lane.b32.xlu0 %v747_v58, %s4981_s16  ;;  %v414_v58 = vld [vmem:[#allocation2 + $0xf2] sm:$0x1]  ;;  %528 = vst.msk [vmem:[#allocation3 + $0x98] sm:$0xff] %vm366_vm0, %v5366_v60  ;;  %v5430_v11 = vld [vmem:[#allocation2 + $0x15a] sm:$0xff] }
  0x92   : > { %828 = vrot.lane.b32.xlu2 %v5313_v12, %s4981_s16  ;;  %433 = vst.msk [vmem:[#allocation2 + $0xf0] sm:$0x1] %vm422_vm1, %v414_v58  ;;  %v5416_v58 = vld [vmem:[#allocation2 + $0x152] sm:$0xff] }
  0x93   : > { %v608_v2 = vpop.permute.xlu0 %607  ;;  %7576 = vst [vmem:[#allocation7_spill] sm:$0xff] %v5416_v58 }
  0x94   : > { %703 = vst.msk [vmem:[#allocation3 + $0x8] sm:$0xff] %vm701_vm2, %v608_v2  ;;  %v634_v4 = vpop.permute.xlu2 %633  ;;  %v5377_v2 = vld [vmem:[#allocation2 + $0x110] sm:$0xff] }
  0x95   : > { %826 = vrot.lane.b32.xlu1 %v748_v0, %s4981_s16  ;;  %716 = vst.msk [vmem:[#allocation3 + $0x70] sm:$0xff] %vm701_vm2, %v634_v4 }
  0x96   : > { %532 = vst.msk [vmem:[#allocation3 + $0xb8] sm:$0xff] %vm366_vm0, %v5377_v2 }
  0x97   : > { %v612_v8 = vpop.permute.xlu1 %611  ;;  %7577 = vst [vmem:[#allocation8_spill] sm:$0xff] %v5430_v11 }
  0x98   : > { %705 = vst.msk [vmem:[#allocation3 + $0x18] sm:$0xff] %vm701_vm2, %v612_v8  ;;  %v5387_v8 = vld [vmem:[#allocation2 + $0x12a] sm:$0xff] }
  0x99   : > { %830 = vrot.lane.b32.xlu0 %v5301_v5, %s4981_s16 }
  0x9a   : > { %834 = vrot.lane.b32.xlu2 %v5337_v34, %s4981_s16 }
  0x9b   : > { %v618_v18 = vpop.permute.xlu0 %617 }
  0x9c   : > { %708 = vst.msk [vmem:[#allocation3 + $0x30] sm:$0xff] %vm701_vm2, %v618_v18  ;;  %v640_v21 = vpop.permute.xlu2 %639 }
  0x9d   : > { %832 = vrot.lane.b32.xlu1 %v5317_v14, %s4981_s16  ;;  %719 = vst.msk [vmem:[#allocation3 + $0x88] sm:$0xff] %vm701_vm2, %v640_v21  ;;  %v5395_v21 = vld [vmem:[#allocation2 + $0xf0] sm:$0xff] }
  0x9e   : > { %529 = vst.msk [vmem:[#allocation3 + $0xa0] sm:$0xff] %vm366_vm0, %v5395_v21 }
  0x9f   : > { %v620_v31 = vpop.permute.xlu1 %619 }
  0xa0   : > { %709 = vst.msk [vmem:[#allocation3 + $0x38] sm:$0xff] %vm701_vm2, %v620_v31  ;;  %v5402_v31 = vld [vmem:[#allocation2 + $0x122] sm:$0xff] }
  0xa1   : > { %836 = vrot.lane.b32.xlu0 %v5332_v25, %s4981_s16 }
  0xa2   : > { %840 = vrot.lane.b32.xlu2 %v5380_v3, %s4981_s16 }
  0xa3   : > { %v624_v44 = vpop.permute.xlu0 %623 }
  0xa4   : > { %711 = vst.msk [vmem:[#allocation3 + $0x48] sm:$0xff] %vm701_vm2, %v624_v44  ;;  %v646_v54 = vpop.permute.xlu2 %645  ;;  %v5406_v44 = vld [vmem:[#allocation2 + $0x120] sm:$0xff] }
  0xa5   : > { %838 = vrot.lane.b32.xlu1 %v5345_v42, %s4981_s16  ;;  %722 = vst.msk [vmem:[#allocation3 + $0xa0] sm:$0xff] %vm701_vm2, %v646_v54 }
  0xa6   : > { %533 = vst.msk [vmem:[#allocation3 + $0xc0] sm:$0xff] %vm366_vm0, %v5406_v44 }
  0xa7   : > { %v626_v57 = vpop.permute.xlu1 %625 }
  0xa8   : > { %712 = vst.msk [vmem:[#allocation3 + $0x50] sm:$0xff] %vm701_vm2, %v626_v57 }
  0xa9   : > { %842 = vrot.lane.b32.xlu0 %v5358_v56, %s4981_s16 }
  0xaa   : > { %846 = vrot.lane.b32.xlu2 %v5402_v31, %s4981_s16 }
  0xab   : > { %v630_v0 = vpop.permute.xlu0 %629 }
  0xac   : > { %714 = vst.msk [vmem:[#allocation3 + $0x60] sm:$0xff] %vm701_vm2, %v630_v0  ;;  %v652_v4 = vpop.permute.xlu2 %651  ;;  %v5422_v0 = vld [vmem:[#allocation2 + $0x108] sm:$0xff] }
  0xad   : > { %844 = vrot.lane.b32.xlu1 %v5372_v62, %s4981_s16  ;;  %725 = vst.msk [vmem:[#allocation3 + $0xb8] sm:$0xff] %vm701_vm2, %v652_v4  ;;  %v5424_v4 = vld [vmem:[#allocation2 + $0x128] sm:$0xff] }
  0xae   : > { %531 = vst.msk [vmem:[#allocation3 + $0xb0] sm:$0xff] %vm366_vm0, %v5422_v0 }
  0xaf   : > { %v632_v18 = vpop.permute.xlu1 %631  ;;  %534 = vst.msk [vmem:[#allocation3 + $0xc8] sm:$0xff] %vm366_vm0, %v5424_v4 }
  0xb0   : > { %715 = vst.msk [vmem:[#allocation3 + $0x68] sm:$0xff] %vm701_vm2, %v632_v18  ;;  %v419_v18 = vld [vmem:[#allocation2 + $0x16a] sm:$0x1] }
  0xb1   : > { %848 = vrot.lane.b32.xlu0 %v5387_v8, %s4981_s16  ;;  %438 = vst.msk [vmem:[#allocation2 + $0x168] sm:$0x1] %vm422_vm1, %v419_v18 }
  0xb3   : > { %v636_v36 = vpop.permute.xlu0 %635 }
  0xb4   : > { %717 = vst.msk [vmem:[#allocation3 + $0x78] sm:$0xff] %vm701_vm2, %v636_v36  ;;  %v658_v57 = vpop.permute.xlu2 %657 }
  0xb5   : > { %850 = vrot.lane.b32.xlu1 %v5398_v27, %s4981_s16 }
  0xb7   : > { %v638_v54 = vpop.permute.xlu1 %637 }
  0xb8   : > { %718 = vst.msk [vmem:[#allocation3 + $0x80] sm:$0xff] %vm701_vm2, %v638_v54  ;;  %v5440_v54 = vld [vmem:[#allocation2 + $0x142] sm:$0xff] }
  0xb9   : > { %854 = vrot.lane.b32.xlu0 %v5416_v58, %s4981_s16  ;;  %v5443_v58 = vld [vmem:[#allocation2 + $0x172] sm:$0xff]  ;;  %852 = vrot.lane.b32.xlu2 %v5440_v54, %s4981_s16 }
  0xbb   : > { %v642_v36 = vpop.permute.xlu0 %641 }
  0xbc   : > { %720 = vst.msk [vmem:[#allocation3 + $0x90] sm:$0xff] %vm701_vm2, %v642_v36  ;;  %v664_v27 = vpop.permute.xlu2 %663  ;;  %v5453_v36 = vld [vmem:[#allocation2 + $0x138] sm:$0xff] }
  0xbd   : > { %856 = vrot.lane.b32.xlu1 %v5430_v11, %s4981_s16  ;;  %731 = vst.msk [vmem:[#allocation3 + $0xe8] sm:$0xff] %vm701_vm2, %v664_v27  ;;  %v5459_v11 = vld [vmem:[#allocation2 + $0x16a] sm:$0xff] }
  0xbe   : > { %535 = vst.msk [vmem:[#allocation3 + $0xd0] sm:$0xff] %vm366_vm0, %v5453_v36  ;;  %v5462_v27 = vld [vmem:[#allocation2 + $0x168] sm:$0xff] }
  0xbf   : > { %v644_v62 = vpop.permute.xlu1 %643  ;;  %728 = vst.msk [vmem:[#allocation3 + $0xd0] sm:$0xff] %vm701_vm2, %v658_v57 }
  0xc0   : > { %721 = vst.msk [vmem:[#allocation3 + $0x98] sm:$0xff] %vm701_vm2, %v644_v62  ;;  %v5464_v62 = vld [vmem:[#allocation2 + $0x170] sm:$0xff] }
  0xc1   : > { %860 = vrot.lane.b32.xlu0 %v5443_v58, %s4981_s16  ;;  %539 = vst.msk [vmem:[#allocation3 + $0xf0] sm:$0xff] %vm366_vm0, %v5462_v27  ;;  %858 = vrot.lane.b32.xlu2 %v5459_v11, %s4981_s16 }
  0xc2   : > { %540 = vst.msk [vmem:[#allocation3 + $0xf8] sm:$0xff] %vm366_vm0, %v5464_v62 }
  0xc3   : > { %v648_v18 = vpop.permute.xlu0 %647 }
  0xc4   : > { %723 = vst.msk [vmem:[#allocation3 + $0xa8] sm:$0xff] %vm701_vm2, %v648_v18  ;;  %v799_v63 = vpop.permute.xlu2 %798  ;;  %v5476_v18 = vld [vmem:[#allocation2 + $0x150] sm:$0xff] }
  0xc5   : > { %991 = vrot.lane.b32.xlu1 %v5233_v30, %s4982_s17  ;;  %895 = vst.msk [vmem:[#allocation3] sm:$0xff] %vm894_vm3, %v799_v63 }
  0xc6   : > { %537 = vst.msk [vmem:[#allocation3 + $0xe0] sm:$0xff] %vm366_vm0, %v5476_v18 }
  0xc7   : > { %v650_v57 = vpop.permute.xlu1 %649 }
  0xc8   : > { %724 = vst.msk [vmem:[#allocation3 + $0xb0] sm:$0xff] %vm701_vm2, %v650_v57 }
  0xc9   : > { %995 = vrot.lane.b32.xlu0 %v5218_v17, %s4982_s17  ;;  %993 = vrot.lane.b32.xlu2 %v5241_v33, %s4982_s17 }
  0xcb   : > { %v654_v30 = vpop.permute.xlu0 %653 }
  0xcc   : > { %726 = vst.msk [vmem:[#allocation3 + $0xc0] sm:$0xff] %vm701_vm2, %v654_v30  ;;  %v805_v63 = vpop.permute.xlu2 %804 }
  0xcd   : > { %997 = vrot.lane.b32.xlu1 %v5230_v28, %s4982_s17  ;;  %898 = vst.msk [vmem:[#allocation3 + $0x18] sm:$0xff] %vm894_vm3, %v805_v63 }
  0xcf   : > { %v656_v57 = vpop.permute.xlu1 %655 }
  0xd0   : > { %727 = vst.msk [vmem:[#allocation3 + $0xc8] sm:$0xff] %vm701_vm2, %v656_v57 }
  0xd1   : > { %1001 = vrot.lane.b32.xlu0 %v5263_v45, %s4982_s17  ;;  %999 = vrot.lane.b32.xlu2 %v5245_v37, %s4982_s17 }
  0xd3   : > { %v660_v17 = vpop.permute.xlu0 %659 }
  0xd4   : > { %729 = vst.msk [vmem:[#allocation3 + $0xd8] sm:$0xff] %vm701_vm2, %v660_v17  ;;  %v811_v30 = vpop.permute.xlu2 %810 }
  0xd5   : > { %1003 = vrot.lane.b32.xlu1 %v5268_v47, %s4982_s17  ;;  %901 = vst.msk [vmem:[#allocation3 + $0x30] sm:$0xff] %vm894_vm3, %v811_v30  ;;  %v364_v30 = vld [vmem:[%s5059_s14 + $0xf8] sm:$0xff] }
  0xd6   : > { %398 = vst.msk [vmem:[#allocation2 + $0x189] sm:$0xff] %vm366_vm0, %v364_v30 }
  0xd7   : > { %v662_v28 = vpop.permute.xlu1 %661 }
  0xd8   : > { %730 = vst.msk [vmem:[#allocation3 + $0xe0] sm:$0xff] %vm701_vm2, %v662_v28 }
  0xd9   : > { %1007 = vrot.lane.b32.xlu0 %v5303_v6, %s4982_s17  ;;  %1005 = vrot.lane.b32.xlu2 %v5255_v40, %s4982_s17 }
  0xdb   : > { %v666_v33 = vpop.permute.xlu0 %665 }
  0xdc   : > { %732 = vst.msk [vmem:[#allocation3 + $0xf0] sm:$0xff] %vm701_vm2, %v666_v33  ;;  %v817_v45 = vpop.permute.xlu2 %816 }
  0xdd   : > { %1009 = vrot.lane.b32.xlu1 %v5278_v53, %s4982_s17  ;;  %904 = vst.msk [vmem:[#allocation3 + $0x48] sm:$0xff] %vm894_vm3, %v817_v45  ;;  %v363_v53 = vld [vmem:[%s5059_s14 + $0xf0] sm:$0xff] }
  0xde   : > { %397 = vst.msk [vmem:[#allocation2 + $0x181] sm:$0xff] %vm366_vm0, %v363_v53 }
  0xdf   : > { %v668_v37 = vpop.permute.xlu1 %667 }
  0xe0   : > { %733 = vst.msk [vmem:[#allocation3 + $0xf8] sm:$0xff] %vm701_vm2, %v668_v37 }
  0xe1   : > { %1013 = vrot.lane.b32.xlu0 %v5306_v7, %s4982_s17  ;;  %1011 = vrot.lane.b32.xlu2 %v5276_v51, %s4982_s17 }
  0xe3   : > { %v801_v47 = vpop.permute.xlu0 %800 }
  0xe4   : > { %896 = vst.msk [vmem:[#allocation3 + $0x8] sm:$0xff] %vm894_vm3, %v801_v47  ;;  %v823_v6 = vpop.permute.xlu2 %822 }
  0xe5   : > { %1015 = vrot.lane.b32.xlu1 %v5329_v24, %s4982_s17  ;;  %907 = vst.msk [vmem:[#allocation3 + $0x60] sm:$0xff] %vm894_vm3, %v823_v6  ;;  %v420_v24 = vld [vmem:[#allocation2 + $0x182] sm:$0x1] }
  0xe6   : > { %439 = vst.msk [vmem:[#allocation2 + $0x180] sm:$0x1] %vm422_vm1, %v420_v24  ;;  %v5598_v24 = vld [vmem:[#allocation2 + $0x51] sm:$0xff] }
  0xe7   : > { %v803_v40 = vpop.permute.xlu1 %802 }
  0xe8   : > { %897 = vst.msk [vmem:[#allocation3 + $0x10] sm:$0xff] %vm894_vm3, %v803_v40  ;;  %v5578_v40 = vld [vmem:[#allocation2 + $0x188] sm:$0xff] }
  0xe9   : > { %1019 = vrot.lane.b32.xlu0 %v5364_v59, %s4982_s17  ;;  %1017 = vrot.lane.b32.xlu2 %v5294_v1, %s4982_s17 }
  0xeb   : > { %v807_v7 = vpop.permute.xlu0 %806 }
  0xec   : > { %899 = vst.msk [vmem:[#allocation3 + $0x20] sm:$0xff] %vm894_vm3, %v807_v7  ;;  %v829_v63 = vpop.permute.xlu2 %828 }
  0xed   : > { %1021 = vrot.lane.b32.xlu1 %v5322_v16, %s4982_s17  ;;  %910 = vst.msk [vmem:[#allocation3 + $0x78] sm:$0xff] %vm894_vm3, %v829_v63  ;;  %v5567_v45 = vld [vmem:[#allocation2 + $0x180] sm:$0xff] }
  0xef   : > { %v809_v51 = vpop.permute.xlu1 %808 }
  0xf0   : > { %900 = vst.msk [vmem:[#allocation3 + $0x28] sm:$0xff] %vm894_vm3, %v809_v51 }
  0xf1   : > { %1025 = vrot.lane.b32.xlu0 %v5366_v60, %s4982_s17  ;;  %1023 = vrot.lane.b32.xlu2 %v5342_v38, %s4982_s17 }
  0xf3   : > { %v813_v59 = vpop.permute.xlu0 %812 }
  0xf4   : > { %902 = vst.msk [vmem:[#allocation3 + $0x38] sm:$0xff] %vm894_vm3, %v813_v59  ;;  %v835_v57 = vpop.permute.xlu2 %834  ;;  %v5609_v59 = vld [vmem:[#allocation2 + $0x79] sm:$0xff] }
  0xf5   : > { %1027 = vrot.lane.b32.xlu1 %v5395_v21, %s4982_s17  ;;  %913 = vst.msk [vmem:[#allocation3 + $0x90] sm:$0xff] %vm894_vm3, %v835_v57 }
  0xf7   : > { %v815_v1 = vpop.permute.xlu1 %814 }
  0xf8   : > { %903 = vst.msk [vmem:[#allocation3 + $0x40] sm:$0xff] %vm894_vm3, %v815_v1 }
  0xf9   : > { %1031 = vrot.lane.b32.xlu0 %v5422_v0, %s4982_s17  ;;  %1029 = vrot.lane.b32.xlu2 %v5353_v50, %s4982_s17 }
  0xfb   : > { %v819_v16 = vpop.permute.xlu0 %818 }
  0xfc   : > { %905 = vst.msk [vmem:[#allocation3 + $0x50] sm:$0xff] %vm894_vm3, %v819_v16  ;;  %v841_v17 = vpop.permute.xlu2 %840  ;;  %v5622_v16 = vld [vmem:[#allocation2 + $0x99] sm:$0xff] }
  0xfd   : > { %1033 = vrot.lane.b32.xlu1 %v5377_v2, %s4982_s17  ;;  %916 = vst.msk [vmem:[#allocation3 + $0xa8] sm:$0xff] %vm894_vm3, %v841_v17 }
  0xff   : > { %v821_v38 = vpop.permute.xlu1 %820 }
 0x100   : > { %906 = vst.msk [vmem:[#allocation3 + $0x58] sm:$0xff] %vm894_vm3, %v821_v38 }
 0x101   : > { %1037 = vrot.lane.b32.xlu0 %v5424_v4, %s4982_s17  ;;  %1035 = vrot.lane.b32.xlu2 %v5406_v44, %s4982_s17 }
 0x103   : > { %v825_v21 = vpop.permute.xlu0 %824 }
 0x104   : > { %908 = vst.msk [vmem:[#allocation3 + $0x68] sm:$0xff] %vm894_vm3, %v825_v21  ;;  %v847_v33 = vpop.permute.xlu2 %846  ;;  %v5635_v21 = vld [vmem:[#allocation2 + $0xc1] sm:$0xff] }
 0x105   : > { %1039 = vrot.lane.b32.xlu1 %v5453_v36, %s4982_s17  ;;  %919 = vst.msk [vmem:[#allocation3 + $0xc0] sm:$0xff] %vm894_vm3, %v847_v33 }
 0x107   : > { %v827_v2 = vpop.permute.xlu1 %826 }
 0x108   : > { %909 = vst.msk [vmem:[#allocation3 + $0x70] sm:$0xff] %vm894_vm3, %v827_v2 }
 0x109   : > { %1043 = vrot.lane.b32.xlu0 %v5476_v18, %s4982_s17  ;;  %1041 = vrot.lane.b32.xlu2 %v5408_v46, %s4982_s17 }
 0x10b   : > { %v831_v28 = vpop.permute.xlu0 %830 }
 0x10c   : > { %911 = vst.msk [vmem:[#allocation3 + $0x80] sm:$0xff] %vm894_vm3, %v831_v28  ;;  %v5648_v28 = vld [vmem:[#allocation2 + $0xe1] sm:$0xff] }
 0x10d   : > { %1045 = vrot.lane.b32.xlu1 %v5435_v43, %s4982_s17 }
 0x10f   : > { %v833_v36 = vpop.permute.xlu1 %832 }
 0x110   : > { %912 = vst.msk [vmem:[#allocation3 + $0x88] sm:$0xff] %vm894_vm3, %v833_v36 }
 0x111   : > { %1049 = vrot.lane.b32.xlu0 %v5464_v62, %s4982_s17  ;;  %1047 = vrot.lane.b32.xlu2 %v5462_v27, %s4982_s17 }
 0x113   : > { %v837_v37 = vpop.permute.xlu0 %836  ;;  %v853_v47 = vpop.permute.xlu2 %852 }
 0x114   : > { %914 = vst.msk [vmem:[#allocation3 + $0x98] sm:$0xff] %vm894_vm3, %v837_v37 }
 0x115   : > { %1051 = vrot.lane.b32.xlu1 %v5567_v45, %s4982_s17  ;;  %922 = vst.msk [vmem:[#allocation3 + $0xd8] sm:$0xff] %vm894_vm3, %v853_v47 }
 0x117   : > { %v839_v43 = vpop.permute.xlu1 %838 }
 0x118   : > { %915 = vst.msk [vmem:[#allocation3 + $0xa0] sm:$0xff] %vm894_vm3, %v839_v43  ;;  %v5661_v43 = vld [vmem:[#allocation2 + $0x109] sm:$0xff] }
 0x119   : > { %1184 = vrot.lane.b32.xlu0 %v5088_v13, %s4983_s18  ;;  %1053 = vrot.lane.b32.xlu2 %v5578_v40, %s4982_s17 }
 0x11b   : > { %v843_v6 = vpop.permute.xlu0 %842  ;;  %v859_v7 = vpop.permute.xlu2 %858 }
 0x11c   : > { %917 = vst.msk [vmem:[#allocation3 + $0xb0] sm:$0xff] %vm894_vm3, %v843_v6 }
 0x11d   : > { %1186 = vrot.lane.b32.xlu1 %v5101_v19, %s4983_s18  ;;  %925 = vst.msk [vmem:[#allocation3 + $0xf0] sm:$0xff] %vm894_vm3, %v859_v7  ;;  %v5674_v7 = vld [vmem:[#allocation2 + $0x129] sm:$0xff] }
 0x11f   : > { %v845_v53 = vpop.permute.xlu1 %844 }
 0x120   : > { %918 = vst.msk [vmem:[#allocation3 + $0xb8] sm:$0xff] %vm894_vm3, %v845_v53 }
 0x121   : > { %1190 = vrot.lane.b32.xlu0 %v5094_v15, %s4983_s18  ;;  %1188 = vrot.lane.b32.xlu2 %v5080_v10, %s4983_s18 }
 0x123   : > { %v849_v13 = vpop.permute.xlu0 %848  ;;  %v994_v51 = vpop.permute.xlu2 %993 }
 0x124   : > { %920 = vst.msk [vmem:[#allocation3 + $0xc8] sm:$0xff] %vm894_vm3, %v849_v13 }
 0x125   : > { %1192 = vrot.lane.b32.xlu1 %v5109_v20, %s4983_s18  ;;  %1089 = vst.msk [vmem:[#allocation3 + $0x8] sm:$0xff] %vm1087_vm4, %v994_v51 }
 0x127   : > { %v851_v19 = vpop.permute.xlu1 %850 }
 0x128   : > { %921 = vst.msk [vmem:[#allocation3 + $0xd0] sm:$0xff] %vm894_vm3, %v851_v19 }
 0x129   : > { %1196 = vrot.lane.b32.xlu0 %v5115_v23, %s4983_s18  ;;  %1194 = vrot.lane.b32.xlu2 %v5598_v24, %s4983_s18 }
 0x12b   : > { %v855_v15 = vpop.permute.xlu0 %854  ;;  %v1000_v20 = vpop.permute.xlu2 %999 }
 0x12c   : > { %923 = vst.msk [vmem:[#allocation3 + $0xe0] sm:$0xff] %vm894_vm3, %v855_v15  ;;  %v5687_v15 = vld [vmem:[#allocation2 + $0x151] sm:$0xff] }
 0x12d   : > { %1198 = vrot.lane.b32.xlu1 %v5124_v26, %s4983_s18  ;;  %1092 = vst.msk [vmem:[#allocation3 + $0x20] sm:$0xff] %vm1087_vm4, %v1000_v20 }
 0x12f   : > { %v857_v10 = vpop.permute.xlu1 %856 }
 0x130   : > { %924 = vst.msk [vmem:[#allocation3 + $0xe8] sm:$0xff] %vm894_vm3, %v857_v10  ;;  %v5692_v10 = vld [vmem:[#allocation2 + $0x181] sm:$0xff] }
 0x131   : > { %1202 = vrot.lane.b32.xlu0 %v5130_v29, %s4983_s18  ;;  %1200 = vrot.lane.b32.xlu2 %v5609_v59, %s4983_s18  ;;  %v5620_v29 = vld [vmem:[#allocation2 + $0xb1] sm:$0xff] }
 0x133   : > { %v861_v23 = vpop.permute.xlu0 %860  ;;  %v1006_v63 = vpop.permute.xlu2 %1005 }
 0x134   : > { %926 = vst.msk [vmem:[#allocation3 + $0xf8] sm:$0xff] %vm894_vm3, %v861_v23  ;;  %v5700_v23 = vld [vmem:[#allocation2 + $0x189] sm:$0xff] }
 0x135   : > { %1204 = vrot.lane.b32.xlu1 %v5139_v32, %s4983_s18  ;;  %1095 = vst.msk [vmem:[#allocation3 + $0x38] sm:$0xff] %vm1087_vm4, %v1006_v63  ;;  %v5702_v63 = vld [vmem:[#allocation2 + $0x171] sm:$0xff] }
 0x137   : > { %v992_v26 = vpop.permute.xlu1 %991 }
 0x138   : > { %1088 = vst.msk [vmem:[#allocation3] sm:$0xff] %vm1087_vm4, %v992_v26 }
 0x139   : > { %1208 = vrot.lane.b32.xlu0 %v5145_v35, %s4983_s18  ;;  %1206 = vrot.lane.b32.xlu2 %v5622_v16, %s4983_s18  ;;  %v5633_v35 = vld [vmem:[#allocation2 + $0xd9] sm:$0xff] }
 0x13b   : > { %v996_v1 = vpop.permute.xlu0 %995  ;;  %v1012_v57 = vpop.permute.xlu2 %1011 }
 0x13c   : > { %1090 = vst.msk [vmem:[#allocation3 + $0x10] sm:$0xff] %vm1087_vm4, %v996_v1 }
 0x13d   : > { %1210 = vrot.lane.b32.xlu1 %v5620_v29, %s4983_s18  ;;  %1098 = vst.msk [vmem:[#allocation3 + $0x50] sm:$0xff] %vm1087_vm4, %v1012_v57  ;;  %v5713_v57 = vld [vmem:[#allocation2 + $0x32] sm:$0xff] }
 0x13f   : > { %v998_v32 = vpop.permute.xlu1 %997 }
 0x140   : > { %1091 = vst.msk [vmem:[#allocation3 + $0x18] sm:$0xff] %vm1087_vm4, %v998_v32 }
 0x141   : > { %1214 = vrot.lane.b32.xlu0 %v5157_v41, %s4983_s18  ;;  %1212 = vrot.lane.b32.xlu2 %v5635_v21, %s4983_s18  ;;  %v5646_v41 = vld [vmem:[#allocation2 + $0xf9] sm:$0xff] }
 0x143   : > { %v1002_v38 = vpop.permute.xlu0 %1001  ;;  %v1018_v17 = vpop.permute.xlu2 %1017 }
 0x144   : > { %1093 = vst.msk [vmem:[#allocation3 + $0x28] sm:$0xff] %vm1087_vm4, %v1002_v38 }
 0x145   : > { %1216 = vrot.lane.b32.xlu1 %v5633_v35, %s4983_s18  ;;  %1101 = vst.msk [vmem:[#allocation3 + $0x68] sm:$0xff] %vm1087_vm4, %v1018_v17 }
 0x147   : > { %v1004_v2 = vpop.permute.xlu1 %1003 }
 0x148   : > { %1094 = vst.msk [vmem:[#allocation3 + $0x30] sm:$0xff] %vm1087_vm4, %v1004_v2  ;;  %v1313_v2 = vld [vmem:[#allocation2 + $0x1a] sm:$0xff] }
 0x149   : > { %1220 = vrot.lane.b32.xlu0 %v5171_v49, %s4983_s18  ;;  %1218 = vrot.lane.b32.xlu2 %v5648_v28, %s4983_s18  ;;  %v5659_v49 = vld [vmem:[#allocation2 + $0x121] sm:$0xff] }
 0x14b   : > { %v1008_v30 = vpop.permute.xlu0 %1007  ;;  %v1024_v33 = vpop.permute.xlu2 %1023 }
 0x14c   : > { %1096 = vst.msk [vmem:[#allocation3 + $0x40] sm:$0xff] %vm1087_vm4, %v1008_v30 }
 0x14d   : > { %1222 = vrot.lane.b32.xlu1 %v5646_v41, %s4983_s18  ;;  %1104 = vst.msk [vmem:[#allocation3 + $0x80] sm:$0xff] %vm1087_vm4, %v1024_v33  ;;  %v5725_v33 = vld [vmem:[#allocation2 + $0x3a] sm:$0xff] }
 0x14f   : > { %v1010_v36 = vpop.permute.xlu1 %1009 }
 0x150   : > { %1097 = vst.msk [vmem:[#allocation3 + $0x48] sm:$0xff] %vm1087_vm4, %v1010_v36 }
 0x151   : > { %1226 = vrot.lane.b32.xlu0 %v5181_v52, %s4983_s18  ;;  %1224 = vrot.lane.b32.xlu2 %v5661_v43, %s4983_s18  ;;  %v5672_v52 = vld [vmem:[#allocation2 + $0x141] sm:$0xff] }
 0x153   : > { %v1014_v37 = vpop.permute.xlu0 %1013  ;;  %v1030_v6 = vpop.permute.xlu2 %1029 }
 0x154   : > { %1099 = vst.msk [vmem:[#allocation3 + $0x58] sm:$0xff] %vm1087_vm4, %v1014_v37 }
 0x155   : > { %1228 = vrot.lane.b32.xlu1 %v5659_v49, %s4983_s18  ;;  %1107 = vst.msk [vmem:[#allocation3 + $0x98] sm:$0xff] %vm1087_vm4, %v1030_v6 }
 0x157   : > { %v1016_v47 = vpop.permute.xlu1 %1015 }
 0x158   : > { %1100 = vst.msk [vmem:[#allocation3 + $0x60] sm:$0xff] %vm1087_vm4, %v1016_v47  ;;  %v5736_v47 = vld [vmem:[#allocation2 + $0x7a] sm:$0xff] }
 0x159   : > { %1232 = vrot.lane.b32.xlu0 %v5187_v55, %s4983_s18  ;;  %1230 = vrot.lane.b32.xlu2 %v5674_v7, %s4983_s18  ;;  %v5685_v55 = vld [vmem:[#allocation2 + $0x169] sm:$0xff] }
 0x15b   : > { %v1020_v53 = vpop.permute.xlu0 %1019  ;;  %v1036_v19 = vpop.permute.xlu2 %1035 }
 0x15c   : > { %1102 = vst.msk [vmem:[#allocation3 + $0x70] sm:$0xff] %vm1087_vm4, %v1020_v53  ;;  %v5738_v53 = vld [vmem:[#allocation2 + $0x62] sm:$0xff] }
 0x15d   : > { %1234 = vrot.lane.b32.xlu1 %v5672_v52, %s4983_s18  ;;  %1110 = vst.msk [vmem:[#allocation3 + $0xb0] sm:$0xff] %vm1087_vm4, %v1036_v19 }
 0x15f   : > { %v1022_v13 = vpop.permute.xlu1 %1021 }
 0x160   : > { %1103 = vst.msk [vmem:[#allocation3 + $0x78] sm:$0xff] %vm1087_vm4, %v1022_v13 }
 0x161   : > { %1238 = vrot.lane.b32.xlu0 %v5198_v61, %s4983_s18  ;;  %1236 = vrot.lane.b32.xlu2 %v5687_v15, %s4983_s18 }
 0x163   : > { %v1026_v51 = vpop.permute.xlu0 %1025  ;;  %v1042_v61 = vpop.permute.xlu2 %1041 }
 0x164   : > { %1105 = vst.msk [vmem:[#allocation3 + $0x88] sm:$0xff] %vm1087_vm4, %v1026_v51 }
 0x165   : > { %1240 = vrot.lane.b32.xlu1 %v5685_v55, %s4983_s18  ;;  %1113 = vst.msk [vmem:[#allocation3 + $0xc8] sm:$0xff] %vm1087_vm4, %v1042_v61 }
 0x167   : > { %v1028_v20 = vpop.permute.xlu1 %1027 }
 0x168   : > { %1106 = vst.msk [vmem:[#allocation3 + $0x90] sm:$0xff] %vm1087_vm4, %v1028_v20  ;;  %v5751_v20 = vld [vmem:[#allocation2 + $0x82] sm:$0xff] }
 0x169   : > { %1244 = vrot.lane.b32.xlu0 %v5692_v10, %s4983_s18  ;;  %1242 = vrot.lane.b32.xlu2 %v5702_v63, %s4983_s18 }
 0x16b   : > { %v1032_v26 = vpop.permute.xlu0 %1031  ;;  %v1048_v32 = vpop.permute.xlu2 %1047 }
 0x16c   : > { %1108 = vst.msk [vmem:[#allocation3 + $0xa0] sm:$0xff] %vm1087_vm4, %v1032_v26 }
 0x16d   : > { %1246 = vrot.lane.b32.xlu1 %v5700_v23, %s4983_s18  ;;  %1116 = vst.msk [vmem:[#allocation3 + $0xe0] sm:$0xff] %vm1087_vm4, %v1048_v32 }
 0x16f   : > { %v1034_v1 = vpop.permute.xlu1 %1033 }
 0x170   : > { %1109 = vst.msk [vmem:[#allocation3 + $0xa8] sm:$0xff] %vm1087_vm4, %v1034_v1  ;;  %v5762_v1 = vld [vmem:[#allocation2 + $0xaa] sm:$0xff] }
 0x171   : > { %1379 = vrot.lane.b32.xlu0 %v5213_v9, %s4984_s19  ;;  %1377 = vrot.lane.b32.xlu2 %v1313_v2, %s4984_s19  ;;  %v5723_v9 = vld [vmem:[#allocation2 + $0x52] sm:$0xff]  ;;  %v457_v2 = vld [vmem:[#allocation2 + $0x18f] sm:$0x1] }
 0x172   : > { %475 = vst.msk [vmem:[#allocation2 + $0x191] sm:$0x1] %vm422_vm1, %v457_v2 }
 0x173   : > { %v1038_v38 = vpop.permute.xlu0 %1037  ;;  %v1054_v30 = vpop.permute.xlu2 %1053 }
 0x174   : > { %1111 = vst.msk [vmem:[#allocation3 + $0xb8] sm:$0xff] %vm1087_vm4, %v1038_v38 }
 0x175   : > { %1381 = vrot.lane.b32.xlu1 %v5713_v57, %s4984_s19  ;;  %1119 = vst.msk [vmem:[#allocation3 + $0xf8] sm:$0xff] %vm1087_vm4, %v1054_v30 }
 0x177   : > { %v1040_v17 = vpop.permute.xlu1 %1039 }
 0x178   : > { %1112 = vst.msk [vmem:[#allocation3 + $0xc0] sm:$0xff] %vm1087_vm4, %v1040_v17 }
 0x179   : > { %1385 = vrot.lane.b32.xlu0 %v5226_v22, %s4984_s19  ;;  %1383 = vrot.lane.b32.xlu2 %v5725_v33, %s4984_s19 }
 0x17b   : > { %v1044_v36 = vpop.permute.xlu0 %1043  ;;  %v1189_v22 = vpop.permute.xlu2 %1188 }
 0x17c   : > { %1114 = vst.msk [vmem:[#allocation3 + $0xd0] sm:$0xff] %vm1087_vm4, %v1044_v36  ;;  %v7579_v36 = vld [vmem:[#allocation7_spill] sm:$0xff] }
 0x17d   : > { %1387 = vrot.lane.b32.xlu1 %v5723_v9, %s4984_s19  ;;  %1283 = vst.msk [vmem:[#allocation3 + $0x10] sm:$0xff] %vm1280_vm5, %v1189_v22 }
 0x17f   : > { %v1046_v37 = vpop.permute.xlu1 %1045 }
 0x180   : > { %1115 = vst.msk [vmem:[#allocation3 + $0xd8] sm:$0xff] %vm1087_vm4, %v1046_v37 }
 0x181   : > { %1391 = vrot.lane.b32.xlu0 %v5253_v39, %s4984_s19  ;;  %1389 = vrot.lane.b32.xlu2 %v5738_v53, %s4984_s19  ;;  %v5749_v39 = vld [vmem:[#allocation2 + $0x9a] sm:$0xff] }
 0x183   : > { %v1050_v6 = vpop.permute.xlu0 %1049  ;;  %v1195_v19 = vpop.permute.xlu2 %1194 }
 0x184   : > { %1117 = vst.msk [vmem:[#allocation3 + $0xe8] sm:$0xff] %vm1087_vm4, %v1050_v6  ;;  %v5813_v6 = vld [vmem:[#allocation2 + $0x18a] sm:$0xff] }
 0x185   : > { %1393 = vrot.lane.b32.xlu1 %v5736_v47, %s4984_s19  ;;  %1286 = vst.msk [vmem:[#allocation3 + $0x28] sm:$0xff] %vm1280_vm5, %v1195_v19 }
 0x187   : > { %v1052_v13 = vpop.permute.xlu1 %1051 }
 0x188   : > { %1118 = vst.msk [vmem:[#allocation3 + $0xf0] sm:$0xff] %vm1087_vm4, %v1052_v13  ;;  %v7581_v13 = vld [vmem:[#allocation8_spill] sm:$0xff] }
 0x189   : > { %1397 = vrot.lane.b32.xlu0 %v5270_v48, %s4984_s19  ;;  %1395 = vrot.lane.b32.xlu2 %v5751_v20, %s4984_s19 }
 0x18b   : > { %v1185_v51 = vpop.permute.xlu0 %1184  ;;  %v1201_v26 = vpop.permute.xlu2 %1200 }
 0x18c   : > { %1281 = vst.msk [vmem:[#allocation3] sm:$0xff] %vm1280_vm5, %v1185_v51 }
 0x18d   : > { %1399 = vrot.lane.b32.xlu1 %v5749_v39, %s4984_s19  ;;  %1289 = vst.msk [vmem:[#allocation3 + $0x40] sm:$0xff] %vm1280_vm5, %v1201_v26  ;;  %v5821_v26 = vld [vmem:[#allocation2 + $0x182] sm:$0xff] }
 0x18f   : > { %v1187_v61 = vpop.permute.xlu1 %1186 }
 0x190   : > { %1282 = vst.msk [vmem:[#allocation3 + $0x8] sm:$0xff] %vm1280_vm5, %v1187_v61 }
 0x191   : > { %1403 = vrot.lane.b32.xlu0 %v5313_v12, %s4984_s19  ;;  %1401 = vrot.lane.b32.xlu2 %v5762_v1, %s4984_s19 }
 0x193   : > { %v1191_v48 = vpop.permute.xlu0 %1190  ;;  %v1207_v38 = vpop.permute.xlu2 %1206 }
 0x194   : > { %1284 = vst.msk [vmem:[#allocation3 + $0x18] sm:$0xff] %vm1280_vm5, %v1191_v48 }
 0x195   : > { %1405 = vrot.lane.b32.xlu1 %v5301_v5, %s4984_s19  ;;  %1292 = vst.msk [vmem:[#allocation3 + $0x58] sm:$0xff] %vm1280_vm5, %v1207_v38  ;;  %v1510_v38 = vld [vmem:[#allocation2 + $0x50] sm:$0xff] }
 0x197   : > { %v1193_v32 = vpop.permute.xlu1 %1192 }
 0x198   : > { %1285 = vst.msk [vmem:[#allocation3 + $0x20] sm:$0xff] %vm1280_vm5, %v1193_v32 }
 0x199   : > { %1409 = vrot.lane.b32.xlu0 %v5337_v34, %s4984_s19  ;;  %1407 = vrot.lane.b32.xlu2 %v5317_v14, %s4984_s19 }
 0x19b   : > { %v1197_v12 = vpop.permute.xlu0 %1196  ;;  %v1213_v17 = vpop.permute.xlu2 %1212 }
 0x19c   : > { %1287 = vst.msk [vmem:[#allocation3 + $0x30] sm:$0xff] %vm1280_vm5, %v1197_v12  ;;  %v1508_v12 = vld [vmem:[#allocation2 + $0x38] sm:$0xff] }
 0x19d   : > { %1411 = vrot.lane.b32.xlu1 %v5332_v25, %s4984_s19  ;;  %1295 = vst.msk [vmem:[#allocation3 + $0x70] sm:$0xff] %vm1280_vm5, %v1213_v17 }
 0x19f   : > { %v1199_v5 = vpop.permute.xlu1 %1198 }
 0x1a0   : > { %1288 = vst.msk [vmem:[#allocation3 + $0x38] sm:$0xff] %vm1280_vm5, %v1199_v5  ;;  %v1512_v5 = vld [vmem:[#allocation2 + $0x68] sm:$0xff] }
 0x1a1   : > { %1415 = vrot.lane.b32.xlu0 %v5380_v3, %s4984_s19  ;;  %1413 = vrot.lane.b32.xlu2 %v5345_v42, %s4984_s19 }
 0x1a3   : > { %v1203_v34 = vpop.permute.xlu0 %1202  ;;  %v1219_v14 = vpop.permute.xlu2 %1218 }
 0x1a4   : > { %1290 = vst.msk [vmem:[#allocation3 + $0x48] sm:$0xff] %vm1280_vm5, %v1203_v34 }
 0x1a5   : > { %1417 = vrot.lane.b32.xlu1 %v5358_v56, %s4984_s19  ;;  %1298 = vst.msk [vmem:[#allocation3 + $0x88] sm:$0xff] %vm1280_vm5, %v1219_v14  ;;  %v7578_v56 = vld [vmem:[#allocation5_spill] sm:$0xff] }
 0x1a7   : > { %v1205_v25 = vpop.permute.xlu1 %1204 }
 0x1a8   : > { %1291 = vst.msk [vmem:[#allocation3 + $0x50] sm:$0xff] %vm1280_vm5, %v1205_v25  ;;  %v1513_v25 = vld [vmem:[#allocation2 + $0x78] sm:$0xff] }
 0x1a9   : > { %1421 = vrot.lane.b32.xlu0 %v5402_v31, %s4984_s19  ;;  %1419 = vrot.lane.b32.xlu2 %v7578_v56, %s4984_s19  ;;  %v1515_v56 = vld [vmem:[#allocation2 + $0x90] sm:$0xff] }
 0x1ab   : > { %v1209_v3 = vpop.permute.xlu0 %1208  ;;  %v1225_v42 = vpop.permute.xlu2 %1224 }
 0x1ac   : > { %1293 = vst.msk [vmem:[#allocation3 + $0x60] sm:$0xff] %vm1280_vm5, %v1209_v3  ;;  %v1511_v3 = vld [vmem:[#allocation2 + $0x60] sm:$0xff] }
 0x1ad   : > { %1423 = vrot.lane.b32.xlu1 %v5387_v8, %s4984_s19  ;;  %1301 = vst.msk [vmem:[#allocation3 + $0xa0] sm:$0xff] %vm1280_vm5, %v1225_v42  ;;  %v7580_v8 = vld [vmem:[#allocation6_spill] sm:$0xff] }
 0x1af   : > { %v1211_v30 = vpop.permute.xlu1 %1210 }
 0x1b0   : > { %1294 = vst.msk [vmem:[#allocation3 + $0x68] sm:$0xff] %vm1280_vm5, %v1211_v30 }
 0x1b1   : > { %1427 = vrot.lane.b32.xlu0 %v5440_v54, %s4984_s19  ;;  %1425 = vrot.lane.b32.xlu2 %v7580_v8, %s4984_s19  ;;  %v1514_v8 = vld [vmem:[#allocation2 + $0x80] sm:$0xff] }
 0x1b3   : > { %v1215_v31 = vpop.permute.xlu0 %1214  ;;  %v1231_v22 = vpop.permute.xlu2 %1230 }
 0x1b4   : > { %1296 = vst.msk [vmem:[#allocation3 + $0x78] sm:$0xff] %vm1280_vm5, %v1215_v31  ;;  %v1516_v31 = vld [vmem:[#allocation2 + $0x98] sm:$0xff] }
 0x1b5   : > { %1429 = vrot.lane.b32.xlu1 %v7579_v36, %s4984_s19  ;;  %1304 = vst.msk [vmem:[#allocation3 + $0xb8] sm:$0xff] %vm1280_vm5, %v1231_v22 }
 0x1b7   : > { %v1217_v37 = vpop.permute.xlu1 %1216 }
 0x1b8   : > { %1297 = vst.msk [vmem:[#allocation3 + $0x80] sm:$0xff] %vm1280_vm5, %v1217_v37  ;;  %v1518_v37 = vld [vmem:[#allocation2 + $0xb0] sm:$0xff] }
 0x1b9   : > { %1433 = vrot.lane.b32.xlu0 %v5459_v11, %s4984_s19  ;;  %1431 = vrot.lane.b32.xlu2 %v7581_v13, %s4984_s19  ;;  %v1507_v11 = vld [vmem:[#allocation2 + $0x30] sm:$0xff]  ;;  %v1519_v13 = vld [vmem:[#allocation2 + $0xc0] sm:$0xff] }
 0x1bb   : > { %v1221_v54 = vpop.permute.xlu0 %1220  ;;  %v1237_v51 = vpop.permute.xlu2 %1236 }
 0x1bc   : > { %1299 = vst.msk [vmem:[#allocation3 + $0x90] sm:$0xff] %vm1280_vm5, %v1221_v54 }
 0x1bd   : > { %1435 = vrot.lane.b32.xlu1 %v5443_v58, %s4984_s19  ;;  %1307 = vst.msk [vmem:[#allocation3 + $0xd0] sm:$0xff] %vm1280_vm5, %v1237_v51  ;;  %v1509_v58 = vld [vmem:[#allocation2 + $0x48] sm:$0xff] }
 0x1be   : > { %v1517_v51 = vld [vmem:[#allocation2 + $0xa8] sm:$0xff] }
 0x1bf   : > { %v1223_v19 = vpop.permute.xlu1 %1222 }
 0x1c0   : > { %1300 = vst.msk [vmem:[#allocation3 + $0x98] sm:$0xff] %vm1280_vm5, %v1223_v19 }
 0x1c1   : > { %1439 = vrot.lane.b32.xlu0 %v5813_v6, %s4984_s19  ;;  %1437 = vrot.lane.b32.xlu2 %v5821_v26, %s4984_s19  ;;  %s4988_s19 = smov 40  }
 0x1c3   : > { %v1227_v61 = vpop.permute.xlu0 %1226  ;;  %v1243_v32 = vpop.permute.xlu2 %1242 }
 0x1c4   : > { %1302 = vst.msk [vmem:[#allocation3 + $0xa8] sm:$0xff] %vm1280_vm5, %v1227_v61 }
 0x1c5   : > { %1571 = vrot.lane.b32.xlu1 %v1507_v11, %s4985_s20  ;;  %1310 = vst.msk [vmem:[#allocation3 + $0xe8] sm:$0xff] %vm1280_vm5, %v1243_v32  ;;  %v1521_v11 = vld [vmem:[#allocation2 + $0xd8] sm:$0xff]  ;;  %v1520_v32 = vld [vmem:[#allocation2 + $0xc8] sm:$0xff] }
 0x1c7   : > { %v1229_v48 = vpop.permute.xlu1 %1228 }
 0x1c8   : > { %1303 = vst.msk [vmem:[#allocation3 + $0xb0] sm:$0xff] %vm1280_vm5, %v1229_v48 }
 0x1c9   : > { %1575 = vrot.lane.b32.xlu0 %v1509_v58, %s4985_s20  ;;  %1573 = vrot.lane.b32.xlu2 %v1508_v12, %s4985_s20  ;;  %v421_v12 = vld [vmem:[#allocation2 + $0x19a] sm:$0x1] }
 0x1ca   : > { %440 = vst.msk [vmem:[#allocation2 + $0x198] sm:$0x1] %vm422_vm1, %v421_v12 }
 0x1cb   : > { %v1233_v2 = vpop.permute.xlu0 %1232  ;;  %v1378_v34 = vpop.permute.xlu2 %1377 }
 0x1cc   : > { %1305 = vst.msk [vmem:[#allocation3 + $0xc0] sm:$0xff] %vm1280_vm5, %v1233_v2 }
 0x1cd   : > { %1577 = vrot.lane.b32.xlu1 %v1510_v38, %s4985_s20  ;;  %1474 = vst.msk [vmem:[#allocation3] sm:$0xff] %vm1473_vm6, %v1378_v34 }
 0x1cf   : > { %v1235_v17 = vpop.permute.xlu1 %1234 }
 0x1d0   : > { %1306 = vst.msk [vmem:[#allocation3 + $0xc8] sm:$0xff] %vm1280_vm5, %v1235_v17  ;;  %v1523_v17 = vld [vmem:[#allocation2 + $0xf0] sm:$0xff] }
 0x1d1   : > { %1581 = vrot.lane.b32.xlu0 %v1512_v5, %s4985_s20  ;;  %1579 = vrot.lane.b32.xlu2 %v1511_v3, %s4985_s20  ;;  %v1529_v3 = vld [vmem:[#allocation2 + $0x138] sm:$0xff] }
 0x1d3   : > { %v1239_v14 = vpop.permute.xlu0 %1238  ;;  %v1384_v42 = vpop.permute.xlu2 %1383 }
 0x1d4   : > { %1308 = vst.msk [vmem:[#allocation3 + $0xd8] sm:$0xff] %vm1280_vm5, %v1239_v14 }
 0x1d5   : > { %1583 = vrot.lane.b32.xlu1 %v1513_v25, %s4985_s20  ;;  %1477 = vst.msk [vmem:[#allocation3 + $0x18] sm:$0xff] %vm1473_vm6, %v1384_v42  ;;  %v1526_v25 = vld [vmem:[#allocation2 + $0x110] sm:$0xff] }
 0x1d7   : > { %v1241_v30 = vpop.permute.xlu1 %1240 }
 0x1d8   : > { %1309 = vst.msk [vmem:[#allocation3 + $0xe0] sm:$0xff] %vm1280_vm5, %v1241_v30  ;;  %v1532_v30 = vld [vmem:[#allocation2 + $0x158] sm:$0xff] }
 0x1d9   : > { %1587 = vrot.lane.b32.xlu0 %v1515_v56, %s4985_s20  ;;  %1585 = vrot.lane.b32.xlu2 %v1514_v8, %s4985_s20 }
 0x1db   : > { %v1245_v36 = vpop.permute.xlu0 %1244  ;;  %v1390_v54 = vpop.permute.xlu2 %1389 }
 0x1dc   : > { %1311 = vst.msk [vmem:[#allocation3 + $0xf0] sm:$0xff] %vm1280_vm5, %v1245_v36  ;;  %v1700_v36 = vld [vmem:[#allocation2 + $0x31] sm:$0xff] }
 0x1dd   : > { %1589 = vrot.lane.b32.xlu1 %v1516_v31, %s4985_s20  ;;  %1480 = vst.msk [vmem:[#allocation3 + $0x30] sm:$0xff] %vm1473_vm6, %v1390_v54 }
 0x1df   : > { %v1247_v22 = vpop.permute.xlu1 %1246 }
 0x1e0   : > { %1312 = vst.msk [vmem:[#allocation3 + $0xf8] sm:$0xff] %vm1280_vm5, %v1247_v22  ;;  %v1538_v22 = vld [vmem:[#allocation2 + $0x1a0] sm:$0xff] }
 0x1e1   : > { %1593 = vrot.lane.b32.xlu0 %v1518_v37, %s4985_s20  ;;  %1591 = vrot.lane.b32.xlu2 %v1517_v51, %s4985_s20 }
 0x1e3   : > { %v1380_v19 = vpop.permute.xlu0 %1379  ;;  %v1396_v58 = vpop.permute.xlu2 %1395 }
 0x1e4   : > { %1475 = vst.msk [vmem:[#allocation3 + $0x8] sm:$0xff] %vm1473_vm6, %v1380_v19  ;;  %v1702_v19 = vld [vmem:[#allocation2 + $0x49] sm:$0xff] }
 0x1e5   : > { %1595 = vrot.lane.b32.xlu1 %v1519_v13, %s4985_s20  ;;  %1483 = vst.msk [vmem:[#allocation3 + $0x48] sm:$0xff] %vm1473_vm6, %v1396_v58  ;;  %v1704_v58 = vld [vmem:[#allocation2 + $0x61] sm:$0xff] }
 0x1e7   : > { %v1382_v61 = vpop.permute.xlu1 %1381 }
 0x1e8   : > { %1476 = vst.msk [vmem:[#allocation3 + $0x10] sm:$0xff] %vm1473_vm6, %v1382_v61 }
 0x1e9   : > { %1599 = vrot.lane.b32.xlu0 %v1521_v11, %s4985_s20  ;;  %1597 = vrot.lane.b32.xlu2 %v1520_v32, %s4985_s20 }
 0x1eb   : > { %v1386_v48 = vpop.permute.xlu0 %1385  ;;  %v1402_v2 = vpop.permute.xlu2 %1401 }
 0x1ec   : > { %1478 = vst.msk [vmem:[#allocation3 + $0x20] sm:$0xff] %vm1473_vm6, %v1386_v48 }
 0x1ed   : > { %1601 = vrot.lane.b32.xlu1 %v5366_v60, %s4985_s20  ;;  %1486 = vst.msk [vmem:[#allocation3 + $0x60] sm:$0xff] %vm1473_vm6, %v1402_v2  ;;  %v1708_v2 = vld [vmem:[#allocation2 + $0x91] sm:$0xff] }
 0x1ef   : > { %v1388_v38 = vpop.permute.xlu1 %1387 }
 0x1f0   : > { %1479 = vst.msk [vmem:[#allocation3 + $0x28] sm:$0xff] %vm1473_vm6, %v1388_v38  ;;  %v1895_v38 = vld [vmem:[#allocation2 + $0x4a] sm:$0xff] }
 0x1f1   : > { %1605 = vrot.lane.b32.xlu0 %v5353_v50, %s4985_s20  ;;  %1603 = vrot.lane.b32.xlu2 %v1523_v17, %s4985_s20  ;;  %v1710_v17 = vld [vmem:[#allocation2 + $0xa9] sm:$0xff] }
 0x1f3   : > { %v1392_v5 = vpop.permute.xlu0 %1391  ;;  %v1408_v34 = vpop.permute.xlu2 %1407 }
 0x1f4   : > { %1481 = vst.msk [vmem:[#allocation3 + $0x38] sm:$0xff] %vm1473_vm6, %v1392_v5 }
 0x1f5   : > { %1607 = vrot.lane.b32.xlu1 %v5422_v0, %s4985_s20  ;;  %1489 = vst.msk [vmem:[#allocation3 + $0x78] sm:$0xff] %vm1473_vm6, %v1408_v34 }
 0x1f7   : > { %v1394_v60 = vpop.permute.xlu1 %1393 }
 0x1f8   : > { %1482 = vst.msk [vmem:[#allocation3 + $0x40] sm:$0xff] %vm1473_vm6, %v1394_v60 }
 0x1f9   : > { %1611 = vrot.lane.b32.xlu0 %v5406_v44, %s4985_s20  ;;  %1609 = vrot.lane.b32.xlu2 %v1526_v25, %s4985_s20 }
 0x1fb   : > { %v1398_v50 = vpop.permute.xlu0 %1397  ;;  %v1414_v14 = vpop.permute.xlu2 %1413 }
 0x1fc   : > { %1484 = vst.msk [vmem:[#allocation3 + $0x50] sm:$0xff] %vm1473_vm6, %v1398_v50  ;;  %v1898_v50 = vld [vmem:[#allocation2 + $0x6a] sm:$0xff] }
 0x1fd   : > { %1613 = vrot.lane.b32.xlu1 %v5424_v4, %s4985_s20  ;;  %1492 = vst.msk [vmem:[#allocation3 + $0x90] sm:$0xff] %vm1473_vm6, %v1414_v14 }
 0x1ff   : > { %v1400_v0 = vpop.permute.xlu1 %1399 }
 0x200   : > { %1485 = vst.msk [vmem:[#allocation3 + $0x58] sm:$0xff] %vm1473_vm6, %v1400_v0 }
 0x201   : > { %1617 = vrot.lane.b32.xlu0 %v5408_v46, %s4985_s20  ;;  %1615 = vrot.lane.b32.xlu2 %v1529_v3, %s4985_s20 }
 0x203   : > { %v1404_v44 = vpop.permute.xlu0 %1403  ;;  %v1420_v56 = vpop.permute.xlu2 %1419 }
 0x204   : > { %1487 = vst.msk [vmem:[#allocation3 + $0x68] sm:$0xff] %vm1473_vm6, %v1404_v44  ;;  %v1713_v44 = vld [vmem:[#allocation2 + $0xc9] sm:$0xff] }
 0x205   : > { %1619 = vrot.lane.b32.xlu1 %v5476_v18, %s4985_s20  ;;  %1495 = vst.msk [vmem:[#allocation3 + $0xa8] sm:$0xff] %vm1473_vm6, %v1420_v56 }
 0x207   : > { %v1406_v4 = vpop.permute.xlu1 %1405 }
 0x208   : > { %1488 = vst.msk [vmem:[#allocation3 + $0x70] sm:$0xff] %vm1473_vm6, %v1406_v4 }
 0x209   : > { %1623 = vrot.lane.b32.xlu0 %v5462_v27, %s4985_s20  ;;  %1621 = vrot.lane.b32.xlu2 %v1532_v30, %s4985_s20  ;;  %v1537_v27 = vld [vmem:[#allocation2 + $0x198] sm:$0xff] }
 0x20b   : > { %v1410_v46 = vpop.permute.xlu0 %1409  ;;  %v1426_v42 = vpop.permute.xlu2 %1425 }
 0x20c   : > { %1490 = vst.msk [vmem:[#allocation3 + $0x80] sm:$0xff] %vm1473_vm6, %v1410_v46 }
 0x20d   : > { %1625 = vrot.lane.b32.xlu1 %v5464_v62, %s4985_s20  ;;  %1498 = vst.msk [vmem:[#allocation3 + $0xc0] sm:$0xff] %vm1473_vm6, %v1426_v42  ;;  %v1722_v42 = vld [vmem:[#allocation2 + $0x139] sm:$0xff] }
 0x20f   : > { %v1412_v18 = vpop.permute.xlu1 %1411 }
 0x210   : > { %1491 = vst.msk [vmem:[#allocation3 + $0x88] sm:$0xff] %vm1473_vm6, %v1412_v18  ;;  %v1719_v18 = vld [vmem:[#allocation2 + $0x111] sm:$0xff] }
 0x211   : > { %1629 = vrot.lane.b32.xlu0 %v5578_v40, %s4985_s20  ;;  %1627 = vrot.lane.b32.xlu2 %v5567_v45, %s4985_s20  ;;  %v1701_v40 = vld [vmem:[#allocation2 + $0x39] sm:$0xff] }
 0x213   : > { %v1416_v31 = vpop.permute.xlu0 %1415  ;;  %v1432_v8 = vpop.permute.xlu2 %1431 }
 0x214   : > { %1493 = vst.msk [vmem:[#allocation3 + $0x98] sm:$0xff] %vm1473_vm6, %v1416_v31  ;;  %v2121_v31 = vld [vmem:[%s7561_s1 + $0x18] sm:$0xff] }
 0x215   : > { %1631 = vrot.lane.b32.xlu1 %v1537_v27, %s4985_s20  ;;  %1501 = vst.msk [vmem:[#allocation3 + $0xd8] sm:$0xff] %vm1473_vm6, %v1432_v8  ;;  %v1904_v27 = vld [vmem:[#allocation2 + $0xb2] sm:$0xff] }
 0x217   : > { %v1418_v62 = vpop.permute.xlu1 %1417 }
 0x218   : > { %1494 = vst.msk [vmem:[#allocation3 + $0xa0] sm:$0xff] %vm1473_vm6, %v1418_v62 }
 0x219   : > { %1764 = vrot.lane.b32.xlu0 %v1700_v36, %s4986_s21  ;;  %1633 = vrot.lane.b32.xlu2 %v1538_v22, %s4985_s20  ;;  %v2119_v36 = vld [vmem:[%s7561_s1 + $0x8] sm:$0xff] }
 0x21a   : > { %v1905_v22 = vld [vmem:[#allocation2 + $0xc2] sm:$0xff] }
 0x21b   : > { %v1422_v37 = vpop.permute.xlu0 %1421  ;;  %v1438_v45 = vpop.permute.xlu2 %1437 }
 0x21c   : > { %1496 = vst.msk [vmem:[#allocation3 + $0xb0] sm:$0xff] %vm1473_vm6, %v1422_v37 }
 0x21d   : > { %1766 = vrot.lane.b32.xlu1 %v1701_v40, %s4986_s21  ;;  %1504 = vst.msk [vmem:[#allocation3 + $0xf0] sm:$0xff] %vm1473_vm6, %v1438_v45  ;;  %v2118_v40 = vld [vmem:[%s7561_s1] sm:$0xff] }
 0x21f   : > { %v1424_v54 = vpop.permute.xlu1 %1423 }
 0x220   : > { %1497 = vst.msk [vmem:[#allocation3 + $0xb8] sm:$0xff] %vm1473_vm6, %v1424_v54  ;;  %v1725_v54 = vld [vmem:[#allocation2 + $0x159] sm:$0xff] }
 0x221   : > { %1957 = vrot.lane.b32.xlu0 %v5713_v57, %s4987_s22  ;;  %1768 = vrot.lane.b32.xlu2 %v1702_v19, %s4986_s21  ;;  %v1705_v57 = vld [vmem:[#allocation2 + $0x69] sm:$0xff] }
 0x223   : > { %v1428_v13 = vpop.permute.xlu0 %1427  ;;  %v1574_v11 = vpop.permute.xlu2 %1573 }
 0x224   : > { %1499 = vst.msk [vmem:[#allocation3 + $0xc8] sm:$0xff] %vm1473_vm6, %v1428_v13  ;;  %v1907_v13 = vld [vmem:[#allocation2 + $0xda] sm:$0xff] }
 0x225   : > { %1770 = vrot.lane.b32.xlu1 %v5598_v24, %s4986_s21  ;;  %1669 = vst.msk [vmem:[#allocation3 + $0x8] sm:$0xff] %vm1667_vm7, %v1574_v11 }
 0x227   : > { %v1430_v51 = vpop.permute.xlu1 %1429 }
 0x228   : > { %1500 = vst.msk [vmem:[#allocation3 + $0xd0] sm:$0xff] %vm1473_vm6, %v1430_v51  ;;  %v1906_v51 = vld [vmem:[#allocation2 + $0xca] sm:$0xff] }
 0x229   : > { %1959 = vrot.lane.b32.xlu0 %v5725_v33, %s4987_s22  ;;  %1772 = vrot.lane.b32.xlu2 %v1704_v58, %s4986_s21  ;;  %v1707_v33 = vld [vmem:[#allocation2 + $0x81] sm:$0xff] }
 0x22b   : > { %v1434_v61 = vpop.permute.xlu0 %1433  ;;  %v1580_v48 = vpop.permute.xlu2 %1579 }
 0x22c   : > { %1502 = vst.msk [vmem:[#allocation3 + $0xe0] sm:$0xff] %vm1473_vm6, %v1434_v61  ;;  %v1908_v61 = vld [vmem:[#allocation2 + $0xe2] sm:$0xff] }
 0x22d   : > { %1774 = vrot.lane.b32.xlu1 %v1705_v57, %s4986_s21  ;;  %1672 = vst.msk [vmem:[#allocation3 + $0x20] sm:$0xff] %vm1667_vm7, %v1580_v48 }
 0x22f   : > { %v1436_v24 = vpop.permute.xlu1 %1435 }
 0x230   : > { %1503 = vst.msk [vmem:[#allocation3 + $0xe8] sm:$0xff] %vm1473_vm6, %v1436_v24  ;;  %v1911_v24 = vld [vmem:[#allocation2 + $0x10a] sm:$0xff] }
 0x231   : > { %1776 = vrot.lane.b32.xlu0 %v5609_v59, %s4986_s21  ;;  %1961 = vrot.lane.b32.xlu2 %v1895_v38, %s4987_s22 }
 0x233   : > { %v1440_v32 = vpop.permute.xlu0 %1439  ;;  %v1586_v5 = vpop.permute.xlu2 %1585 }
 0x234   : > { %1505 = vst.msk [vmem:[#allocation3 + $0xf8] sm:$0xff] %vm1473_vm6, %v1440_v32  ;;  %v1909_v32 = vld [vmem:[#allocation2 + $0xf2] sm:$0xff] }
 0x235   : > { %1778 = vrot.lane.b32.xlu1 %v1707_v33, %s4986_s21  ;;  %1675 = vst.msk [vmem:[#allocation3 + $0x38] sm:$0xff] %vm1667_vm7, %v1586_v5 }
 0x237   : > { %v1572_v12 = vpop.permute.xlu1 %1571 }
 0x238   : > { %1668 = vst.msk [vmem:[#allocation3] sm:$0xff] %vm1667_vm7, %v1572_v12 }
 0x239   : > { %1780 = vrot.lane.b32.xlu0 %v1708_v2, %s4986_s21  ;;  %1963 = vrot.lane.b32.xlu2 %v5723_v9, %s4987_s22 }
 0x23b   : > { %v1576_v59 = vpop.permute.xlu0 %1575  ;;  %v1592_v34 = vpop.permute.xlu2 %1591 }
 0x23c   : > { %1670 = vst.msk [vmem:[#allocation3 + $0x10] sm:$0xff] %vm1667_vm7, %v1576_v59  ;;  %v1912_v59 = vld [vmem:[#allocation2 + $0x112] sm:$0xff] }
 0x23d   : > { %1782 = vrot.lane.b32.xlu1 %v5622_v16, %s4986_s21  ;;  %1678 = vst.msk [vmem:[#allocation3 + $0x50] sm:$0xff] %vm1667_vm7, %v1592_v34 }
 0x23f   : > { %v1578_v60 = vpop.permute.xlu1 %1577 }
 0x240   : > { %1671 = vst.msk [vmem:[#allocation3 + $0x18] sm:$0xff] %vm1667_vm7, %v1578_v60 }
 0x241   : > { %1784 = vrot.lane.b32.xlu0 %v1710_v17, %s4986_s21  ;;  %1965 = vrot.lane.b32.xlu2 %v5738_v53, %s4987_s22 }
 0x243   : > { %v1582_v25 = vpop.permute.xlu0 %1581  ;;  %v1598_v9 = vpop.permute.xlu2 %1597 }
 0x244   : > { %1673 = vst.msk [vmem:[#allocation3 + $0x28] sm:$0xff] %vm1667_vm7, %v1582_v25  ;;  %v1913_v25 = vld [vmem:[#allocation2 + $0x122] sm:$0xff] }
 0x245   : > { %1967 = vrot.lane.b32.xlu1 %v1898_v50, %s4987_s22  ;;  %1681 = vst.msk [vmem:[#allocation3 + $0x68] sm:$0xff] %vm1667_vm7, %v1598_v9 }
 0x247   : > { %v1584_v16 = vpop.permute.xlu1 %1583 }
 0x248   : > { %1674 = vst.msk [vmem:[#allocation3 + $0x30] sm:$0xff] %vm1667_vm7, %v1584_v16 }
 0x249   : > { %1788 = vrot.lane.b32.xlu0 %v5635_v21, %s4986_s21  ;;  %1786 = vrot.lane.b32.xlu2 %v5620_v29, %s4986_s21 }
 0x24b   : > { %v1588_v0 = vpop.permute.xlu0 %1587  ;;  %v1604_v53 = vpop.permute.xlu2 %1603 }
 0x24c   : > { %1676 = vst.msk [vmem:[#allocation3 + $0x40] sm:$0xff] %vm1667_vm7, %v1588_v0 }
 0x24d   : > { %1969 = vrot.lane.b32.xlu1 %v5736_v47, %s4987_s22  ;;  %1684 = vst.msk [vmem:[#allocation3 + $0x80] sm:$0xff] %vm1667_vm7, %v1604_v53  ;;  %v1901_v47 = vld [vmem:[#allocation2 + $0x92] sm:$0xff] }
 0x24f   : > { %v1590_v14 = vpop.permute.xlu1 %1589 }
 0x250   : > { %1677 = vst.msk [vmem:[#allocation3 + $0x48] sm:$0xff] %vm1667_vm7, %v1590_v14  ;;  %v1916_v14 = vld [vmem:[#allocation2 + $0x142] sm:$0xff] }
 0x251   : > { %1792 = vrot.lane.b32.xlu0 %v5633_v35, %s4986_s21  ;;  %1790 = vrot.lane.b32.xlu2 %v1713_v44, %s4986_s21  ;;  %v1716_v35 = vld [vmem:[#allocation2 + $0xf1] sm:$0xff]  ;;  %v1918_v44 = vld [vmem:[#allocation2 + $0x15a] sm:$0xff] }
 0x253   : > { %v1594_v21 = vpop.permute.xlu0 %1593  ;;  %v1610_v3 = vpop.permute.xlu2 %1609 }
 0x254   : > { %1679 = vst.msk [vmem:[#allocation3 + $0x58] sm:$0xff] %vm1667_vm7, %v1594_v21  ;;  %v1914_v21 = vld [vmem:[#allocation2 + $0x12a] sm:$0xff] }
 0x255   : > { %1971 = vrot.lane.b32.xlu1 %v5751_v20, %s4987_s22  ;;  %1687 = vst.msk [vmem:[#allocation3 + $0x98] sm:$0xff] %vm1667_vm7, %v1610_v3 }
 0x257   : > { %v1596_v29 = vpop.permute.xlu1 %1595 }
 0x258   : > { %1680 = vst.msk [vmem:[#allocation3 + $0x60] sm:$0xff] %vm1667_vm7, %v1596_v29 }
 0x259   : > { %1973 = vrot.lane.b32.xlu0 %v1901_v47, %s4987_s22  ;;  %1794 = vrot.lane.b32.xlu2 %v5648_v28, %s4986_s21 }
 0x25b   : > { %v1600_v4 = vpop.permute.xlu0 %1599  ;;  %v1616_v56 = vpop.permute.xlu2 %1615 }
 0x25c   : > { %1682 = vst.msk [vmem:[#allocation3 + $0x70] sm:$0xff] %vm1667_vm7, %v1600_v4 }
 0x25d   : > { %1796 = vrot.lane.b32.xlu1 %v1716_v35, %s4986_s21  ;;  %1690 = vst.msk [vmem:[#allocation3 + $0xb0] sm:$0xff] %vm1667_vm7, %v1616_v56  ;;  %v1919_v35 = vld [vmem:[#allocation2 + $0x16a] sm:$0xff] }
 0x25f   : > { %v1602_v20 = vpop.permute.xlu1 %1601 }
 0x260   : > { %1683 = vst.msk [vmem:[#allocation3 + $0x78] sm:$0xff] %vm1667_vm7, %v1602_v20  ;;  %v1917_v20 = vld [vmem:[#allocation2 + $0x152] sm:$0xff] }
 0x261   : > { %1975 = vrot.lane.b32.xlu0 %v5749_v39, %s4987_s22  ;;  %1798 = vrot.lane.b32.xlu2 %v5646_v41, %s4986_s21 }
 0x263   : > { %v1606_v46 = vpop.permute.xlu0 %1605  ;;  %v1622_v28 = vpop.permute.xlu2 %1621 }
 0x264   : > { %1685 = vst.msk [vmem:[#allocation3 + $0x88] sm:$0xff] %vm1667_vm7, %v1606_v46 }
 0x265   : > { %1800 = vrot.lane.b32.xlu1 %v5661_v43, %s4986_s21  ;;  %1693 = vst.msk [vmem:[#allocation3 + $0xc8] sm:$0xff] %vm1667_vm7, %v1622_v28 }
 0x267   : > { %v1608_v30 = vpop.permute.xlu1 %1607 }
 0x268   : > { %1686 = vst.msk [vmem:[#allocation3 + $0x90] sm:$0xff] %vm1667_vm7, %v1608_v30 }
 0x269   : > { %1977 = vrot.lane.b32.xlu0 %v5762_v1, %s4987_s22  ;;  %1802 = vrot.lane.b32.xlu2 %v1719_v18, %s4986_s21  ;;  %v2122_v1 = vld [vmem:[%s7561_s1 + $0x20] sm:$0xf] }
 0x26a   : > { %4846 = vmatpush.msk.msra.mxu0 %vm2224_vm8, %v2122_v1  ;;  %4918 = vmatpush.msk.msra.mxu3 %vm2224_vm8, %v2122_v1 }
 0x26b   : > { %v1612_v39 = vpop.permute.xlu0 %1611  ;;  %v1628_v41 = vpop.permute.xlu2 %1627 }
 0x26c   : > { %1688 = vst.msk [vmem:[#allocation3 + $0xa0] sm:$0xff] %vm1667_vm7, %v1612_v39  ;;  %2240 = vmatpush.msra.mxu0 %v2121_v31  ;;  %4919 = vmatpush.msra.mxu3 %v2121_v31 }
 0x26d   : > { %1804 = vrot.lane.b32.xlu1 %v5659_v49, %s4986_s21  ;;  %1696 = vst.msk [vmem:[#allocation3 + $0xe0] sm:$0xff] %vm1667_vm7, %v1628_v41 }
 0x26f   : > { %v1614_v43 = vpop.permute.xlu1 %1613 }
 0x270   : > { %1689 = vst.msk [vmem:[#allocation3 + $0xa8] sm:$0xff] %vm1667_vm7, %v1614_v43 }
 0x271   : > { %1806 = vrot.lane.b32.xlu0 %v5674_v7, %s4986_s21  ;;  %v2120_v7 = vld [vmem:[%s7561_s1 + $0x10] sm:$0xff]  ;;  %1979 = vrot.lane.b32.xlu2 %v1904_v27, %s4987_s22 }
 0x272   : > { %2241 = vmatpush.msra.mxu0 %v2120_v7  ;;  %4920 = vmatpush.msra.mxu3 %v2120_v7 }
 0x273   : > { %v1618_v49 = vpop.permute.xlu0 %1617  ;;  %v1634_v8 = vpop.permute.xlu2 %1633 }
 0x274   : > { %1691 = vst.msk [vmem:[#allocation3 + $0xb8] sm:$0xff] %vm1667_vm7, %v1618_v49  ;;  %2242 = vmatpush.msra.mxu0 %v2119_v36  ;;  %4921 = vmatpush.msra.mxu3 %v2119_v36  ;;  %v1920_v49 = vld [vmem:[#allocation2 + $0x172] sm:$0xff] }
 0x275   : > { %1808 = vrot.lane.b32.xlu1 %v1722_v42, %s4986_s21  ;;  %1699 = vst.msk [vmem:[#allocation3 + $0xf8] sm:$0xff] %vm1667_vm7, %v1634_v8 }
 0x276   : > { %2243 = vmatpush.msra.mxu0 %v2118_v40  ;;  %4922 = vmatpush.msra.mxu3 %v2118_v40 }
 0x277   : > { %v1620_v62 = vpop.permute.xlu1 %1619 }
 0x278   : > { %1692 = vst.msk [vmem:[#allocation3 + $0xc0] sm:$0xff] %vm1667_vm7, %v1620_v62 }
 0x279   : > { %1810 = vrot.lane.b32.xlu0 %v5672_v52, %s4986_s21  ;;  %1981 = vrot.lane.b32.xlu2 %v1905_v22, %s4987_s22 }
 0x27b   : > { %v1624_v37 = vpop.permute.xlu0 %1623  ;;  %v1769_v52 = vpop.permute.xlu2 %1768 }
 0x27c   : > { %1694 = vst.msk [vmem:[#allocation3 + $0xd0] sm:$0xff] %vm1667_vm7, %v1624_v37 }
 0x27d   : > { %1812 = vrot.lane.b32.xlu1 %v5687_v15, %s4986_s21  ;;  %1863 = vst.msk [vmem:[#allocation3 + $0x10] sm:$0xff] %vm1860_vm9, %v1769_v52  ;;  %v1910_v15 = vld [vmem:[#allocation2 + $0xfa] sm:$0xff] }
 0x27f   : > { %v1626_v45 = vpop.permute.xlu1 %1625 }
 0x280   : > { %1695 = vst.msk [vmem:[#allocation3 + $0xd8] sm:$0xff] %vm1667_vm7, %v1626_v45 }
 0x281   : > { %1814 = vrot.lane.b32.xlu0 %v1725_v54, %s4986_s21  ;;  %1983 = vrot.lane.b32.xlu2 %v1906_v51, %s4987_s22 }
 0x283   : > { %v1630_v19 = vpop.permute.xlu0 %1629  ;;  %v1773_v57 = vpop.permute.xlu2 %1772 }
 0x284   : > { %1697 = vst.msk [vmem:[#allocation3 + $0xe8] sm:$0xff] %vm1667_vm7, %v1630_v19 }
 0x285   : > { %1985 = vrot.lane.b32.xlu1 %v1907_v13, %s4987_s22  ;;  %1865 = vst.msk [vmem:[#allocation3 + $0x20] sm:$0xff] %vm1860_vm9, %v1773_v57 }
 0x287   : > { %v1632_v11 = vpop.permute.xlu1 %1631 }
 0x288   : > { %1698 = vst.msk [vmem:[#allocation3 + $0xf0] sm:$0xff] %vm1667_vm7, %v1632_v11 }
 0x289   : > { %1991 = vrot.lane.b32.xlu0 %v1910_v15, %s4987_s22  ;;  %1816 = vrot.lane.b32.xlu2 %v5685_v55, %s4986_s21 }
 0x28b   : > { %v1765_v58 = vpop.permute.xlu0 %1764  ;;  %v1962_v33 = vpop.permute.xlu2 %1961 }
 0x28c   : > { %1861 = vst.msk [vmem:[#allocation3] sm:$0xff] %vm1860_vm9, %v1765_v58 }
 0x28d   : > { %1987 = vrot.lane.b32.xlu1 %v1908_v61, %s4987_s22  ;;  %2056 = vst.msk [vmem:[#allocation3 + $0x10] sm:$0xff] %vm2053_vm10, %v1962_v33 }
 0x28f   : > { %v1767_v48 = vpop.permute.xlu1 %1766 }
 0x290   : > { %1862 = vst.msk [vmem:[#allocation3 + $0x8] sm:$0xff] %vm1860_vm9, %v1767_v48 }
 0x291   : > { %1993 = vrot.lane.b32.xlu0 %v1911_v24, %s4987_s22  ;;  %1818 = vrot.lane.b32.xlu2 %v5702_v63, %s4986_s21  ;;  %v1730_v63 = vld [vmem:[#allocation2 + $0x199] sm:$0xff]  ;;  %v458_v24 = vld [vmem:[#allocation2 + $0x1a7] sm:$0x1] }
 0x292   : > { %476 = vst.msk [vmem:[#allocation2 + $0x1a9] sm:$0x1] %vm422_vm1, %v458_v24 }
 0x293   : > { %v1958_v38 = vpop.permute.xlu0 %1957  ;;  %v1964_v55 = vpop.permute.xlu2 %1963 }
 0x294   : > { %2054 = vst.msk [vmem:[#allocation3] sm:$0xff] %vm2053_vm10, %v1958_v38  ;;  %v2088_v0 = vld [vmem:[#allocation3 + $0x10] sm:$0xff] }
 0x295   : > { %1989 = vrot.lane.b32.xlu1 %v1909_v32, %s4987_s22 }
 0x297   : > { %v1771_v2 = vpop.permute.xlu1 %1770 }
 0x298   : > { %1864 = vst.msk [vmem:[#allocation3 + $0x18] sm:$0xff] %vm1860_vm9, %v1771_v2 }
 0x299   : > { %1820 = vrot.lane.b32.xlu0 %v5692_v10, %s4986_s21  ;;  %2057 = vst.msk [vmem:[#allocation3 + $0x18] sm:$0xff] %vm2053_vm10, %v1964_v55  ;;  %1995 = vrot.lane.b32.xlu2 %v1912_v59, %s4987_s22  ;;  %v1731_v10 = vld [vmem:[#allocation2 + $0x1a1] sm:$0xff] }
 0x29a   : > { %v1924_v2 = vld [vmem:[#allocation2 + $0x1a2] sm:$0xff] }
 0x29b   : > { %v1960_v12 = vpop.permute.xlu0 %1959  ;;  %v2086_v5 = vld [vmem:[#allocation3] sm:$0xff]  ;;  %v1966_v60 = vpop.permute.xlu2 %1965 }
 0x29c   : > { %2055 = vst.msk [vmem:[#allocation3 + $0x8] sm:$0xff] %vm2053_vm10, %v1960_v12  ;;  %4847 = vmatmul.msk.f32.vlgmr.msra.gmra.mxu0 %vm2127_vm11, %v2086_v5 }
 0x29d   : > { %1822 = vrot.lane.b32.xlu1 %v5700_v23, %s4986_s21  ;;  %2058 = vst.msk [vmem:[#allocation3 + $0x20] sm:$0xff] %vm2053_vm10, %v1966_v60  ;;  %v1915_v23 = vld [vmem:[#allocation2 + $0x13a] sm:$0xff] }
 0x29f   : > { %v1775_v17 = vpop.permute.xlu1 %1774 }
 0x2a0   : > { %1866 = vst.msk [vmem:[#allocation3 + $0x28] sm:$0xff] %vm1860_vm9, %v1775_v17  ;;  %v2089_v3 = vld [vmem:[#allocation3 + $0x18] sm:$0xff] }
 0x2a1   : > { %1824 = vrot.lane.b32.xlu0 %v1730_v63, %s4986_s21  ;;  %1997 = vrot.lane.b32.xlu2 %v1913_v25, %s4987_s22 }
 0x2a3   : > { %v1777_v34 = vpop.permute.xlu0 %1776  ;;  %v2087_v50 = vld [vmem:[#allocation3 + $0x8] sm:$0xff]  ;;  %v1787_v9 = vpop.permute.xlu2 %1786 }
 0x2a4   : > { %1867 = vst.msk [vmem:[#allocation3 + $0x30] sm:$0xff] %vm1860_vm9, %v1777_v34  ;;  %4848 = vmatmul.msk.f32.gmra.mxu0 %vm2127_vm11, %v2087_v50  ;;  %v2090_v30 = vld [vmem:[#allocation3 + $0x20] sm:$0xff] }
 0x2a5   : > { %1826 = vrot.lane.b32.xlu1 %v1731_v10, %s4986_s21  ;;  %1872 = vst.msk [vmem:[#allocation3 + $0x58] sm:$0xff] %vm1860_vm9, %v1787_v9  ;;  %s4990_s21 = smov 48  }
 0x2a7   : > { %v1779_v16 = vpop.permute.xlu1 %1778 }
 0x2a8   : > { %1868 = vst.msk [vmem:[#allocation3 + $0x38] sm:$0xff] %vm1860_vm9, %v1779_v16 }
 0x2a9   : > { %2001 = vrot.lane.b32.xlu0 %v1915_v23, %s4987_s22  ;;  %1999 = vrot.lane.b32.xlu2 %v1914_v21, %s4987_s22  ;;  %v1923_v21 = vld [vmem:[#allocation2 + $0x19a] sm:$0xff] }
 0x2ab   : > { %v1781_v53 = vpop.permute.xlu0 %1780  ;;  %v1791_v29 = vpop.permute.xlu2 %1790 }
 0x2ac   : > { %1869 = vst.msk [vmem:[#allocation3 + $0x40] sm:$0xff] %vm1860_vm9, %v1781_v53  ;;  %4849 = vmatmul.msk.f32.gmra.mxu0 %vm2127_vm11, %v2088_v0 }
 0x2ad   : > { %2003 = vrot.lane.b32.xlu1 %v1916_v14, %s4987_s22  ;;  %1874 = vst.msk [vmem:[#allocation3 + $0x68] sm:$0xff] %vm1860_vm9, %v1791_v29  ;;  %v6124_v14 = vld [vmem:[%s7562_s2] ss:$0 sm:$0xff] }
 0x2af   : > { %v1783_v47 = vpop.permute.xlu1 %1782 }
 0x2b0   : > { %1870 = vst.msk [vmem:[#allocation3 + $0x48] sm:$0xff] %vm1860_vm9, %v1783_v47 }
 0x2b1   : > { %2007 = vrot.lane.b32.xlu0 %v1918_v44, %s4987_s22  ;;  %2005 = vrot.lane.b32.xlu2 %v1917_v20, %s4987_s22 }
 0x2b3   : > { %v1785_v4 = vpop.permute.xlu0 %1784  ;;  %v1795_v46 = vpop.permute.xlu2 %1794 }
 0x2b4   : > { %1871 = vst.msk [vmem:[#allocation3 + $0x50] sm:$0xff] %vm1860_vm9, %v1785_v4  ;;  %4850 = vmatmul.msk.f32.gmra.mxu0 %vm2127_vm11, %v2089_v3 }
 0x2b5   : > { %2009 = vrot.lane.b32.xlu1 %v1919_v35, %s4987_s22  ;;  %1876 = vst.msk [vmem:[#allocation3 + $0x78] sm:$0xff] %vm1860_vm9, %v1795_v46 }
 0x2b7   : > { %v1968_v56 = vpop.permute.xlu1 %1967 }
 0x2b8   : > { %2059 = vst.msk [vmem:[#allocation3 + $0x28] sm:$0xff] %vm2053_vm10, %v1968_v56 }
 0x2b9   : > { %2013 = vrot.lane.b32.xlu0 %v5821_v26, %s4987_s22  ;;  %2011 = vrot.lane.b32.xlu2 %v1920_v49, %s4987_s22 }
 0x2bb   : > { %v1789_v28 = vpop.permute.xlu0 %1788  ;;  %v1799_v18 = vpop.permute.xlu2 %1798 }
 0x2bc   : > { %1873 = vst.msk [vmem:[#allocation3 + $0x60] sm:$0xff] %vm1860_vm9, %v1789_v28  ;;  %4851 = vmatmul.msk.f32.gmra.mxu0 %vm2127_vm11, %v2090_v30 }
 0x2bd   : > { %2015 = vrot.lane.b32.xlu1 %v5813_v6, %s4987_s22  ;;  %1878 = vst.msk [vmem:[#allocation3 + $0x88] sm:$0xff] %vm1860_vm9, %v1799_v18 }
 0x2bf   : > { %v1970_v39 = vpop.permute.xlu1 %1969  ;;  %v2091_v43 = vld [vmem:[#allocation3 + $0x28] sm:$0xff] }
 0x2c0   : > { %2060 = vst.msk [vmem:[#allocation3 + $0x30] sm:$0xff] %vm2053_vm10, %v1970_v39 }
 0x2c1   : > { %2019 = vrot.lane.b32.xlu0 %v1924_v2, %s4987_s22  ;;  %2017 = vrot.lane.b32.xlu2 %v1923_v21, %s4987_s22 }
 0x2c3   : > { %v1793_v41 = vpop.permute.xlu0 %1792  ;;  %v1803_v1 = vpop.permute.xlu2 %1802 }
 0x2c4   : > { %1875 = vst.msk [vmem:[#allocation3 + $0x70] sm:$0xff] %vm1860_vm9, %v1793_v41  ;;  %4852 = vmatmul.msk.f32.gmra.mxu0 %vm2127_vm11, %v2091_v43 }
 0x2c5   : > { %1880 = vst.msk [vmem:[#allocation3 + $0x98] sm:$0xff] %vm1860_vm9, %v1803_v1 }
 0x2c7   : > { %v1972_v26 = vpop.permute.xlu1 %1971  ;;  %v2092_v42 = vld [vmem:[#allocation3 + $0x30] sm:$0xff] }
 0x2c8   : > { %2061 = vst.msk [vmem:[#allocation3 + $0x38] sm:$0xff] %vm2053_vm10, %v1972_v26 }
 0x2cb   : > { %v1974_v6 = vpop.permute.xlu0 %1973  ;;  %v1980_v31 = vpop.permute.xlu2 %1979 }
 0x2cc   : > { %2062 = vst.msk [vmem:[#allocation3 + $0x40] sm:$0xff] %vm2053_vm10, %v1974_v6  ;;  %4853 = vmatmul.msk.f32.gmra.mxu0 %vm2127_vm11, %v2092_v42 }
 0x2cd   : > { %2065 = vst.msk [vmem:[#allocation3 + $0x58] sm:$0xff] %vm2053_vm10, %v1980_v31 }
 0x2cf   : > { %v1797_v27 = vpop.permute.xlu1 %1796  ;;  %v2093_v7 = vld [vmem:[#allocation3 + $0x38] sm:$0xff] }
 0x2d0   : > { %1877 = vst.msk [vmem:[#allocation3 + $0x80] sm:$0xff] %vm1860_vm9, %v1797_v27 }
 0x2d3   : > { %v1976_v36 = vpop.permute.xlu0 %1975  ;;  %v1982_v8 = vpop.permute.xlu2 %1981  ;;  %v2094_v37 = vld [vmem:[#allocation3 + $0x40] sm:$0xff] }
 0x2d4   : > { %2063 = vst.msk [vmem:[#allocation3 + $0x48] sm:$0xff] %vm2053_vm10, %v1976_v36  ;;  %4854 = vmatmul.msk.f32.gmra.mxu0 %vm2127_vm11, %v2093_v7  ;;  %v2097_v58 = vld [vmem:[#allocation3 + $0x58] sm:$0xff] }
 0x2d5   : > { %2066 = vst.msk [vmem:[#allocation3 + $0x60] sm:$0xff] %vm2053_vm10, %v1982_v8 }
 0x2d7   : > { %v1801_v62 = vpop.permute.xlu1 %1800 }
 0x2d8   : > { %1879 = vst.msk [vmem:[#allocation3 + $0x90] sm:$0xff] %vm1860_vm9, %v1801_v62 }
 0x2db   : > { %v1978_v40 = vpop.permute.xlu0 %1977  ;;  %v1984_v54 = vpop.permute.xlu2 %1983  ;;  %v2095_v52 = vld [vmem:[#allocation3 + $0x48] sm:$0xff] }
 0x2dc   : > { %2064 = vst.msk [vmem:[#allocation3 + $0x50] sm:$0xff] %vm2053_vm10, %v1978_v40  ;;  %4855 = vmatmul.msk.f32.gmra.mxu0 %vm2127_vm11, %v2094_v37  ;;  %v2098_v38 = vld [vmem:[#allocation3 + $0x60] sm:$0xff] }
 0x2dd   : > { %2067 = vst.msk [vmem:[#allocation3 + $0x68] sm:$0xff] %vm2053_vm10, %v1984_v54 }
 0x2df   : > { %v1805_v22 = vpop.permute.xlu1 %1804 }
 0x2e0   : > { %1881 = vst.msk [vmem:[#allocation3 + $0xa0] sm:$0xff] %vm1860_vm9, %v1805_v22 }
 0x2e3   : > { %v1807_v45 = vpop.permute.xlu0 %1806  ;;  %v1817_v19 = vpop.permute.xlu2 %1816  ;;  %v2096_v15 = vld [vmem:[#allocation3 + $0x50] sm:$0xff] }
 0x2e4   : > { %1882 = vst.msk [vmem:[#allocation3 + $0xa8] sm:$0xff] %vm1860_vm9, %v1807_v45  ;;  %4856 = vmatmul.msk.f32.gmra.mxu0 %vm2127_vm11, %v2095_v52  ;;  %v2099_v59 = vld [vmem:[#allocation3 + $0x68] sm:$0xff] }
 0x2e5   : > { %1887 = vst.msk [vmem:[#allocation3 + $0xd0] sm:$0xff] %vm1860_vm9, %v1817_v19 }
 0x2e7   : > { %v1809_v13 = vpop.permute.xlu1 %1808 }
 0x2e8   : > { %1883 = vst.msk [vmem:[#allocation3 + $0xb0] sm:$0xff] %vm1860_vm9, %v1809_v13 }
 0x2eb   : > { %v1811_v51 = vpop.permute.xlu0 %1810  ;;  %v1819_v57 = vpop.permute.xlu2 %1818 }
 0x2ec   : > { %1884 = vst.msk [vmem:[#allocation3 + $0xb8] sm:$0xff] %vm1860_vm9, %v1811_v51  ;;  %4857 = vmatmul.msk.f32.gmra.mxu0 %vm2127_vm11, %v2096_v15 }
 0x2ed   : > { %1888 = vst.msk [vmem:[#allocation3 + $0xd8] sm:$0xff] %vm1860_vm9, %v1819_v57 }
 0x2ef   : > { %v1813_v11 = vpop.permute.xlu1 %1812 }
 0x2f0   : > { %1885 = vst.msk [vmem:[#allocation3 + $0xc0] sm:$0xff] %vm1860_vm9, %v1813_v11 }
 0x2f3   : > { %v1815_v61 = vpop.permute.xlu0 %1814  ;;  %v1996_v33 = vpop.permute.xlu2 %1995 }
 0x2f4   : > { %1886 = vst.msk [vmem:[#allocation3 + $0xc8] sm:$0xff] %vm1860_vm9, %v1815_v61  ;;  %4858 = vmatmul.msk.f32.gmra.mxu0 %vm2127_vm11, %v2097_v58 }
 0x2f5   : > { %2073 = vst.msk [vmem:[#allocation3 + $0x98] sm:$0xff] %vm2053_vm10, %v1996_v33 }
 0x2f7   : > { %v1986_v48 = vpop.permute.xlu1 %1985 }
 0x2f8   : > { %2068 = vst.msk [vmem:[#allocation3 + $0x70] sm:$0xff] %vm2053_vm10, %v1986_v48 }
 0x2fb   : > { %v1992_v32 = vpop.permute.xlu0 %1991  ;;  %v1998_v12 = vpop.permute.xlu2 %1997 }
 0x2fc   : > { %2071 = vst.msk [vmem:[#allocation3 + $0x88] sm:$0xff] %vm2053_vm10, %v1992_v32  ;;  %4859 = vmatmul.msk.f32.gmra.mxu0 %vm2127_vm11, %v2098_v38  ;;  %v2105_v16 = vld [vmem:[#allocation3 + $0x98] sm:$0xff] }
 0x2fd   : > { %2074 = vst.msk [vmem:[#allocation3 + $0xa0] sm:$0xff] %vm2053_vm10, %v1998_v12 }
 0x2ff   : > { %v1988_v55 = vpop.permute.xlu1 %1987  ;;  %v2100_v10 = vld [vmem:[#allocation3 + $0x70] sm:$0xff] }
 0x300   : > { %2069 = vst.msk [vmem:[#allocation3 + $0x78] sm:$0xff] %vm2053_vm10, %v1988_v55 }
 0x303   : > { %v1994_v5 = vpop.permute.xlu0 %1993  ;;  %v2103_v63 = vld [vmem:[#allocation3 + $0x88] sm:$0xff]  ;;  %v2000_v60 = vpop.permute.xlu2 %1999 }
 0x304   : > { %2072 = vst.msk [vmem:[#allocation3 + $0x90] sm:$0xff] %vm2053_vm10, %v1994_v5  ;;  %4860 = vmatmul.msk.f32.gmra.mxu0 %vm2127_vm11, %v2099_v59  ;;  %4864 = vmatmul.msk.f32.vlgmr.msra.gmra.mxu3 %vm2127_vm11, %v2103_v63  ;;  %v2106_v29 = vld [vmem:[#allocation3 + $0xa0] sm:$0xff] }
 0x305   : > { %2075 = vst.msk [vmem:[#allocation3 + $0xa8] sm:$0xff] %vm2053_vm10, %v2000_v60 }
 0x307   : > { %v1990_v17 = vpop.permute.xlu1 %1989  ;;  %v2101_v23 = vld [vmem:[#allocation3 + $0x78] sm:$0xff] }
 0x308   : > { %2070 = vst.msk [vmem:[#allocation3 + $0x80] sm:$0xff] %vm2053_vm10, %v1990_v17 }
 0x30b   : > { %v2104_v34 = vld [vmem:[#allocation3 + $0x90] sm:$0xff]  ;;  %v1821_v50 = vpop.permute.xlu0 %1820  ;;  %v2006_v0 = vpop.permute.xlu2 %2005 }
 0x30c   : > { %4861 = vmatmul.msk.f32.gmra.mxu0 %vm2127_vm11, %v2100_v10  ;;  %4865 = vmatmul.msk.f32.gmra.mxu3 %vm2127_vm11, %v2104_v34  ;;  %1889 = vst.msk [vmem:[#allocation3 + $0xe0] sm:$0xff] %vm1860_vm9, %v1821_v50  ;;  %v2107_v30 = vld [vmem:[#allocation3 + $0xa8] sm:$0xff] }
 0x30d   : > { %2078 = vst.msk [vmem:[#allocation3 + $0xc0] sm:$0xff] %vm2053_vm10, %v2006_v0 }
 0x30f   : > { %v1823_v25 = vpop.permute.xlu1 %1822  ;;  %v2102_v47 = vld [vmem:[#allocation3 + $0x80] sm:$0xff] }
 0x310   : > { %1890 = vst.msk [vmem:[#allocation3 + $0xe8] sm:$0xff] %vm1860_vm9, %v1823_v25 }
 0x313   : > { %v1825_v9 = vpop.permute.xlu0 %1824  ;;  %v2012_v31 = vpop.permute.xlu2 %2011 }
 0x314   : > { %4862 = vmatmul.msk.f32.gmra.mxu0 %vm2127_vm11, %v2101_v23  ;;  %4866 = vmatmul.msk.f32.gmra.mxu3 %vm2127_vm11, %v2105_v16  ;;  %1891 = vst.msk [vmem:[#allocation3 + $0xf0] sm:$0xff] %vm1860_vm9, %v1825_v9  ;;  %v2110_v11 = vld [vmem:[#allocation3 + $0xc0] sm:$0xff] }
 0x315   : > { %2081 = vst.msk [vmem:[#allocation3 + $0xd8] sm:$0xff] %vm2053_vm10, %v2012_v31 }
 0x317   : > { %v1827_v53 = vpop.permute.xlu1 %1826 }
 0x318   : > { %1892 = vst.msk [vmem:[#allocation3 + $0xf8] sm:$0xff] %vm1860_vm9, %v1827_v53 }
 0x319   : > { %v2245_v44 = vpop.f32.mrf.mxu0 }
 0x31a   : > { %v2246_v3 = vadd.f32 %v6124_v14, %v2245_v44 }
 0x31b   : > { %v2002_v35 = vpop.permute.xlu0 %2001 }
 0x31c   : > { %vm2341_vm12 = vcmp.ge.f32.partialorder %v2246_v3, 0.0  ;;  %v2373_v4 = vmul.f32 0.2, %v2246_v3  ;;  %4863 = vmatmul.msk.f32.gmra.mxu0 %vm2127_vm11, %v2102_v47  ;;  %4867 = vmatmul.msk.f32.gmra.mxu3 %vm2127_vm11, %v2106_v29  ;;  %2076 = vst.msk [vmem:[#allocation3 + $0xb0] sm:$0xff] %vm2053_vm10, %v2002_v35 }
 0x31e   : > { %v2405_v20 = vsel %vm2341_vm12, %v2246_v3, %v2373_v4  ;;  %v2113_v4 = vld [vmem:[#allocation3 + $0xd8] sm:$0xff] }
 0x31f   : > { %2438 = vst.msk [vmem:[#allocation2 + $0x19] sm:$0xff] %vm2437_vm13, %v2405_v20  ;;  %v2004_v56 = vpop.permute.xlu1 %2003 }
 0x320   : > { %2077 = vst.msk [vmem:[#allocation3 + $0xb8] sm:$0xff] %vm2053_vm10, %v2004_v56 }
 0x321   : > { %v2248_v46 = vpop.f32.mrf.mxu0 }
 0x322   : > { %v2249_v28 = vadd.f32 %v6124_v14, %v2248_v46 }
 0x323   : > { %v2008_v39 = vpop.permute.xlu0 %2007  ;;  %v2108_v6 = vld [vmem:[#allocation3 + $0xb0] sm:$0xff] }
 0x324   : > { %vm2342_vm14 = vcmp.ge.f32.partialorder %v2249_v28, 0.0  ;;  %v2374_v18 = vmul.f32 0.2, %v2249_v28  ;;  %4868 = vmatmul.msk.f32.gmra.mxu3 %vm2127_vm11, %v2107_v30  ;;  %2079 = vst.msk [vmem:[#allocation3 + $0xc8] sm:$0xff] %vm2053_vm10, %v2008_v39 }
 0x326   : > { %v2406_v43 = vsel %vm2342_vm14, %v2249_v28, %v2374_v18  ;;  %v6137_v41 = vld [vmem:[#allocation2 + $0x19] sm:$0xff] }
 0x327   : > { %v2475_v26 = vld [vmem:[#allocation2 + $0x1a] sm:$0x1]  ;;  %2679 = vrot.lane.b32.xlu0 %v6137_v41, %s4981_s16  ;;  %2439 = vst.msk [vmem:[#allocation2 + $0x21] sm:$0xff] %vm2437_vm13, %v2406_v43  ;;  %v2010_v1 = vpop.permute.xlu1 %2009  ;;  %v2109_v37 = vld [vmem:[#allocation3 + $0xb8] sm:$0xff] }
 0x328   : > { %2080 = vst.msk [vmem:[#allocation3 + $0xd0] sm:$0xff] %vm2053_vm10, %v2010_v1 }
 0x329   : > { %v2251_v42 = vpop.f32.mrf.mxu0  ;;  %2494 = vst.msk [vmem:[#allocation2 + $0x18] sm:$0x1] %vm2492_vm15, %v2475_v26 }
 0x32a   : > { %v2252_v49 = vadd.f32 %v6124_v14, %v2251_v42 }
 0x32b   : > { %v2014_v45 = vpop.permute.xlu0 %2013  ;;  %v2111_v5 = vld [vmem:[#allocation3 + $0xc8] sm:$0xff] }
 0x32c   : > { %vm2343_vm0 = vcmp.ge.f32.partialorder %v2252_v49, 0.0  ;;  %v2375_v27 = vmul.f32 0.2, %v2252_v49  ;;  %4869 = vmatmul.msk.f32.gmra.mxu3 %vm2127_vm11, %v2108_v6  ;;  %2082 = vst.msk [vmem:[#allocation3 + $0xe0] sm:$0xff] %vm2053_vm10, %v2014_v45 }
 0x32e   : > { %v2407_v7 = vsel %vm2343_vm0, %v2252_v49, %v2375_v27  ;;  %v6148_v36 = vld [vmem:[#allocation2 + $0x20] sm:$0xff] }
 0x32f   : > { %2470 = vst.msk [vmem:[#allocation2 + $0x1] sm:$0xff] %vm2437_vm13, %v2407_v7  ;;  %v2512_v8 = vld [vmem:[#allocation2 + $0x27] sm:$0x1]  ;;  %v2016_v58 = vpop.permute.xlu1 %2015 }
 0x330   : > { %2440 = vst.msk [vmem:[#allocation2 + $0x31] sm:$0xff] %vm2437_vm13, %v2407_v7  ;;  %v6151_v62 = vld [vmem:[#allocation2 + $0x18] sm:$0xff]  ;;  %v6169_v33 = vld [vmem:[#allocation2 + $0x21] sm:$0xff] }
 0x331   : > { %v2254_v40 = vpop.f32.mrf.mxu0  ;;  %2581 = vst.msk [vmem:[#allocation3 + $0x10] sm:$0xff] %vm2437_vm13, %v6151_v62  ;;  %v2112_v9 = vld [vmem:[#allocation3 + $0xd0] sm:$0xff] }
 0x332   : > { %v2255_v22 = vadd.f32 %v6124_v14, %v2254_v40  ;;  %2582 = vst.msk [vmem:[#allocation3 + $0x18] sm:$0xff] %vm2437_vm13, %v6148_v36 }
 0x333   : > { %2530 = vst.msk [vmem:[#allocation2 + $0x29] sm:$0x1] %vm2492_vm15, %v2512_v8  ;;  %v2114_v18 = vld [vmem:[#allocation3 + $0xe0] sm:$0xff] }
 0x334   : > { %vm2344_vm1 = vcmp.ge.f32.partialorder %v2255_v22, 0.0  ;;  %v2376_v54 = vmul.f32 0.2, %v2255_v22  ;;  %4870 = vmatmul.msk.f32.gmra.mxu3 %vm2127_vm11, %v2109_v37  ;;  %2083 = vst.msk [vmem:[#allocation3 + $0xe8] sm:$0xff] %vm2053_vm10, %v2016_v58 }
 0x336   : > { %v2408_v52 = vsel %vm2344_vm1, %v2255_v22, %v2376_v54  ;;  %v2611_v13 = vld [vmem:[#allocation2 + $0x1] sm:$0xff] }
 0x337   : > { %2471 = vst.msk [vmem:[#allocation2 + $0x9] sm:$0xff] %vm2437_vm13, %v2408_v52  ;;  %2675 = vrot.lane.b32.xlu1 %v2611_v13, %s4981_s16  ;;  %v2476_v19 = vld [vmem:[#allocation2 + $0x32] sm:$0x1]  ;;  %v2474_v51 = vld [vmem:[#allocation2 + $0x2] sm:$0x1] }
 0x338   : > { %2441 = vst.msk [vmem:[#allocation2 + $0x39] sm:$0xff] %vm2437_vm13, %v2408_v52  ;;  %v6195_v25 = vld [vmem:[#allocation2 + $0x31] sm:$0xff] }
 0x339   : > { %v2257_v15 = vpop.f32.mrf.mxu0  ;;  %2495 = vst.msk [vmem:[#allocation2 + $0x30] sm:$0x1] %vm2492_vm15, %v2476_v19 }
 0x33a   : > { %v2258_v57 = vadd.f32 %v6124_v14, %v2257_v15  ;;  %2493 = vst.msk [vmem:[#allocation2] sm:$0x1] %vm2492_vm15, %v2474_v51 }
 0x33b   : > { %v2115_v7 = vld [vmem:[#allocation3 + $0xe8] sm:$0xff] }
 0x33c   : > { %vm2345_vm2 = vcmp.ge.f32.partialorder %v2258_v57, 0.0  ;;  %v2377_v61 = vmul.f32 0.2, %v2258_v57  ;;  %4871 = vmatmul.msk.f32.gmra.mxu3 %vm2127_vm11, %v2110_v11 }
 0x33e   : > { %v2409_v24 = vsel %vm2345_vm2, %v2258_v57, %v2377_v61  ;;  %v2612_v48 = vld [vmem:[#allocation2 + $0x9] sm:$0xff] }
 0x33f   : > { %v2548_v32 = vld [vmem:[#allocation2 + $0x8] sm:$0xff]  ;;  %2442 = vst.msk [vmem:[#allocation2 + $0x49] sm:$0xff] %vm2437_vm13, %v2409_v24  ;;  %2677 = vrot.lane.b32.xlu2 %v2612_v48, %s4981_s16  ;;  %v6173_v38 = vld [vmem:[#allocation2 + $0x39] sm:$0xff]  ;;  %2681 = vrot.lane.b32.xlu1 %v6169_v33, %s4981_s16  ;;  %v2020_v24 = vpop.permute.xlu0 %2019  ;;  %v2018_v48 = vpop.permute.xlu2 %2017 }
 0x340   : > { %2685 = vrot.lane.b32.xlu0 %v6173_v38, %s4981_s16  ;;  %2580 = vst.msk [vmem:[#allocation3 + $0x8] sm:$0xff] %vm2437_vm13, %v2548_v32  ;;  %v6180_v2 = vld [vmem:[#allocation2 + $0x30] sm:$0xff]  ;;  %v6182_v55 = vld [vmem:[#allocation2 + $0x38] sm:$0xff]  ;;  %v2511_v63 = vld [vmem:[#allocation2 + $0xf] sm:$0x1] }
 0x341   : > { %v2260_v12 = vpop.f32.mrf.mxu0  ;;  %2583 = vst.msk [vmem:[#allocation3 + $0x20] sm:$0xff] %vm2437_vm13, %v6180_v2  ;;  %v2547_v59 = vld [vmem:[#allocation2] sm:$0xff]  ;;  %v2513_v60 = vld [vmem:[#allocation2 + $0x3f] sm:$0x1] }
 0x342   : > { %v2261_v17 = vadd.f32 %v6124_v14, %v2260_v12  ;;  %2579 = vst.msk [vmem:[#allocation3] sm:$0xff] %vm2437_vm13, %v2547_v59 }
 0x343   : > { %2584 = vst.msk [vmem:[#allocation3 + $0x28] sm:$0xff] %vm2437_vm13, %v6182_v55 }
 0x344   : > { %vm2346_vm3 = vcmp.ge.f32.partialorder %v2261_v17, 0.0  ;;  %v2378_v10 = vmul.f32 0.2, %v2261_v17  ;;  %4872 = vmatmul.msk.f32.gmra.mxu3 %vm2127_vm11, %v2111_v5  ;;  %2529 = vst.msk [vmem:[#allocation2 + $0x11] sm:$0x1] %vm2492_vm15, %v2511_v63 }
 0x345   : > { %2531 = vst.msk [vmem:[#allocation2 + $0x41] sm:$0x1] %vm2492_vm15, %v2513_v60 }
 0x346   : > { %v2410_v34 = vsel %vm2346_vm3, %v2261_v17, %v2378_v10  ;;  %v6193_v50 = vld [vmem:[#allocation2 + $0x49] sm:$0xff]  ;;  %2085 = vst.msk [vmem:[#allocation3 + $0xf8] sm:$0xff] %vm2053_vm10, %v2020_v24  ;;  %vm2771_vm3 = vcmask 130112  }
 0x347   : > { %v2477_v23 = vld [vmem:[#allocation2 + $0x4a] sm:$0x1]  ;;  %2443 = vst.msk [vmem:[#allocation2 + $0x51] sm:$0xff] %vm2437_vm13, %v2410_v34  ;;  %2687 = vrot.lane.b32.xlu1 %v6193_v50, %s4981_s16  ;;  %2683 = vrot.lane.b32.xlu2 %v6195_v25, %s4981_s16 }
 0x348   : > { %2496 = vst.msk [vmem:[#allocation2 + $0x48] sm:$0x1] %vm2492_vm15, %v2477_v23 }
 0x349   : > { %v2263_v16 = vpop.f32.mrf.mxu0  ;;  %2084 = vst.msk [vmem:[#allocation3 + $0xf0] sm:$0xff] %vm2053_vm10, %v2018_v48 }
 0x34a   : > { %v2264_v0 = vadd.f32 %v6124_v14, %v2263_v16 }
 0x34c   : > { %vm2347_vm4 = vcmp.ge.f32.partialorder %v2264_v0, 0.0  ;;  %v2379_v53 = vmul.f32 0.2, %v2264_v0  ;;  %4873 = vmatmul.msk.f32.gmra.mxu3 %vm2127_vm11, %v2112_v9 }
 0x34e   : > { %v2411_v21 = vsel %vm2347_vm4, %v2264_v0, %v2379_v53  ;;  %v6205_v44 = vld [vmem:[#allocation2 + $0x51] sm:$0xff] }
 0x34f   : > { %v6207_v47 = vld [vmem:[#allocation2 + $0x50] sm:$0xff]  ;;  %2444 = vst.msk [vmem:[#allocation2 + $0x61] sm:$0xff] %vm2437_vm13, %v2411_v21  ;;  %2689 = vrot.lane.b32.xlu2 %v6205_v44, %s4981_s16  ;;  %v6212_v29 = vld [vmem:[#allocation2 + $0x48] sm:$0xff] }
 0x350   : > { %v2514_v3 = vld [vmem:[#allocation2 + $0x57] sm:$0x1]  ;;  %2586 = vst.msk [vmem:[#allocation3 + $0x38] sm:$0xff] %vm2437_vm13, %v6207_v47 }
 0x351   : > { %v2266_v35 = vpop.f32.mrf.mxu0  ;;  %2585 = vst.msk [vmem:[#allocation3 + $0x30] sm:$0xff] %vm2437_vm13, %v6212_v29 }
 0x352   : > { %v2267_v20 = vadd.f32 %v6124_v14, %v2266_v35  ;;  %2532 = vst.msk [vmem:[#allocation2 + $0x59] sm:$0x1] %vm2492_vm15, %v2514_v3 }
 0x354   : > { %vm2348_vm5 = vcmp.ge.f32.partialorder %v2267_v20, 0.0  ;;  %v2380_v56 = vmul.f32 0.2, %v2267_v20  ;;  %4874 = vmatmul.msk.f32.gmra.mxu3 %vm2127_vm11, %v2113_v4 }
 0x356   : > { %v2412_v46 = vsel %vm2348_vm5, %v2267_v20, %v2380_v56  ;;  %v6221_v30 = vld [vmem:[#allocation2 + $0x61] sm:$0xff] }
 0x357   : > { %v2478_v28 = vld [vmem:[#allocation2 + $0x62] sm:$0x1]  ;;  %2445 = vst.msk [vmem:[#allocation2 + $0x69] sm:$0xff] %vm2437_vm13, %v2412_v46  ;;  %2691 = vrot.lane.b32.xlu0 %v6221_v30, %s4981_s16 }
 0x358   : > { %2497 = vst.msk [vmem:[#allocation2 + $0x60] sm:$0x1] %vm2492_vm15, %v2478_v28 }
 0x359   : > { %v2269_v39 = vpop.f32.mrf.mxu0 }
 0x35a   : > { %v2270_v43 = vadd.f32 %v6124_v14, %v2269_v39 }
 0x35c   : > { %vm2349_vm6 = vcmp.ge.f32.partialorder %v2270_v43, 0.0  ;;  %v2381_v26 = vmul.f32 0.2, %v2270_v43  ;;  %4875 = vmatmul.msk.f32.gmra.mxu3 %vm2127_vm11, %v2114_v18 }
 0x35e   : > { %v2413_v1 = vsel %vm2349_vm6, %v2270_v43, %v2381_v26  ;;  %v6229_v42 = vld [vmem:[#allocation2 + $0x69] sm:$0xff] }
 0x35f   : > { %v6231_v6 = vld [vmem:[#allocation2 + $0x68] sm:$0xff]  ;;  %2446 = vst.msk [vmem:[#allocation2 + $0x79] sm:$0xff] %vm2437_vm13, %v2413_v1  ;;  %2693 = vrot.lane.b32.xlu1 %v6229_v42, %s4981_s16  ;;  %v6236_v49 = vld [vmem:[#allocation2 + $0x60] sm:$0xff] }
 0x360   : > { %v2515_v27 = vld [vmem:[#allocation2 + $0x6f] sm:$0x1]  ;;  %2587 = vst.msk [vmem:[#allocation3 + $0x40] sm:$0xff] %vm2437_vm13, %v6236_v49 }
 0x361   : > { %v2272_v31 = vpop.f32.mrf.mxu0  ;;  %2588 = vst.msk [vmem:[#allocation3 + $0x48] sm:$0xff] %vm2437_vm13, %v6231_v6 }
 0x362   : > { %v2273_v8 = vadd.f32 %v6124_v14, %v2272_v31  ;;  %2533 = vst.msk [vmem:[#allocation2 + $0x71] sm:$0x1] %vm2492_vm15, %v2515_v27 }
 0x364   : > { %vm2350_vm7 = vcmp.ge.f32.partialorder %v2273_v8, 0.0  ;;  %v2382_v40 = vmul.f32 0.2, %v2273_v8  ;;  %4876 = vmatmul.msk.f32.gmra.mxu3 %vm2127_vm11, %v2115_v7 }
 0x366   : > { %v2414_v37 = vsel %vm2350_vm7, %v2273_v8, %v2382_v40  ;;  %v2621_v22 = vld [vmem:[#allocation2 + $0x79] sm:$0xff] }
 0x367   : > { %v2479_v54 = vld [vmem:[#allocation2 + $0x7a] sm:$0x1]  ;;  %2447 = vst.msk [vmem:[#allocation2 + $0x81] sm:$0xff] %vm2437_vm13, %v2414_v37  ;;  %2695 = vrot.lane.b32.xlu2 %v2621_v22, %s4981_s16 }
 0x368   : > { %2498 = vst.msk [vmem:[#allocation2 + $0x78] sm:$0x1] %vm2492_vm15, %v2479_v54 }
 0x369   : > { %v2275_v45 = vpop.f32.mrf.mxu0 }
 0x36a   : > { %v2276_v52 = vadd.f32 %v6124_v14, %v2275_v45 }
 0x36c   : > { %vm2351_vm8 = vcmp.ge.f32.partialorder %v2276_v52, 0.0  ;;  %v2383_v13 = vmul.f32 0.2, %v2276_v52 }
 0x36e   : > { %v2415_v19 = vsel %vm2351_vm8, %v2276_v52, %v2383_v13  ;;  %v2622_v51 = vld [vmem:[#allocation2 + $0x81] sm:$0xff] }
 0x36f   : > { %v6249_v15 = vld [vmem:[#allocation2 + $0x80] sm:$0xff]  ;;  %2448 = vst.msk [vmem:[#allocation2 + $0x91] sm:$0xff] %vm2437_vm13, %v2415_v19  ;;  %2697 = vrot.lane.b32.xlu0 %v2622_v51, %s4981_s16  ;;  %v6253_v11 = vld [vmem:[#allocation2 + $0x78] sm:$0xff] }
 0x370   : > { %v2516_v57 = vld [vmem:[#allocation2 + $0x87] sm:$0x1]  ;;  %2589 = vst.msk [vmem:[#allocation3 + $0x50] sm:$0xff] %vm2437_vm13, %v6253_v11 }
 0x371   : > { %v2278_v61 = vpop.f32.mrf.mxu0  ;;  %2590 = vst.msk [vmem:[#allocation3 + $0x58] sm:$0xff] %vm2437_vm13, %v6249_v15 }
 0x372   : > { %v2279_v58 = vadd.f32 %v6124_v14, %v2278_v61  ;;  %2534 = vst.msk [vmem:[#allocation2 + $0x89] sm:$0x1] %vm2492_vm15, %v2516_v57 }
 0x374   : > { %vm2352_vm9 = vcmp.ge.f32.partialorder %v2279_v58, 0.0  ;;  %v2384_v32 = vmul.f32 0.2, %v2279_v58 }
 0x376   : > { %v2416_v12 = vsel %vm2352_vm9, %v2279_v58, %v2384_v32  ;;  %v2623_v5 = vld [vmem:[#allocation2 + $0x91] sm:$0xff] }
 0x377   : > { %v2480_v59 = vld [vmem:[#allocation2 + $0x92] sm:$0x1]  ;;  %2449 = vst.msk [vmem:[#allocation2 + $0x99] sm:$0xff] %vm2437_vm13, %v2416_v12  ;;  %2699 = vrot.lane.b32.xlu1 %v2623_v5, %s4981_s16 }
 0x378   : > { %2499 = vst.msk [vmem:[#allocation2 + $0x90] sm:$0x1] %vm2492_vm15, %v2480_v59 }
 0x379   : > { %v2281_v63 = vpop.f32.mrf.mxu0 }
 0x37a   : > { %v2282_v17 = vadd.f32 %v6124_v14, %v2281_v63 }
 0x37c   : > { %vm2353_vm12 = vcmp.ge.f32.partialorder %v2282_v17, 0.0  ;;  %v2385_v60 = vmul.f32 0.2, %v2282_v17 }
 0x37e   : > { %v2417_v10 = vsel %vm2353_vm12, %v2282_v17, %v2385_v60  ;;  %v2624_v34 = vld [vmem:[#allocation2 + $0x99] sm:$0xff] }
 0x37f   : > { %v2560_v23 = vld [vmem:[#allocation2 + $0x98] sm:$0xff]  ;;  %2450 = vst.msk [vmem:[#allocation2 + $0xa9] sm:$0xff] %vm2437_vm13, %v2417_v10  ;;  %2701 = vrot.lane.b32.xlu2 %v2624_v34, %s4981_s16  ;;  %v6269_v16 = vld [vmem:[#allocation2 + $0x90] sm:$0xff] }
 0x380   : > { %2592 = vst.msk [vmem:[#allocation3 + $0x68] sm:$0xff] %vm2437_vm13, %v2560_v23  ;;  %v2517_v9 = vld [vmem:[#allocation2 + $0x9f] sm:$0x1] }
 0x381   : > { %v2284_v0 = vpop.f32.mrf.mxu0  ;;  %2591 = vst.msk [vmem:[#allocation3 + $0x60] sm:$0xff] %vm2437_vm13, %v6269_v16 }
 0x382   : > { %v2285_v53 = vadd.f32 %v6124_v14, %v2284_v0  ;;  %2535 = vst.msk [vmem:[#allocation2 + $0xa1] sm:$0x1] %vm2492_vm15, %v2517_v9 }
 0x384   : > { %vm2354_vm10 = vcmp.ge.f32.partialorder %v2285_v53, 0.0  ;;  %v2386_v21 = vmul.f32 0.2, %v2285_v53 }
 0x386   : > { %v2418_v3 = vsel %vm2354_vm10, %v2285_v53, %v2386_v21  ;;  %v2625_v35 = vld [vmem:[#allocation2 + $0xa9] sm:$0xff] }
 0x387   : > { %v2481_v4 = vld [vmem:[#allocation2 + $0xaa] sm:$0x1]  ;;  %2451 = vst.msk [vmem:[#allocation2 + $0xb1] sm:$0xff] %vm2437_vm13, %v2418_v3  ;;  %v2296_v20 = vpop.f32.mrf.mxu3  ;;  %2703 = vrot.lane.b32.xlu0 %v2625_v35, %s4981_s16 }
 0x388   : > { %v2297_v56 = vadd.f32 %v6124_v14, %v2296_v20  ;;  %2500 = vst.msk [vmem:[#allocation2 + $0xa8] sm:$0x1] %vm2492_vm15, %v2481_v4 }
 0x389   : > { %v2287_v46 = vpop.f32.mrf.mxu0 }
 0x38a   : > { %vm2358_vm14 = vcmp.ge.f32.partialorder %v2297_v56, 0.0  ;;  %v2390_v28 = vmul.f32 0.2, %v2297_v56  ;;  %v2288_v39 = vadd.f32 %v6124_v14, %v2287_v46 }
 0x38c   : > { %v2422_v18 = vsel %vm2358_vm14, %v2297_v56, %v2390_v28  ;;  %vm2355_vm0 = vcmp.ge.f32.partialorder %v2288_v39, 0.0  ;;  %v2387_v43 = vmul.f32 0.2, %v2288_v39 }
 0x38d   : > { %2455 = vst.msk [vmem:[#allocation2 + $0xe1] sm:$0xff] %vm2437_vm13, %v2422_v18 }
 0x38e   : > { %v2419_v26 = vsel %vm2355_vm0, %v2288_v39, %v2387_v43  ;;  %v2626_v1 = vld [vmem:[#allocation2 + $0xb1] sm:$0xff] }
 0x38f   : > { %v2562_v27 = vld [vmem:[#allocation2 + $0xb0] sm:$0xff]  ;;  %2452 = vst.msk [vmem:[#allocation2 + $0xc1] sm:$0xff] %vm2437_vm13, %v2419_v26  ;;  %v2299_v31 = vpop.f32.mrf.mxu3  ;;  %2705 = vrot.lane.b32.xlu1 %v2626_v1, %s4981_s16  ;;  %v2561_v7 = vld [vmem:[#allocation2 + $0xa8] sm:$0xff] }
 0x390   : > { %v2518_v8 = vld [vmem:[#allocation2 + $0xb7] sm:$0x1]  ;;  %v2300_v40 = vadd.f32 %v6124_v14, %v2299_v31  ;;  %2593 = vst.msk [vmem:[#allocation3 + $0x70] sm:$0xff] %vm2437_vm13, %v2561_v7 }
 0x391   : > { %v2290_v37 = vpop.f32.mrf.mxu0  ;;  %2594 = vst.msk [vmem:[#allocation3 + $0x78] sm:$0xff] %vm2437_vm13, %v2562_v27 }
 0x392   : > { %vm2359_vm1 = vcmp.ge.f32.partialorder %v2300_v40, 0.0  ;;  %v2391_v22 = vmul.f32 0.2, %v2300_v40  ;;  %v2291_v54 = vadd.f32 %v6124_v14, %v2290_v37  ;;  %2536 = vst.msk [vmem:[#allocation2 + $0xb9] sm:$0x1] %vm2492_vm15, %v2518_v8 }
 0x394   : > { %v2423_v45 = vsel %vm2359_vm1, %v2300_v40, %v2391_v22  ;;  %vm2356_vm2 = vcmp.ge.f32.partialorder %v2291_v54, 0.0  ;;  %v2388_v52 = vmul.f32 0.2, %v2291_v54  ;;  %v2520_v13 = vld [vmem:[#allocation2 + $0xe7] sm:$0x1] }
 0x395   : > { %2456 = vst.msk [vmem:[#allocation2 + $0xf1] sm:$0xff] %vm2437_vm13, %v2423_v45  ;;  %v6299_v34 = vld [vmem:[#allocation2 + $0xe1] sm:$0xff] }
 0x396   : > { %v2420_v19 = vsel %vm2356_vm2, %v2291_v54, %v2388_v52  ;;  %v2627_v51 = vld [vmem:[#allocation2 + $0xc1] sm:$0xff]  ;;  %2538 = vst.msk [vmem:[#allocation2 + $0xe9] sm:$0x1] %vm2492_vm15, %v2520_v13  ;;  %vm2964_vm2 = vcmask 195712  }
 0x397   : > { %v2482_v57 = vld [vmem:[#allocation2 + $0xc2] sm:$0x1]  ;;  %2453 = vst.msk [vmem:[#allocation2 + $0xc9] sm:$0xff] %vm2437_vm13, %v2420_v19  ;;  %v2302_v61 = vpop.f32.mrf.mxu3  ;;  %2707 = vrot.lane.b32.xlu2 %v2627_v51, %s4981_s16 }
 0x398   : > { %v2303_v58 = vadd.f32 %v6124_v14, %v2302_v61  ;;  %2501 = vst.msk [vmem:[#allocation2 + $0xc0] sm:$0x1] %vm2492_vm15, %v2482_v57 }
 0x399   : > { %v2680_v24 = vpop.permute.xlu0 %2679  ;;  %v2293_v48 = vpop.f32.mrf.mxu0 }
 0x39a   : > { %vm2360_vm4 = vcmp.ge.f32.partialorder %v2303_v58, 0.0  ;;  %v2392_v32 = vmul.f32 0.2, %v2303_v58  ;;  %2774 = vst.msk [vmem:[#allocation3 + $0x10] sm:$0xff] %vm2771_vm3, %v2680_v24  ;;  %v2294_v12 = vadd.f32 %v6124_v14, %v2293_v48  ;;  %v2678_v5 = vpop.permute.xlu2 %2677 }
 0x39b   : > { %2773 = vst.msk [vmem:[#allocation3 + $0x8] sm:$0xff] %vm2771_vm3, %v2678_v5 }
 0x39c   : > { %v2424_v59 = vsel %vm2360_vm4, %v2303_v58, %v2392_v32  ;;  %vm2357_vm5 = vcmp.ge.f32.partialorder %v2294_v12, 0.0  ;;  %v2389_v63 = vmul.f32 0.2, %v2294_v12  ;;  %v2484_v17 = vld [vmem:[#allocation2 + $0xf2] sm:$0x1] }
 0x39d   : > { %2457 = vst.msk [vmem:[#allocation2 + $0xf9] sm:$0xff] %vm2437_vm13, %v2424_v59  ;;  %v6312_v20 = vld [vmem:[#allocation2 + $0xf1] sm:$0xff] }
 0x39e   : > { %v2421_v60 = vsel %vm2357_vm5, %v2294_v12, %v2389_v63  ;;  %v2628_v10 = vld [vmem:[#allocation2 + $0xc9] sm:$0xff]  ;;  %2503 = vst.msk [vmem:[#allocation2 + $0xf0] sm:$0x1] %vm2492_vm15, %v2484_v17  ;;  %vm3350_vm5 = vcmask 326912  }
 0x39f   : > { %v2564_v23 = vld [vmem:[#allocation2 + $0xc8] sm:$0xff]  ;;  %2454 = vst.msk [vmem:[#allocation2 + $0xd9] sm:$0xff] %vm2437_vm13, %v2421_v60  ;;  %v2305_v9 = vpop.f32.mrf.mxu3  ;;  %2709 = vrot.lane.b32.xlu0 %v2628_v10, %s4981_s16  ;;  %2713 = vrot.lane.b32.xlu2 %v6299_v34, %s4981_s16  ;;  %v2563_v0 = vld [vmem:[#allocation2 + $0xc0] sm:$0xff] }
 0x3a0   : > { %v2519_v53 = vld [vmem:[#allocation2 + $0xcf] sm:$0x1]  ;;  %v2306_v21 = vadd.f32 %v6124_v14, %v2305_v9  ;;  %2595 = vst.msk [vmem:[#allocation3 + $0x80] sm:$0xff] %vm2437_vm13, %v2563_v0 }
 0x3a1   : > { %2596 = vst.msk [vmem:[#allocation3 + $0x88] sm:$0xff] %vm2437_vm13, %v2564_v23 }
 0x3a2   : > { %vm2361_vm6 = vcmp.ge.f32.partialorder %v2306_v21, 0.0  ;;  %v2393_v3 = vmul.f32 0.2, %v2306_v21  ;;  %v2684_v35 = vpop.permute.xlu2 %2683  ;;  %2537 = vst.msk [vmem:[#allocation2 + $0xd1] sm:$0x1] %vm2492_vm15, %v2519_v53 }
 0x3a3   : > { %2776 = vst.msk [vmem:[#allocation3 + $0x20] sm:$0xff] %vm2771_vm3, %v2684_v35 }
 0x3a4   : > { %v2425_v4 = vsel %vm2361_vm6, %v2306_v21, %v2393_v3  ;;  %v6316_v46 = vld [vmem:[#allocation2 + $0xf8] sm:$0xff]  ;;  %vm3543_vm6 = vcmask 392512  }
 0x3a5   : > { %2458 = vst.msk [vmem:[#allocation2 + $0x109] sm:$0xff] %vm2437_vm13, %v2425_v4  ;;  %v6314_v56 = vld [vmem:[#allocation2 + $0xf0] sm:$0xff]  ;;  %v2521_v27 = vld [vmem:[#allocation2 + $0xff] sm:$0x1] }
 0x3a6   : > { %v6318_v28 = vld [vmem:[#allocation2 + $0xd9] sm:$0xff]  ;;  %2599 = vst.msk [vmem:[#allocation3 + $0xa0] sm:$0xff] %vm2437_vm13, %v6314_v56 }
 0x3a7   : > { %v6320_v39 = vld [vmem:[#allocation2 + $0xe0] sm:$0xff]  ;;  %v2483_v18 = vld [vmem:[#allocation2 + $0xda] sm:$0x1]  ;;  %v2308_v43 = vpop.f32.mrf.mxu3  ;;  %2715 = vrot.lane.b32.xlu0 %v6312_v20, %s4981_s16  ;;  %2711 = vrot.lane.b32.xlu1 %v6318_v28, %s4981_s16  ;;  %2600 = vst.msk [vmem:[#allocation3 + $0xa8] sm:$0xff] %vm2437_vm13, %v6316_v46 }
 0x3a8   : > { %2598 = vst.msk [vmem:[#allocation3 + $0x98] sm:$0xff] %vm2437_vm13, %v6320_v39  ;;  %v2309_v26 = vadd.f32 %v6124_v14, %v2308_v43  ;;  %v6342_v22 = vld [vmem:[#allocation2 + $0xf9] sm:$0xff] }
 0x3a9   : > { %2502 = vst.msk [vmem:[#allocation2 + $0xd8] sm:$0x1] %vm2492_vm15, %v2483_v18  ;;  %v2676_v1 = vpop.permute.xlu1 %2675 }
 0x3aa   : > { %vm2362_vm7 = vcmp.ge.f32.partialorder %v2309_v26, 0.0  ;;  %v2394_v31 = vmul.f32 0.2, %v2309_v26  ;;  %2772 = vst.msk [vmem:[#allocation3] sm:$0xff] %vm2771_vm3, %v2676_v1  ;;  %v2690_v7 = vpop.permute.xlu2 %2689 }
 0x3ab   : > { %2779 = vst.msk [vmem:[#allocation3 + $0x38] sm:$0xff] %vm2771_vm3, %v2690_v7 }
 0x3ac   : > { %v2426_v8 = vsel %vm2362_vm7, %v2309_v26, %v2394_v31  ;;  %v6336_v40 = vld [vmem:[#allocation2 + $0x109] sm:$0xff]  ;;  %2539 = vst.msk [vmem:[#allocation2 + $0x101] sm:$0x1] %vm2492_vm15, %v2521_v27  ;;  %vm3736_vm7 = vcmask 458112  }
 0x3ad   : > { %v2485_v37 = vld [vmem:[#allocation2 + $0x10a] sm:$0x1]  ;;  %2459 = vst.msk [vmem:[#allocation2 + $0x111] sm:$0xff] %vm2437_vm13, %v2426_v8  ;;  %2719 = vrot.lane.b32.xlu2 %v6336_v40, %s4981_s16 }
 0x3ae   : > { %2504 = vst.msk [vmem:[#allocation2 + $0x108] sm:$0x1] %vm2492_vm15, %v2485_v37 }
 0x3af   : > { %v2311_v54 = vpop.f32.mrf.mxu3  ;;  %2717 = vrot.lane.b32.xlu1 %v6342_v22, %s4981_s16 }
 0x3b0   : > { %v6347_v45 = vld [vmem:[#allocation2 + $0xd8] sm:$0xff]  ;;  %v2312_v52 = vadd.f32 %v6124_v14, %v2311_v54 }
 0x3b1   : > { %2597 = vst.msk [vmem:[#allocation3 + $0x90] sm:$0xff] %vm2437_vm13, %v6347_v45  ;;  %v2682_v13 = vpop.permute.xlu1 %2681 }
 0x3b2   : > { %vm2363_vm8 = vcmp.ge.f32.partialorder %v2312_v52, 0.0  ;;  %v2395_v19 = vmul.f32 0.2, %v2312_v52  ;;  %v2686_v51 = vpop.permute.xlu0 %2685  ;;  %2775 = vst.msk [vmem:[#allocation3 + $0x18] sm:$0xff] %vm2771_vm3, %v2682_v13 }
 0x3b3   : > { %2777 = vst.msk [vmem:[#allocation3 + $0x28] sm:$0xff] %vm2771_vm3, %v2686_v51 }
 0x3b4   : > { %v2427_v57 = vsel %vm2363_vm8, %v2312_v52, %v2395_v19  ;;  %v6354_v61 = vld [vmem:[#allocation2 + $0x111] sm:$0xff] }
 0x3b5   : > { %v6356_v58 = vld [vmem:[#allocation2 + $0x110] sm:$0xff]  ;;  %2460 = vst.msk [vmem:[#allocation2 + $0x121] sm:$0xff] %vm2437_vm13, %v2427_v57  ;;  %2721 = vrot.lane.b32.xlu0 %v6354_v61, %s4981_s16  ;;  %v6361_v24 = vld [vmem:[#allocation2 + $0x108] sm:$0xff] }
 0x3b6   : > { %v2522_v48 = vld [vmem:[#allocation2 + $0x117] sm:$0x1]  ;;  %2601 = vst.msk [vmem:[#allocation3 + $0xb0] sm:$0xff] %vm2437_vm13, %v6361_v24 }
 0x3b7   : > { %v2314_v32 = vpop.f32.mrf.mxu3  ;;  %2602 = vst.msk [vmem:[#allocation3 + $0xb8] sm:$0xff] %vm2437_vm13, %v6356_v58 }
 0x3b8   : > { %v2315_v12 = vadd.f32 %v6124_v14, %v2314_v32  ;;  %2540 = vst.msk [vmem:[#allocation2 + $0x119] sm:$0x1] %vm2492_vm15, %v2522_v48 }
 0x3b9   : > { %v2688_v5 = vpop.permute.xlu1 %2687 }
 0x3ba   : > { %vm2364_vm9 = vcmp.ge.f32.partialorder %v2315_v12, 0.0  ;;  %v2396_v59 = vmul.f32 0.2, %v2315_v12  ;;  %2778 = vst.msk [vmem:[#allocation3 + $0x30] sm:$0xff] %vm2771_vm3, %v2688_v5 }
 0x3bc   : > { %v2428_v63 = vsel %vm2364_vm9, %v2315_v12, %v2396_v59  ;;  %v2635_v17 = vld [vmem:[#allocation2 + $0x121] sm:$0xff]  ;;  %vm3929_vm9 = vcmask 523712  }
 0x3bd   : > { %v2486_v60 = vld [vmem:[#allocation2 + $0x122] sm:$0x1]  ;;  %2461 = vst.msk [vmem:[#allocation2 + $0x129] sm:$0xff] %vm2437_vm13, %v2428_v63  ;;  %2723 = vrot.lane.b32.xlu1 %v2635_v17, %s4981_s16 }
 0x3be   : > { %2505 = vst.msk [vmem:[#allocation2 + $0x120] sm:$0x1] %vm2492_vm15, %v2486_v60  ;;  %v2116_v59 = vld [vmem:[#allocation3 + $0xf0] sm:$0xff] }
 0x3bf   : > { %v2317_v10 = vpop.f32.mrf.mxu3  ;;  %4877 = vmatmul.msk.f32.gmra.mxu3 %vm2127_vm11, %v2116_v59 }
 0x3c0   : > { %v2318_v23 = vadd.f32 %v6124_v14, %v2317_v10 }
 0x3c1   : > { %v2696_v9 = vpop.permute.xlu2 %2695 }
 0x3c2   : > { %vm2365_vm12 = vcmp.ge.f32.partialorder %v2318_v23, 0.0  ;;  %v2397_v0 = vmul.f32 0.2, %v2318_v23  ;;  %2782 = vst.msk [vmem:[#allocation3 + $0x50] sm:$0xff] %vm2771_vm3, %v2696_v9 }
 0x3c4   : > { %v2429_v53 = vsel %vm2365_vm12, %v2318_v23, %v2397_v0  ;;  %v2636_v21 = vld [vmem:[#allocation2 + $0x129] sm:$0xff]  ;;  %vm4122_vm12 = vcmask 589312  }
 0x3c5   : > { %v6375_v3 = vld [vmem:[#allocation2 + $0x128] sm:$0xff]  ;;  %2462 = vst.msk [vmem:[#allocation2 + $0x139] sm:$0xff] %vm2437_vm13, %v2429_v53  ;;  %2725 = vrot.lane.b32.xlu2 %v2636_v21, %s4981_s16  ;;  %v6379_v35 = vld [vmem:[#allocation2 + $0x120] sm:$0xff] }
 0x3c6   : > { %v2523_v4 = vld [vmem:[#allocation2 + $0x12f] sm:$0x1]  ;;  %2604 = vst.msk [vmem:[#allocation3 + $0xc8] sm:$0xff] %vm2437_vm13, %v6375_v3 }
 0x3c7   : > { %v2320_v18 = vpop.f32.mrf.mxu3  ;;  %2603 = vst.msk [vmem:[#allocation3 + $0xc0] sm:$0xff] %vm2437_vm13, %v6379_v35  ;;  %v2117_v53 = vld [vmem:[#allocation3 + $0xf8] sm:$0xff] }
 0x3c8   : > { %v2321_v43 = vadd.f32 %v6124_v14, %v2320_v18  ;;  %2541 = vst.msk [vmem:[#allocation2 + $0x131] sm:$0x1] %vm2492_vm15, %v2523_v4  ;;  %4878 = vmatmul.msk.f32.gmra.mxu3 %vm2127_vm11, %v2117_v53 }
 0x3c9   : > { %v2692_v26 = vpop.permute.xlu0 %2691 }
 0x3ca   : > { %vm2366_vm10 = vcmp.ge.f32.partialorder %v2321_v43, 0.0  ;;  %v2398_v1 = vmul.f32 0.2, %v2321_v43  ;;  %2780 = vst.msk [vmem:[#allocation3 + $0x40] sm:$0xff] %vm2771_vm3, %v2692_v26 }
 0x3cc   : > { %v2430_v27 = vsel %vm2366_vm10, %v2321_v43, %v2398_v1  ;;  %v2637_v31 = vld [vmem:[#allocation2 + $0x139] sm:$0xff]  ;;  %vm4200_vm10 = vcmask 588800  }
 0x3cd   : > { %v2487_v7 = vld [vmem:[#allocation2 + $0x13a] sm:$0x1]  ;;  %2463 = vst.msk [vmem:[#allocation2 + $0x141] sm:$0xff] %vm2437_vm13, %v2430_v27  ;;  %2727 = vrot.lane.b32.xlu0 %v2637_v31, %s4981_s16 }
 0x3ce   : > { %2506 = vst.msk [vmem:[#allocation2 + $0x138] sm:$0x1] %vm2492_vm15, %v2487_v7 }
 0x3cf   : > { %v2323_v8 = vpop.f32.mrf.mxu3 }
 0x3d0   : > { %v2324_v37 = vadd.f32 %v6124_v14, %v2323_v8 }
 0x3d1   : > { %v2694_v54 = vpop.permute.xlu1 %2693 }
 0x3d2   : > { %vm2367_vm14 = vcmp.ge.f32.partialorder %v2324_v37, 0.0  ;;  %v2399_v52 = vmul.f32 0.2, %v2324_v37  ;;  %2781 = vst.msk [vmem:[#allocation3 + $0x48] sm:$0xff] %vm2771_vm3, %v2694_v54  ;;  %v2804_v54 = vld [vmem:[#allocation2 + $0x2] sm:$0xff] }
 0x3d4   : > { %v2431_v13 = vsel %vm2367_vm14, %v2324_v37, %v2399_v52  ;;  %v2638_v19 = vld [vmem:[#allocation2 + $0x141] sm:$0xff] }
 0x3d5   : > { %v2574_v51 = vld [vmem:[#allocation2 + $0x140] sm:$0xff]  ;;  %2464 = vst.msk [vmem:[#allocation2 + $0x151] sm:$0xff] %vm2437_vm13, %v2431_v13  ;;  %2729 = vrot.lane.b32.xlu1 %v2638_v19, %s4981_s16  ;;  %v6395_v57 = vld [vmem:[#allocation2 + $0x138] sm:$0xff] }
 0x3d6   : > { %2605 = vst.msk [vmem:[#allocation3 + $0xd0] sm:$0xff] %vm2437_vm13, %v6395_v57  ;;  %v2524_v48 = vld [vmem:[#allocation2 + $0x147] sm:$0x1] }
 0x3d7   : > { %v2326_v32 = vpop.f32.mrf.mxu3  ;;  %2606 = vst.msk [vmem:[#allocation3 + $0xd8] sm:$0xff] %vm2437_vm13, %v2574_v51  ;;  %v2807_v51 = vld [vmem:[#allocation2 + $0x22] sm:$0xff] }
 0x3d8   : > { %v2327_v12 = vadd.f32 %v6124_v14, %v2326_v32  ;;  %2542 = vst.msk [vmem:[#allocation2 + $0x149] sm:$0x1] %vm2492_vm15, %v2524_v48  ;;  %v2805_v48 = vld [vmem:[#allocation2 + $0xa] sm:$0xff] }
 0x3d9   : > { %v2702_v5 = vpop.permute.xlu2 %2701 }
 0x3da   : > { %vm2368_vm0 = vcmp.ge.f32.partialorder %v2327_v12, 0.0  ;;  %v2400_v63 = vmul.f32 0.2, %v2327_v12  ;;  %2785 = vst.msk [vmem:[#allocation3 + $0x68] sm:$0xff] %vm2771_vm3, %v2702_v5 }
 0x3dc   : > { %v2432_v17 = vsel %vm2368_vm0, %v2327_v12, %v2400_v63  ;;  %v2639_v60 = vld [vmem:[#allocation2 + $0x151] sm:$0xff] }
 0x3dd   : > { %v2488_v10 = vld [vmem:[#allocation2 + $0x152] sm:$0x1]  ;;  %2465 = vst.msk [vmem:[#allocation2 + $0x159] sm:$0xff] %vm2437_vm13, %v2432_v17  ;;  %2731 = vrot.lane.b32.xlu2 %v2639_v60, %s4981_s16 }
 0x3de   : > { %2507 = vst.msk [vmem:[#allocation2 + $0x150] sm:$0x1] %vm2492_vm15, %v2488_v10  ;;  %v3383_v10 = vld [vmem:[#allocation2 + $0x1a] sm:$0xff] }
 0x3df   : > { %v2329_v23 = vpop.f32.mrf.mxu3 }
 0x3e0   : > { %v2330_v9 = vadd.f32 %v6124_v14, %v2329_v23 }
 0x3e1   : > { %v2698_v0 = vpop.permute.xlu0 %2697 }
 0x3e2   : > { %vm2369_vm1 = vcmp.ge.f32.partialorder %v2330_v9, 0.0  ;;  %v2401_v21 = vmul.f32 0.2, %v2330_v9  ;;  %2783 = vst.msk [vmem:[#allocation3 + $0x58] sm:$0xff] %vm2771_vm3, %v2698_v0 }
 0x3e4   : > { %v2433_v4 = vsel %vm2369_vm1, %v2330_v9, %v2401_v21  ;;  %v2640_v18 = vld [vmem:[#allocation2 + $0x159] sm:$0xff] }
 0x3e5   : > { %2472 = vst.msk [vmem:[#allocation2 + $0x199] sm:$0xff] %vm2437_vm13, %v2433_v4  ;;  %2733 = vrot.lane.b32.xlu0 %v2640_v18, %s4981_s16  ;;  %v2575_v43 = vld [vmem:[#allocation2 + $0x150] sm:$0xff]  ;;  %v2576_v26 = vld [vmem:[#allocation2 + $0x158] sm:$0xff] }
 0x3e6   : > { %2466 = vst.msk [vmem:[#allocation2 + $0x169] sm:$0xff] %vm2437_vm13, %v2433_v4  ;;  %v2525_v1 = vld [vmem:[#allocation2 + $0x15f] sm:$0x1]  ;;  %v3962_v9 = vld [vmem:[#allocation2 + $0x32] sm:$0xff]  ;;  %v6468_v4 = vld [vmem:[#allocation2 + $0x4a] sm:$0xff] }
 0x3e7   : > { %v2332_v27 = vpop.f32.mrf.mxu3  ;;  %2607 = vst.msk [vmem:[#allocation3 + $0xe0] sm:$0xff] %vm2437_vm13, %v2575_v43  ;;  %v6484_v43 = vld [vmem:[#allocation2 + $0x52] sm:$0xff] }
 0x3e8   : > { %v2333_v31 = vadd.f32 %v6124_v14, %v2332_v27  ;;  %2608 = vst.msk [vmem:[#allocation3 + $0xe8] sm:$0xff] %vm2437_vm13, %v2576_v26  ;;  %v4192_v27 = vld [vmem:[%s7563_s3 + $0x28] sm:$0xff] }
 0x3e9   : > { %v2700_v7 = vpop.permute.xlu1 %2699  ;;  %2543 = vst.msk [vmem:[#allocation2 + $0x161] sm:$0x1] %vm2492_vm15, %v2525_v1  ;;  %v6523_v1 = vld [vmem:[#allocation2 + $0xda] sm:$0xff] }
 0x3ea   : > { %vm2370_vm11 = vcmp.ge.f32.partialorder %v2333_v31, 0.0  ;;  %v2402_v8 = vmul.f32 0.2, %v2333_v31  ;;  %2784 = vst.msk [vmem:[#allocation3 + $0x60] sm:$0xff] %vm2771_vm3, %v2700_v7 }
 0x3ec   : > { %v2434_v37 = vsel %vm2370_vm11, %v2333_v31, %v2402_v8  ;;  %v2491_v19 = vld [vmem:[#allocation2 + $0x19a] sm:$0x1]  ;;  %v4191_v8 = vld [vmem:[%s7563_s3 + $0x20] sm:$0xff] }
 0x3ed   : > { %2473 = vst.msk [vmem:[#allocation2 + $0x1a1] sm:$0xff] %vm2437_vm13, %v2434_v37  ;;  %2868 = vrot.lane.b32.xlu0 %v2804_v54, %s4983_s18  ;;  %v2641_v52 = vld [vmem:[#allocation2 + $0x169] sm:$0xff] }
 0x3ee   : > { %v2489_v13 = vld [vmem:[#allocation2 + $0x16a] sm:$0x1]  ;;  %2467 = vst.msk [vmem:[#allocation2 + $0x171] sm:$0xff] %vm2437_vm13, %v2434_v37  ;;  %2735 = vrot.lane.b32.xlu1 %v2641_v52, %s4981_s16  ;;  %v4190_v37 = vld [vmem:[%s7563_s3 + $0x18] sm:$0xff]  ;;  %v6542_v54 = vld [vmem:[#allocation2 + $0x62] sm:$0xff] }
 0x3ef   : > { %2508 = vst.msk [vmem:[#allocation2 + $0x168] sm:$0x1] %vm2492_vm15, %v2489_v13  ;;  %v4189_v52 = vld [vmem:[%s7563_s3 + $0x10] sm:$0xff] }
 0x3f0   : > { %2510 = vst.msk [vmem:[#allocation2 + $0x198] sm:$0x1] %vm2492_vm15, %v2491_v19 }
 0x3f1   : > { %v2708_v14 = vpop.permute.xlu2 %2707 }
 0x3f2   : > { %2788 = vst.msk [vmem:[#allocation3 + $0x80] sm:$0xff] %vm2771_vm3, %v2708_v14 }
 0x3f4   : > { %v2528_v63 = vld [vmem:[#allocation2 + $0x1a7] sm:$0x1] }
 0x3f5   : > { %2874 = vrot.lane.b32.xlu0 %v2807_v51, %s4983_s18  ;;  %v2642_v32 = vld [vmem:[#allocation2 + $0x171] sm:$0xff]  ;;  %2546 = vst.msk [vmem:[#allocation2 + $0x1a9] sm:$0x1] %vm2492_vm15, %v2528_v63  ;;  %v4970_v63 = vld [vmem:[%s7562_s2] ss:$0 sm:$0xff] }
 0x3f6   : > { %v2578_v12 = vld [vmem:[#allocation2 + $0x170] sm:$0xff]  ;;  %2870 = vrot.lane.b32.xlu1 %v2805_v48, %s4983_s18  ;;  %2737 = vrot.lane.b32.xlu2 %v2642_v32, %s4981_s16  ;;  %v2577_v5 = vld [vmem:[#allocation2 + $0x168] sm:$0xff]  ;;  %s4989_s16 = smov 64  }
 0x3f7   : > { %2610 = vst.msk [vmem:[#allocation3 + $0xf8] sm:$0xff] %vm2437_vm13, %v2578_v12  ;;  %v2526_v59 = vld [vmem:[#allocation2 + $0x177] sm:$0x1]  ;;  %v2821_v32 = vld [vmem:[#allocation2 + $0xca] sm:$0xff] }
 0x3f8   : > { %2609 = vst.msk [vmem:[#allocation3 + $0xf0] sm:$0xff] %vm2437_vm13, %v2577_v5  ;;  %v6561_v48 = vld [vmem:[#allocation2 + $0xf2] sm:$0xff] }
 0x3f9   : > { %2544 = vst.msk [vmem:[#allocation2 + $0x179] sm:$0x1] %vm2492_vm15, %v2526_v59  ;;  %v2704_v17 = vpop.permute.xlu0 %2703  ;;  %v2714_v60 = vpop.permute.xlu2 %2713 }
 0x3fa   : > { %2786 = vst.msk [vmem:[#allocation3 + $0x70] sm:$0xff] %vm2771_vm3, %v2704_v17 }
 0x3fb   : > { %2791 = vst.msk [vmem:[#allocation3 + $0x98] sm:$0xff] %vm2771_vm3, %v2714_v60 }
 0x3fd   : > { %3447 = vrot.lane.b32.xlu0 %v3383_v10, %s4988_s19 }
 0x3fe   : > { %3061 = vrot.lane.b32.xlu1 %v6151_v62, %s4985_s20  ;;  %2872 = vrot.lane.b32.xlu2 %v3383_v10, %s4983_s18 }
 0x401   : > { %v2706_v23 = vpop.permute.xlu1 %2705 }
 0x402   : > { %2787 = vst.msk [vmem:[#allocation3 + $0x78] sm:$0xff] %vm2771_vm3, %v2706_v23 }
 0x405   : > { %4026 = vrot.lane.b32.xlu0 %v3962_v9, %s4989_s16 }
 0x406   : > { %3254 = vrot.lane.b32.xlu2 %v6137_v41, %s4987_s22  ;;  %3640 = vrot.lane.b32.xlu1 %v6180_v2, %s4990_s21  ;;  %v6451_v41 = vld [vmem:[#allocation2 + $0x3a] sm:$0xff] }
 0x407   : > { %v2720_v0 = vpop.permute.xlu2 %2719 }
 0x408   : > { %2794 = vst.msk [vmem:[#allocation3 + $0xb0] sm:$0xff] %vm2771_vm3, %v2720_v0 }
 0x40d   : > { %3449 = vrot.lane.b32.xlu0 %v2807_v51, %s4988_s19  ;;  %v4188_v51 = vld [vmem:[%s7563_s3 + $0x8] sm:$0xff] }
 0x40e   : > { %3833 = vrot.lane.b32.xlu2 %v6195_v25, %s4991_s23  ;;  %3063 = vrot.lane.b32.xlu1 %v6148_v36, %s4985_s20 }
 0x411   : > { %v2710_v62 = vpop.permute.xlu0 %2709 }
 0x412   : > { %2789 = vst.msk [vmem:[#allocation3 + $0x88] sm:$0xff] %vm2771_vm3, %v2710_v62 }
 0x415   : > { %4028 = vrot.lane.b32.xlu0 %v6451_v41, %s4989_s16 }
 0x416   : > { %3256 = vrot.lane.b32.xlu2 %v6169_v33, %s4987_s22  ;;  %3642 = vrot.lane.b32.xlu1 %v6182_v55, %s4990_s21 }
 0x419   : > { %v2716_v53 = vpop.permute.xlu0 %2715  ;;  %v2712_v21 = vpop.permute.xlu1 %2711 }
 0x41a   : > { %2792 = vst.msk [vmem:[#allocation3 + $0xa0] sm:$0xff] %vm2771_vm3, %v2716_v53 }
 0x41b   : > { %2790 = vst.msk [vmem:[#allocation3 + $0x90] sm:$0xff] %vm2771_vm3, %v2712_v21 }
 0x41d   : > { %3451 = vrot.lane.b32.xlu0 %v3962_v9, %s4988_s19 }
 0x41e   : > { %3835 = vrot.lane.b32.xlu2 %v6173_v38, %s4991_s23  ;;  %3065 = vrot.lane.b32.xlu1 %v6180_v2, %s4985_s20 }
 0x41f   : > { %v2726_v36 = vpop.permute.xlu2 %2725 }
 0x420   : > { %2797 = vst.msk [vmem:[#allocation3 + $0xc8] sm:$0xff] %vm2771_vm3, %v2726_v36 }
 0x421   : > { %v2718_v33 = vpop.permute.xlu1 %2717 }
 0x422   : > { %2793 = vst.msk [vmem:[#allocation3 + $0xa8] sm:$0xff] %vm2771_vm3, %v2718_v33 }
 0x425   : > { %4030 = vrot.lane.b32.xlu0 %v6468_v4, %s4989_s16 }
 0x426   : > { %3258 = vrot.lane.b32.xlu2 %v6195_v25, %s4987_s22  ;;  %3644 = vrot.lane.b32.xlu1 %v6212_v29, %s4990_s21 }
 0x427   : > { %v2722_v18 = vpop.permute.xlu0 %2721 }
 0x428   : > { %2795 = vst.msk [vmem:[#allocation3 + $0xb8] sm:$0xff] %vm2771_vm3, %v2722_v18  ;;  %v6592_v18 = vld [vmem:[#allocation2 + $0x6a] sm:$0xff] }
 0x42d   : > { %3453 = vrot.lane.b32.xlu0 %v6451_v41, %s4988_s19 }
 0x42e   : > { %3837 = vrot.lane.b32.xlu2 %v6193_v50, %s4991_s23  ;;  %3067 = vrot.lane.b32.xlu1 %v6182_v55, %s4985_s20 }
 0x42f   : > { %v2724_v2 = vpop.permute.xlu1 %2723 }
 0x430   : > { %2796 = vst.msk [vmem:[#allocation3 + $0xc0] sm:$0xff] %vm2771_vm3, %v2724_v2 }
 0x435   : > { %4032 = vrot.lane.b32.xlu0 %v6484_v43, %s4989_s16 }
 0x436   : > { %3260 = vrot.lane.b32.xlu2 %v6173_v38, %s4987_s22  ;;  %3646 = vrot.lane.b32.xlu1 %v6207_v47, %s4990_s21  ;;  %v2820_v38 = vld [vmem:[#allocation2 + $0xc2] sm:$0xff] }
 0x437   : > { %v2732_v25 = vpop.permute.xlu2 %2731 }
 0x438   : > { %2800 = vst.msk [vmem:[#allocation3 + $0xe0] sm:$0xff] %vm2771_vm3, %v2732_v25 }
 0x43d   : > { %3069 = vrot.lane.b32.xlu0 %v6212_v29, %s4985_s20 }
 0x43e   : > { %3839 = vrot.lane.b32.xlu2 %v6205_v44, %s4991_s23  ;;  %2876 = vrot.lane.b32.xlu1 %v3962_v9, %s4983_s18 }
 0x43f   : > { %v2728_v55 = vpop.permute.xlu0 %2727 }
 0x440   : > { %2798 = vst.msk [vmem:[#allocation3 + $0xd0] sm:$0xff] %vm2771_vm3, %v2728_v55 }
 0x445   : > { %3286 = vrot.lane.b32.xlu0 %v6318_v28, %s4987_s22  ;;  %v4195_v28 = vld [vmem:[%s7563_s3 + $0x40] sm:$0xff] }
 0x446   : > { %2900 = vrot.lane.b32.xlu2 %v2820_v38, %s4983_s18  ;;  %3093 = vrot.lane.b32.xlu1 %v6347_v45, %s4985_s20  ;;  %v4194_v45 = vld [vmem:[%s7563_s3 + $0x38] sm:$0xff] }
 0x447   : > { %v2730_v26 = vpop.permute.xlu1 %2729  ;;  %4304 = vmatpush.msra.mxu1 %v4195_v28  ;;  %4923 = vmatpush.msra.mxu2 %v4195_v28 }
 0x448   : > { %2799 = vst.msk [vmem:[#allocation3 + $0xd8] sm:$0xff] %vm2771_vm3, %v2730_v26  ;;  %4924 = vmatpush.msrb.mxu3 %v4195_v28 }
 0x449   : > { %4305 = vmatpush.msra.mxu1 %v4194_v45  ;;  %4925 = vmatpush.msra.mxu2 %v4194_v45 }
 0x44a   : > { %4926 = vmatpush.msrb.mxu3 %v4194_v45 }
 0x44d   : > { %3648 = vrot.lane.b32.xlu0 %v6236_v49, %s4990_s21 }
 0x44e   : > { %3262 = vrot.lane.b32.xlu2 %v6193_v50, %s4987_s22  ;;  %3455 = vrot.lane.b32.xlu1 %v6468_v4, %s4988_s19  ;;  %v4193_v50 = vld [vmem:[%s7563_s3 + $0x30] sm:$0xff] }
 0x44f   : > { %4306 = vmatpush.msra.mxu1 %v4193_v50  ;;  %4927 = vmatpush.msra.mxu2 %v4193_v50 }
 0x450   : > { %v2738_v29 = vpop.permute.xlu2 %2737  ;;  %4928 = vmatpush.msrb.mxu3 %v4193_v50  ;;  %v3196_v50 = vld [vmem:[#allocation2 + $0x61] sm:$0xff] }
 0x451   : > { %2803 = vst.msk [vmem:[#allocation3 + $0xf8] sm:$0xff] %vm2771_vm3, %v2738_v29  ;;  %4307 = vmatpush.msra.mxu1 %v4192_v27  ;;  %4929 = vmatpush.msra.mxu2 %v4192_v27 }
 0x452   : > { %4930 = vmatpush.msrb.mxu3 %v4192_v27 }
 0x453   : > { %4308 = vmatpush.msra.mxu1 %v4191_v8  ;;  %4931 = vmatpush.msra.mxu2 %v4191_v8 }
 0x454   : > { %4932 = vmatpush.msrb.mxu3 %v4191_v8 }
 0x455   : > { %3865 = vrot.lane.b32.xlu0 %v6312_v20, %s4991_s23  ;;  %4309 = vmatpush.msra.mxu1 %v4190_v37 }
 0x456   : > { %3479 = vrot.lane.b32.xlu2 %v6523_v1, %s4988_s19  ;;  %3672 = vrot.lane.b32.xlu1 %v6314_v56, %s4990_s21 }
 0x457   : > { %v2734_v31 = vpop.permute.xlu0 %2733  ;;  %4933 = vmatpush.msra.mxu2 %v4190_v37  ;;  %4310 = vmatpush.msra.mxu1 %v4189_v52 }
 0x458   : > { %2801 = vst.msk [vmem:[#allocation3 + $0xe8] sm:$0xff] %vm2771_vm3, %v2734_v31  ;;  %v2873_v7 = vpop.permute.xlu2 %2872  ;;  %4934 = vmatpush.msrb.mxu3 %v4190_v37  ;;  %v6636_v37 = vld [vmem:[#allocation2 + $0x79] sm:$0xff] }
 0x459   : > { %2967 = vst.msk [vmem:[#allocation3 + $0x10] sm:$0xff] %vm2964_vm2, %v2873_v7  ;;  %4935 = vmatpush.msra.mxu2 %v4189_v52  ;;  %4311 = vmatpush.msra.mxu1 %v4188_v51 }
 0x45a   : > { %4936 = vmatpush.msrb.mxu3 %v4189_v52 }
 0x45b   : > { %4937 = vmatpush.msra.mxu2 %v4188_v51 }
 0x45c   : > { %4938 = vmatpush.msrb.mxu3 %v4188_v51 }
 0x45d   : > { %2878 = vrot.lane.b32.xlu0 %v6451_v41, %s4983_s18 }
 0x45e   : > { %3841 = vrot.lane.b32.xlu2 %v6221_v30, %s4991_s23  ;;  %4034 = vrot.lane.b32.xlu1 %v6542_v54, %s4989_s16  ;;  %v4187_v30 = vld [vmem:[%s7563_s3] sm:$0xff] }
 0x45f   : > { %v2869_v13 = vpop.permute.xlu0 %2868  ;;  %4312 = vmatpush.msra.mxu1 %v4187_v30  ;;  %4939 = vmatpush.msra.mxu2 %v4187_v30 }
 0x460   : > { %2965 = vst.msk [vmem:[#allocation3] sm:$0xff] %vm2964_vm2, %v2869_v13  ;;  %v2736_v19 = vpop.permute.xlu1 %2735  ;;  %v3255_v14 = vpop.permute.xlu2 %3254  ;;  %4940 = vmatpush.msrb.mxu3 %v4187_v30  ;;  %v6662_v30 = vld [vmem:[#allocation2 + $0x7a] sm:$0xff] }
 0x461   : > { %2802 = vst.msk [vmem:[#allocation3 + $0xf0] sm:$0xff] %vm2771_vm3, %v2736_v19  ;;  %vm3157_vm3 = vcmask 261312   ;;  %v6649_v19 = vld [vmem:[#allocation2 + $0x10a] sm:$0xff] }
 0x465   : > { %3095 = vrot.lane.b32.xlu0 %v6320_v39, %s4985_s20  ;;  %v2335_v39 = vpop.f32.mrf.mxu3 }
 0x466   : > { %4058 = vrot.lane.b32.xlu2 %v6561_v48, %s4989_s16  ;;  %2902 = vrot.lane.b32.xlu1 %v2821_v32, %s4983_s18  ;;  %v2336_v17 = vadd.f32 %v4970_v63, %v2335_v39  ;;  %v3197_v39 = vld [vmem:[#allocation2 + $0x69] sm:$0xff] }
 0x467   : > { %v2875_v12 = vpop.permute.xlu0 %2874 }
 0x468   : > { %2968 = vst.msk [vmem:[#allocation3 + $0x18] sm:$0xff] %vm2964_vm2, %v2875_v12  ;;  %v2871_v5 = vpop.permute.xlu1 %2870  ;;  %v3834_v59 = vpop.permute.xlu2 %3833  ;;  %vm2371_vm4 = vcmp.ge.f32.partialorder %v2336_v17, 0.0  ;;  %v2403_v60 = vmul.f32 0.2, %v2336_v17 }
 0x469   : > { %2966 = vst.msk [vmem:[#allocation3 + $0x8] sm:$0xff] %vm2964_vm2, %v2871_v5 }
 0x46a   : > { %v2435_v0 = vsel %vm2371_vm4, %v2336_v17, %v2403_v60 }
 0x46b   : > { %2468 = vst.msk [vmem:[#allocation2 + $0x181] sm:$0xff] %vm2437_vm13, %v2435_v0 }
 0x46d   : > { %3457 = vrot.lane.b32.xlu0 %v6484_v43, %s4988_s19  ;;  %v2338_v62 = vpop.f32.mrf.mxu3 }
 0x46e   : > { %3071 = vrot.lane.b32.xlu2 %v6207_v47, %s4985_s20  ;;  %3264 = vrot.lane.b32.xlu1 %v6205_v44, %s4987_s22  ;;  %v2339_v47 = vadd.f32 %v4970_v63, %v2338_v62  ;;  %v6583_v44 = vld [vmem:[#allocation2 + $0xe2] sm:$0xff]  ;;  %v6714_v62 = vld [vmem:[#allocation2 + $0x112] sm:$0xff] }
 0x46f   : > { %v3448_v10 = vpop.permute.xlu0 %3447 }
 0x470   : > { %v3062_v23 = vpop.permute.xlu1 %3061  ;;  %v3257_v9 = vpop.permute.xlu2 %3256  ;;  %vm2372_vm8 = vcmp.ge.f32.partialorder %v2339_v47, 0.0  ;;  %v2404_v41 = vmul.f32 0.2, %v2339_v47 }
 0x471   : > { %3158 = vst.msk [vmem:[#allocation3] sm:$0xff] %vm3157_vm3, %v3062_v23 }
 0x472   : > { %3351 = vst.msk [vmem:[#allocation3] sm:$0xff] %vm3350_vm5, %v3255_v14  ;;  %v2436_v33 = vsel %vm2372_vm8, %v2339_v47, %v2404_v41  ;;  %v2490_v38 = vld [vmem:[#allocation2 + $0x182] sm:$0x1] }
 0x473   : > { %3544 = vst.msk [vmem:[#allocation3] sm:$0xff] %vm3543_vm6, %v3448_v10  ;;  %v6700_v10 = vld [vmem:[#allocation2 + $0x81] sm:$0xff] }
 0x474   : > { %2469 = vst.msk [vmem:[#allocation2 + $0x189] sm:$0xff] %vm2437_vm13, %v2436_v33  ;;  %v3210_v33 = vld [vmem:[#allocation2 + $0x109] sm:$0xff] }
 0x475   : > { %3674 = vrot.lane.b32.xlu0 %v6316_v46, %s4990_s21  ;;  %2509 = vst.msk [vmem:[#allocation2 + $0x180] sm:$0x1] %vm2492_vm15, %v2490_v38  ;;  %v6745_v38 = vld [vmem:[#allocation2 + $0x91] sm:$0xff] }
 0x476   : > { %3288 = vrot.lane.b32.xlu2 %v6299_v34, %s4987_s22  ;;  %3481 = vrot.lane.b32.xlu1 %v6583_v44, %s4988_s19 }
 0x477   : > { %v4027_v53 = vpop.permute.xlu0 %4026 }
 0x478   : > { %v3836_v21 = vpop.permute.xlu2 %3835  ;;  %v3641_v36 = vpop.permute.xlu1 %3640 }
 0x479   : > { %3737 = vst.msk [vmem:[#allocation3] sm:$0xff] %vm3736_vm7, %v3641_v36 }
 0x47a   : > { %3930 = vst.msk [vmem:[#allocation3] sm:$0xff] %vm3929_vm9, %v3834_v59 }
 0x47b   : > { %4123 = vst.msk [vmem:[#allocation3] sm:$0xff] %vm4122_vm12, %v4027_v53  ;;  %v2527_v26 = vld [vmem:[#allocation2 + $0x18f] sm:$0x1] }
 0x47c   : > { %2545 = vst.msk [vmem:[#allocation2 + $0x191] sm:$0x1] %vm2492_vm15, %v2527_v26 }
 0x47d   : > { %4036 = vrot.lane.b32.xlu0 %v6592_v18, %s4989_s16 }
 0x47e   : > { %3650 = vrot.lane.b32.xlu2 %v6231_v6, %s4990_s21  ;;  %3843 = vrot.lane.b32.xlu1 %v6229_v42, %s4991_s23  ;;  %v6608_v42 = vld [vmem:[#allocation2 + $0xfa] sm:$0xff] }
 0x47f   : > { %v3450_v34 = vpop.permute.xlu0 %3449 }
 0x480   : > { %v3259_v2 = vpop.permute.xlu2 %3258  ;;  %v3064_v25 = vpop.permute.xlu1 %3063 }
 0x481   : > { %3159 = vst.msk [vmem:[#allocation3 + $0x8] sm:$0xff] %vm3157_vm3, %v3064_v25 }
 0x482   : > { %3352 = vst.msk [vmem:[#allocation3 + $0x8] sm:$0xff] %vm3350_vm5, %v3257_v9  ;;  %v4155_v55 = vld [vmem:[#allocation3] sm:$0xff] }
 0x483   : > { %3545 = vst.msk [vmem:[#allocation3 + $0x8] sm:$0xff] %vm3543_vm6, %v3450_v34  ;;  %4879 = vmatmul.msk.f32.vlgmr.msra.gmra.mxu1 %vm4200_vm10, %v4155_v55  ;;  %v6741_v55 = vld [vmem:[#allocation2 + $0x92] sm:$0xff] }
 0x485   : > { %2904 = vrot.lane.b32.xlu0 %v6523_v1, %s4983_s18 }
 0x486   : > { %3867 = vrot.lane.b32.xlu2 %v6342_v22, %s4991_s23  ;;  %4060 = vrot.lane.b32.xlu1 %v6608_v42, %s4989_s16 }
 0x487   : > { %v4029_v29 = vpop.permute.xlu0 %4028 }
 0x488   : > { %v3838_v28 = vpop.permute.xlu2 %3837  ;;  %v3643_v45 = vpop.permute.xlu1 %3642 }
 0x489   : > { %3738 = vst.msk [vmem:[#allocation3 + $0x8] sm:$0xff] %vm3736_vm7, %v3643_v45  ;;  %v6755_v45 = vld [vmem:[#allocation2 + $0x121] sm:$0xff] }
 0x48a   : > { %3931 = vst.msk [vmem:[#allocation3 + $0x8] sm:$0xff] %vm3929_vm9, %v3836_v21 }
 0x48b   : > { %4124 = vst.msk [vmem:[#allocation3 + $0x8] sm:$0xff] %vm4122_vm12, %v4029_v29 }
 0x48d   : > { %3266 = vrot.lane.b32.xlu0 %v3196_v50, %s4987_s22  ;;  %v6757_v50 = vld [vmem:[#allocation2 + $0x122] sm:$0xff] }
 0x48e   : > { %2880 = vrot.lane.b32.xlu2 %v6468_v4, %s4983_s18  ;;  %3073 = vrot.lane.b32.xlu1 %v6236_v49, %s4985_s20 }
 0x48f   : > { %v3452_v1 = vpop.permute.xlu0 %3451 }
 0x490   : > { %v3261_v27 = vpop.permute.xlu2 %3260  ;;  %v3066_v31 = vpop.permute.xlu1 %3065 }
 0x491   : > { %3160 = vst.msk [vmem:[#allocation3 + $0x10] sm:$0xff] %vm3157_vm3, %v3066_v31 }
 0x492   : > { %3353 = vst.msk [vmem:[#allocation3 + $0x10] sm:$0xff] %vm3350_vm5, %v3259_v2  ;;  %v4156_v7 = vld [vmem:[#allocation3 + $0x8] sm:$0xff] }
 0x493   : > { %3546 = vst.msk [vmem:[#allocation3 + $0x10] sm:$0xff] %vm3543_vm6, %v3452_v1  ;;  %4880 = vmatmul.msk.f32.gmra.mxu1 %vm4200_vm10, %v4156_v7  ;;  %v6772_v7 = vld [vmem:[%s7564_s4] ss:$0 sm:$0xff] }
 0x495   : > { %3483 = vrot.lane.b32.xlu0 %v6561_v48, %s4988_s19 }
 0x496   : > { %3097 = vrot.lane.b32.xlu2 %v6314_v56, %s4985_s20  ;;  %3290 = vrot.lane.b32.xlu1 %v6312_v20, %s4987_s22 }
 0x497   : > { %v4031_v49 = vpop.permute.xlu0 %4030 }
 0x498   : > { %v3840_v4 = vpop.permute.xlu2 %3839  ;;  %v3645_v8 = vpop.permute.xlu1 %3644 }
 0x499   : > { %3739 = vst.msk [vmem:[#allocation3 + $0x10] sm:$0xff] %vm3736_vm7, %v3645_v8 }
 0x49a   : > { %3932 = vst.msk [vmem:[#allocation3 + $0x10] sm:$0xff] %vm3929_vm9, %v3838_v28 }
 0x49b   : > { %4125 = vst.msk [vmem:[#allocation3 + $0x10] sm:$0xff] %vm4122_vm12, %v4031_v49 }
 0x49d   : > { %3845 = vrot.lane.b32.xlu0 %v6636_v37, %s4991_s23 }
 0x49e   : > { %3459 = vrot.lane.b32.xlu2 %v6542_v54, %s4988_s19  ;;  %3652 = vrot.lane.b32.xlu1 %v6253_v11, %s4990_s21 }
 0x49f   : > { %v3454_v20 = vpop.permute.xlu0 %3453 }
 0x4a0   : > { %v2901_v56 = vpop.permute.xlu2 %2900  ;;  %v3068_v52 = vpop.permute.xlu1 %3067 }
 0x4a1   : > { %2981 = vst.msk [vmem:[#allocation3 + $0x80] sm:$0xff] %vm2964_vm2, %v2901_v56 }
 0x4a2   : > { %3161 = vst.msk [vmem:[#allocation3 + $0x18] sm:$0xff] %vm3157_vm3, %v3068_v52  ;;  %v4157_v13 = vld [vmem:[#allocation3 + $0x10] sm:$0xff] }
 0x4a3   : > { %3354 = vst.msk [vmem:[#allocation3 + $0x18] sm:$0xff] %vm3350_vm5, %v3261_v27  ;;  %4881 = vmatmul.msk.f32.gmra.mxu1 %vm4200_vm10, %v4157_v13  ;;  %v3211_v13 = vld [vmem:[#allocation2 + $0x111] sm:$0xff] }
 0x4a4   : > { %3547 = vst.msk [vmem:[#allocation3 + $0x18] sm:$0xff] %vm3543_vm6, %v3454_v20 }
 0x4a5   : > { %4062 = vrot.lane.b32.xlu0 %v6649_v19, %s4989_s16 }
 0x4a6   : > { %3676 = vrot.lane.b32.xlu2 %v6361_v24, %s4990_s21  ;;  %3869 = vrot.lane.b32.xlu1 %v6336_v40, %s4991_s23 }
 0x4a7   : > { %v4033_v11 = vpop.permute.xlu0 %4032 }
 0x4a8   : > { %v3263_v14 = vpop.permute.xlu2 %3262  ;;  %v3647_v51 = vpop.permute.xlu1 %3646 }
 0x4a9   : > { %3740 = vst.msk [vmem:[#allocation3 + $0x18] sm:$0xff] %vm3736_vm7, %v3647_v51 }
 0x4aa   : > { %3933 = vst.msk [vmem:[#allocation3 + $0x18] sm:$0xff] %vm3929_vm9, %v3840_v4 }
 0x4ab   : > { %4126 = vst.msk [vmem:[#allocation3 + $0x18] sm:$0xff] %vm4122_vm12, %v4033_v11 }
 0x4ad   : > { %3075 = vrot.lane.b32.xlu0 %v6231_v6, %s4985_s20 }
 0x4ae   : > { %4038 = vrot.lane.b32.xlu2 %v6662_v30, %s4989_s16  ;;  %2882 = vrot.lane.b32.xlu1 %v6484_v43, %s4983_s18 }
 0x4af   : > { %v3070_v40 = vpop.permute.xlu0 %3069 }
 0x4b0   : > { %v3480_v32 = vpop.permute.xlu2 %3479  ;;  %v2877_v12 = vpop.permute.xlu1 %2876 }
 0x4b1   : > { %2969 = vst.msk [vmem:[#allocation3 + $0x20] sm:$0xff] %vm2964_vm2, %v2877_v12 }
 0x4b2   : > { %3162 = vst.msk [vmem:[#allocation3 + $0x20] sm:$0xff] %vm3157_vm3, %v3070_v40  ;;  %v4158_v5 = vld [vmem:[#allocation3 + $0x18] sm:$0xff]  ;;  %v6791_v40 = vld [vmem:[#allocation2 + $0x99] sm:$0xff] }
 0x4b3   : > { %3355 = vst.msk [vmem:[#allocation3 + $0x20] sm:$0xff] %vm3350_vm5, %v3263_v14  ;;  %4882 = vmatmul.msk.f32.gmra.mxu1 %vm4200_vm10, %v4158_v5 }
 0x4b5   : > { %3292 = vrot.lane.b32.xlu0 %v6342_v22, %s4987_s22 }
 0x4b6   : > { %2906 = vrot.lane.b32.xlu2 %v6583_v44, %s4983_s18  ;;  %3099 = vrot.lane.b32.xlu1 %v6316_v46, %s4985_s20 }
 0x4b7   : > { %v3287_v6 = vpop.permute.xlu0 %3286 }
 0x4b8   : > { %v3842_v43 = vpop.permute.xlu2 %3841  ;;  %v3094_v59 = vpop.permute.xlu1 %3093 }
 0x4b9   : > { %3174 = vst.msk [vmem:[#allocation3 + $0x80] sm:$0xff] %vm3157_vm3, %v3094_v59 }
 0x4ba   : > { %3367 = vst.msk [vmem:[#allocation3 + $0x80] sm:$0xff] %vm3350_vm5, %v3287_v6 }
 0x4bb   : > { %3560 = vst.msk [vmem:[#allocation3 + $0x80] sm:$0xff] %vm3543_vm6, %v3480_v32  ;;  %v6795_v32 = vld [vmem:[#allocation2 + $0x98] sm:$0xff] }
 0x4bd   : > { %3654 = vrot.lane.b32.xlu0 %v6249_v15, %s4990_s21 }
 0x4be   : > { %3268 = vrot.lane.b32.xlu2 %v3197_v39, %s4987_s22  ;;  %3461 = vrot.lane.b32.xlu1 %v6592_v18, %s4988_s19  ;;  %v6806_v39 = vld [vmem:[#allocation2 + $0x12a] sm:$0xff] }
 0x4bf   : > { %v3649_v22 = vpop.permute.xlu0 %3648 }
 0x4c0   : > { %v4059_v46 = vpop.permute.xlu2 %4058  ;;  %v3456_v63 = vpop.permute.xlu1 %3455 }
 0x4c1   : > { %3548 = vst.msk [vmem:[#allocation3 + $0x20] sm:$0xff] %vm3543_vm6, %v3456_v63 }
 0x4c2   : > { %3741 = vst.msk [vmem:[#allocation3 + $0x20] sm:$0xff] %vm3736_vm7, %v3649_v22 }
 0x4c3   : > { %3934 = vst.msk [vmem:[#allocation3 + $0x20] sm:$0xff] %vm3929_vm9, %v3842_v43 }
 0x4c5   : > { %3871 = vrot.lane.b32.xlu0 %v6354_v61, %s4991_s23  ;;  %v6702_v61 = vld [vmem:[#allocation2 + $0x82] sm:$0xff] }
 0x4c6   : > { %3485 = vrot.lane.b32.xlu2 %v6608_v42, %s4988_s19  ;;  %3678 = vrot.lane.b32.xlu1 %v6356_v58, %s4990_s21 }
 0x4c7   : > { %v3866_v15 = vpop.permute.xlu0 %3865 }
 0x4c8   : > { %v3072_v17 = vpop.permute.xlu2 %3071  ;;  %v3673_v60 = vpop.permute.xlu1 %3672 }
 0x4c9   : > { %3753 = vst.msk [vmem:[#allocation3 + $0x80] sm:$0xff] %vm3736_vm7, %v3673_v60 }
 0x4ca   : > { %3946 = vst.msk [vmem:[#allocation3 + $0x80] sm:$0xff] %vm3929_vm9, %v3866_v15 }
 0x4cb   : > { %4139 = vst.msk [vmem:[#allocation3 + $0x80] sm:$0xff] %vm4122_vm12, %v4059_v46  ;;  %v6810_v46 = vld [vmem:[#allocation2 + $0x129] sm:$0xff] }
 0x4cd   : > { %2884 = vrot.lane.b32.xlu0 %v6542_v54, %s4983_s18 }
 0x4ce   : > { %3847 = vrot.lane.b32.xlu2 %v6700_v10, %s4991_s23  ;;  %4040 = vrot.lane.b32.xlu1 %v6702_v61, %s4989_s16 }
 0x4cf   : > { %v2879_v23 = vpop.permute.xlu0 %2878 }
 0x4d0   : > { %2970 = vst.msk [vmem:[#allocation3 + $0x28] sm:$0xff] %vm2964_vm2, %v2879_v23  ;;  %v3289_v9 = vpop.permute.xlu2 %3288  ;;  %v4035_v0 = vpop.permute.xlu1 %4034  ;;  %v6821_v23 = vld [vmem:[#allocation2 + $0x9a] sm:$0xff] }
 0x4d1   : > { %3163 = vst.msk [vmem:[#allocation3 + $0x28] sm:$0xff] %vm3157_vm3, %v3072_v17 }
 0x4d2   : > { %4127 = vst.msk [vmem:[#allocation3 + $0x20] sm:$0xff] %vm4122_vm12, %v4035_v0  ;;  %v4171_v54 = vld [vmem:[#allocation3 + $0x80] sm:$0xff] }
 0x4d3   : > { %4895 = vmatmul.msk.f32.vlgmr.msra.gmra.mxu2 %vm4200_vm10, %v4171_v54 }
 0x4d5   : > { %3101 = vrot.lane.b32.xlu0 %v6361_v24, %s4985_s20  ;;  %v3005_v24 = vld [vmem:[#allocation2 + $0x78] sm:$0xff] }
 0x4d6   : > { %4064 = vrot.lane.b32.xlu2 %v6714_v62, %s4989_s16  ;;  %2908 = vrot.lane.b32.xlu1 %v6561_v48, %s4983_s18 }
 0x4d7   : > { %v3096_v47 = vpop.permute.xlu0 %3095 }
 0x4d8   : > { %v3651_v44 = vpop.permute.xlu2 %3650  ;;  %v2903_v41 = vpop.permute.xlu1 %2902 }
 0x4d9   : > { %2982 = vst.msk [vmem:[#allocation3 + $0x88] sm:$0xff] %vm2964_vm2, %v2903_v41  ;;  %v4159_v53 = vld [vmem:[#allocation3 + $0x20] sm:$0xff] }
 0x4da   : > { %3175 = vst.msk [vmem:[#allocation3 + $0x88] sm:$0xff] %vm3157_vm3, %v3096_v47  ;;  %4883 = vmatmul.msk.f32.gmra.mxu1 %vm4200_vm10, %v4159_v53 }
 0x4db   : > { %3368 = vst.msk [vmem:[#allocation3 + $0x88] sm:$0xff] %vm3350_vm5, %v3289_v9 }
 0x4dd   : > { %3463 = vrot.lane.b32.xlu0 %v6662_v30, %s4988_s19 }
 0x4de   : > { %3077 = vrot.lane.b32.xlu2 %v3005_v24, %s4985_s20  ;;  %3270 = vrot.lane.b32.xlu1 %v6636_v37, %s4987_s22 }
 0x4df   : > { %v3458_v48 = vpop.permute.xlu0 %3457 }
 0x4e0   : > { %v3868_v21 = vpop.permute.xlu2 %3867  ;;  %v3265_v36 = vpop.permute.xlu1 %3264 }
 0x4e1   : > { %3356 = vst.msk [vmem:[#allocation3 + $0x28] sm:$0xff] %vm3350_vm5, %v3265_v36 }
 0x4e2   : > { %3549 = vst.msk [vmem:[#allocation3 + $0x28] sm:$0xff] %vm3543_vm6, %v3458_v48 }
 0x4e3   : > { %3742 = vst.msk [vmem:[#allocation3 + $0x28] sm:$0xff] %vm3736_vm7, %v3651_v44 }
 0x4e5   : > { %3680 = vrot.lane.b32.xlu0 %v6379_v35, %s4990_s21 }
 0x4e6   : > { %3294 = vrot.lane.b32.xlu2 %v3210_v33, %s4987_s22  ;;  %3487 = vrot.lane.b32.xlu1 %v6649_v19, %s4988_s19 }
 0x4e7   : > { %v3675_v34 = vpop.permute.xlu0 %3674 }
 0x4e8   : > { %v2881_v2 = vpop.permute.xlu2 %2880  ;;  %v3482_v25 = vpop.permute.xlu1 %3481 }
 0x4e9   : > { %2971 = vst.msk [vmem:[#allocation3 + $0x30] sm:$0xff] %vm2964_vm2, %v2881_v2 }
 0x4ea   : > { %3561 = vst.msk [vmem:[#allocation3 + $0x88] sm:$0xff] %vm3543_vm6, %v3482_v25  ;;  %v6854_v25 = vld [vmem:[#allocation2 + $0x139] sm:$0xff] }
 0x4eb   : > { %3754 = vst.msk [vmem:[#allocation3 + $0x88] sm:$0xff] %vm3736_vm7, %v3675_v34 }
 0x4ec   : > { %3947 = vst.msk [vmem:[#allocation3 + $0x88] sm:$0xff] %vm3929_vm9, %v3868_v21  ;;  %v6842_v21 = vld [vmem:[#allocation2 + $0xa8] sm:$0xff] }
 0x4ed   : > { %4042 = vrot.lane.b32.xlu0 %v6741_v55, %s4989_s16 }
 0x4ee   : > { %3656 = vrot.lane.b32.xlu2 %v6269_v16, %s4990_s21  ;;  %3849 = vrot.lane.b32.xlu1 %v6745_v38, %s4991_s23 }
 0x4ef   : > { %v4037_v26 = vpop.permute.xlu0 %4036 }
 0x4f0   : > { %v3098_v29 = vpop.permute.xlu2 %3097  ;;  %v3844_v28 = vpop.permute.xlu1 %3843 }
 0x4f1   : > { %3935 = vst.msk [vmem:[#allocation3 + $0x28] sm:$0xff] %vm3929_vm9, %v3844_v28 }
 0x4f2   : > { %4128 = vst.msk [vmem:[#allocation3 + $0x28] sm:$0xff] %vm4122_vm12, %v4037_v26 }
 0x4f5   : > { %2910 = vrot.lane.b32.xlu0 %v6608_v42, %s4983_s18  ;;  %v3006_v42 = vld [vmem:[#allocation2 + $0x80] sm:$0xff] }
 0x4f6   : > { %3873 = vrot.lane.b32.xlu2 %v6755_v45, %s4991_s23  ;;  %4066 = vrot.lane.b32.xlu1 %v6757_v50, %s4989_s16 }
 0x4f7   : > { %v2905_v16 = vpop.permute.xlu0 %2904 }
 0x4f8   : > { %2983 = vst.msk [vmem:[#allocation3 + $0x90] sm:$0xff] %vm2964_vm2, %v2905_v16  ;;  %v3460_v1 = vpop.permute.xlu2 %3459  ;;  %v4061_v27 = vpop.permute.xlu1 %4060  ;;  %v6870_v16 = vld [vmem:[#allocation2 + $0xaa] sm:$0xff] }
 0x4f9   : > { %3176 = vst.msk [vmem:[#allocation3 + $0x90] sm:$0xff] %vm3157_vm3, %v3098_v29  ;;  %v4160_v31 = vld [vmem:[#allocation3 + $0x28] sm:$0xff] }
 0x4fa   : > { %4140 = vst.msk [vmem:[#allocation3 + $0x88] sm:$0xff] %vm4122_vm12, %v4061_v27  ;;  %4884 = vmatmul.msk.f32.gmra.mxu1 %vm4200_vm10, %v4160_v31  ;;  %v3020_v31 = vld [vmem:[#allocation2 + $0x128] sm:$0xff] }
 0x4fd   : > { %3272 = vrot.lane.b32.xlu0 %v6700_v10, %s4987_s22  ;;  %v3007_v10 = vld [vmem:[#allocation2 + $0x90] sm:$0xff] }
 0x4fe   : > { %2886 = vrot.lane.b32.xlu2 %v6592_v18, %s4983_s18  ;;  %3079 = vrot.lane.b32.xlu1 %v3006_v42, %s4985_s20  ;;  %v6881_v42 = vld [vmem:[#allocation2 + $0x13a] sm:$0xff] }
 0x4ff   : > { %v3267_v49 = vpop.permute.xlu0 %3266 }
 0x500   : > { %v3677_v4 = vpop.permute.xlu2 %3676  ;;  %v4314_v8 = vpop.f32.mrf.mxu1 }
 0x501   : > { %v4315_v37 = vadd.f32 %v6772_v7, %v4314_v8  ;;  %v3074_v20 = vpop.permute.xlu1 %3073  ;;  %v4172_v56 = vld [vmem:[#allocation3 + $0x88] sm:$0xff] }
 0x502   : > { %3164 = vst.msk [vmem:[#allocation3 + $0x30] sm:$0xff] %vm3157_vm3, %v3074_v20  ;;  %4896 = vmatmul.msk.f32.gmra.mxu2 %vm4200_vm10, %v4172_v56 }
 0x503   : > { %vm4410_vm15 = vcmp.ge.f32.partialorder %v4315_v37, 0.0  ;;  %v4442_v52 = vmul.f32 0.2, %v4315_v37  ;;  %3357 = vst.msk [vmem:[#allocation3 + $0x30] sm:$0xff] %vm3350_vm5, %v3267_v49 }
 0x504   : > { %3550 = vst.msk [vmem:[#allocation3 + $0x30] sm:$0xff] %vm3543_vm6, %v3460_v1 }
 0x505   : > { %v4474_v18 = vsel %vm4410_vm15, %v4315_v37, %v4442_v52  ;;  %3489 = vrot.lane.b32.xlu0 %v6714_v62, %s4988_s19  ;;  %v6900_v52 = vld [vmem:[#allocation2 + $0x140] sm:$0xff] }
 0x506   : > { %4506 = vst.msk [vmem:[#allocation4] sm:$0xff] %vm2437_vm13, %v4474_v18  ;;  %3103 = vrot.lane.b32.xlu2 %v6356_v58, %s4985_s20  ;;  %3296 = vrot.lane.b32.xlu1 %v3211_v13, %s4987_s22 }
 0x507   : > { %v3484_v11 = vpop.permute.xlu0 %3483 }
 0x508   : > { %v4039_v14 = vpop.permute.xlu2 %4038 }
 0x509   : > { %v3291_v51 = vpop.permute.xlu1 %3290 }
 0x50a   : > { %3369 = vst.msk [vmem:[#allocation3 + $0x90] sm:$0xff] %vm3350_vm5, %v3291_v51 }
 0x50b   : > { %3562 = vst.msk [vmem:[#allocation3 + $0x90] sm:$0xff] %vm3543_vm6, %v3484_v11 }
 0x50c   : > { %3755 = vst.msk [vmem:[#allocation3 + $0x90] sm:$0xff] %vm3736_vm7, %v3677_v4 }
 0x50d   : > { %3851 = vrot.lane.b32.xlu0 %v6791_v40, %s4991_s23 }
 0x50e   : > { %3465 = vrot.lane.b32.xlu2 %v6702_v61, %s4988_s19  ;;  %3658 = vrot.lane.b32.xlu1 %v6795_v32, %s4990_s21 }
 0x50f   : > { %v3846_v58 = vpop.permute.xlu0 %3845 }
 0x510   : > { %v2907_v12 = vpop.permute.xlu2 %2906  ;;  %v4317_v5 = vpop.f32.mrf.mxu1 }
 0x511   : > { %2984 = vst.msk [vmem:[#allocation3 + $0x98] sm:$0xff] %vm2964_vm2, %v2907_v12  ;;  %v4318_v6 = vadd.f32 %v6772_v7, %v4317_v5  ;;  %v3653_v43 = vpop.permute.xlu1 %3652 }
 0x512   : > { %3743 = vst.msk [vmem:[#allocation3 + $0x30] sm:$0xff] %vm3736_vm7, %v3653_v43  ;;  %v6914_v43 = vld [vmem:[#allocation2 + $0xb2] sm:$0xff] }
 0x513   : > { %vm4411_vm14 = vcmp.ge.f32.partialorder %v4318_v6, 0.0  ;;  %v4443_v59 = vmul.f32 0.2, %v4318_v6  ;;  %3936 = vst.msk [vmem:[#allocation3 + $0x30] sm:$0xff] %vm3929_vm9, %v3846_v58 }
 0x514   : > { %4129 = vst.msk [vmem:[#allocation3 + $0x30] sm:$0xff] %vm4122_vm12, %v4039_v14 }
 0x515   : > { %v4475_v22 = vsel %vm4411_vm14, %v4318_v6, %v4443_v59  ;;  %4068 = vrot.lane.b32.xlu0 %v6806_v39, %s4989_s16  ;;  %v6919_v59 = vld [vmem:[#allocation2 + $0xb0] sm:$0xff] }
 0x516   : > { %4507 = vst.msk [vmem:[#allocation4 + $0x8] sm:$0xff] %vm2437_vm13, %v4475_v22  ;;  %3682 = vrot.lane.b32.xlu2 %v6375_v3, %s4990_s21  ;;  %3875 = vrot.lane.b32.xlu1 %v6810_v46, %s4991_s23  ;;  %v6921_v22 = vld [vmem:[#allocation2 + $0xb1] sm:$0xff] }
 0x517   : > { %v4063_v63 = vpop.permute.xlu0 %4062 }
 0x518   : > { %v3269_v15 = vpop.permute.xlu2 %3268 }
 0x519   : > { %v3870_v17 = vpop.permute.xlu1 %3869 }
 0x51a   : > { %3948 = vst.msk [vmem:[#allocation3 + $0x90] sm:$0xff] %vm3929_vm9, %v3870_v17  ;;  %v6932_v17 = vld [vmem:[#allocation2 + $0x141] sm:$0xff] }
 0x51b   : > { %4141 = vst.msk [vmem:[#allocation3 + $0x90] sm:$0xff] %vm4122_vm12, %v4063_v63  ;;  %v4161_v60 = vld [vmem:[#allocation3 + $0x30] sm:$0xff] }
 0x51c   : > { %4885 = vmatmul.msk.f32.gmra.mxu1 %vm4200_vm10, %v4161_v60  ;;  %v6934_v60 = vld [vmem:[#allocation2 + $0x142] sm:$0xff] }
 0x51d   : > { %3081 = vrot.lane.b32.xlu0 %v3007_v10, %s4985_s20 }
 0x51e   : > { %4044 = vrot.lane.b32.xlu2 %v6821_v23, %s4989_s16  ;;  %2888 = vrot.lane.b32.xlu1 %v6662_v30, %s4983_s18 }
 0x51f   : > { %v3076_v3 = vpop.permute.xlu0 %3075 }
 0x520   : > { %v3486_v9 = vpop.permute.xlu2 %3485  ;;  %v4320_v0 = vpop.f32.mrf.mxu1 }
 0x521   : > { %v4321_v54 = vadd.f32 %v6772_v7, %v4320_v0  ;;  %v2883_v47 = vpop.permute.xlu1 %2882 }
 0x522   : > { %2972 = vst.msk [vmem:[#allocation3 + $0x38] sm:$0xff] %vm2964_vm2, %v2883_v47  ;;  %v4173_v44 = vld [vmem:[#allocation3 + $0x90] sm:$0xff] }
 0x523   : > { %vm4412_vm0 = vcmp.ge.f32.partialorder %v4321_v54, 0.0  ;;  %v4444_v41 = vmul.f32 0.2, %v4321_v54  ;;  %3165 = vst.msk [vmem:[#allocation3 + $0x38] sm:$0xff] %vm3157_vm3, %v3076_v3  ;;  %4897 = vmatmul.msk.f32.gmra.mxu2 %vm4200_vm10, %v4173_v44 }
 0x524   : > { %3358 = vst.msk [vmem:[#allocation3 + $0x38] sm:$0xff] %vm3350_vm5, %v3269_v15 }
 0x525   : > { %v4476_v53 = vsel %vm4412_vm0, %v4321_v54, %v4444_v41  ;;  %3298 = vrot.lane.b32.xlu0 %v6755_v45, %s4987_s22  ;;  %v6868_v45 = vld [vmem:[#allocation2 + $0xa9] sm:$0xff]  ;;  %v3021_v41 = vld [vmem:[#allocation2 + $0x138] sm:$0xff] }
 0x526   : > { %4508 = vst.msk [vmem:[#allocation4 + $0x10] sm:$0xff] %vm2437_vm13, %v4476_v53  ;;  %2912 = vrot.lane.b32.xlu2 %v6649_v19, %s4983_s18  ;;  %3105 = vrot.lane.b32.xlu1 %v6379_v35, %s4985_s20 }
 0x527   : > { %v3293_v30 = vpop.permute.xlu0 %3292 }
 0x528   : > { %v3848_v24 = vpop.permute.xlu2 %3847 }
 0x529   : > { %v3100_v48 = vpop.permute.xlu1 %3099 }
 0x52a   : > { %3177 = vst.msk [vmem:[#allocation3 + $0x98] sm:$0xff] %vm3157_vm3, %v3100_v48 }
 0x52b   : > { %3370 = vst.msk [vmem:[#allocation3 + $0x98] sm:$0xff] %vm3350_vm5, %v3293_v30 }
 0x52c   : > { %3563 = vst.msk [vmem:[#allocation3 + $0x98] sm:$0xff] %vm3543_vm6, %v3486_v9 }
 0x52d   : > { %3660 = vrot.lane.b32.xlu0 %v6842_v21, %s4990_s21 }
 0x52e   : > { %3274 = vrot.lane.b32.xlu2 %v6745_v38, %s4987_s22  ;;  %3467 = vrot.lane.b32.xlu1 %v6741_v55, %s4988_s19 }
 0x52f   : > { %v3655_v35 = vpop.permute.xlu0 %3654 }
 0x530   : > { %v4065_v19 = vpop.permute.xlu2 %4064  ;;  %v4323_v36 = vpop.f32.mrf.mxu1 }
 0x531   : > { %v4324_v33 = vadd.f32 %v6772_v7, %v4323_v36  ;;  %v3462_v34 = vpop.permute.xlu1 %3461  ;;  %v6968_v36 = vld [vmem:[#allocation2 + $0xc0] sm:$0xff] }
 0x532   : > { %3551 = vst.msk [vmem:[#allocation3 + $0x38] sm:$0xff] %vm3543_vm6, %v3462_v34 }
 0x533   : > { %vm4413_vm1 = vcmp.ge.f32.partialorder %v4324_v33, 0.0  ;;  %v4445_v2 = vmul.f32 0.2, %v4324_v33  ;;  %3744 = vst.msk [vmem:[#allocation3 + $0x38] sm:$0xff] %vm3736_vm7, %v3655_v35 }
 0x534   : > { %3937 = vst.msk [vmem:[#allocation3 + $0x38] sm:$0xff] %vm3929_vm9, %v3848_v24 }
 0x535   : > { %v4477_v38 = vsel %vm4413_vm1, %v4324_v33, %v4445_v2  ;;  %3877 = vrot.lane.b32.xlu0 %v6854_v25, %s4991_s23 }
 0x536   : > { %4509 = vst.msk [vmem:[#allocation4 + $0x18] sm:$0xff] %vm2437_vm13, %v4477_v38  ;;  %3491 = vrot.lane.b32.xlu2 %v6757_v50, %s4988_s19  ;;  %3684 = vrot.lane.b32.xlu1 %v6395_v57, %s4990_s21 }
 0x537   : > { %v3872_v26 = vpop.permute.xlu0 %3871 }
 0x538   : > { %v3078_v29 = vpop.permute.xlu2 %3077 }
 0x539   : > { %v3679_v28 = vpop.permute.xlu1 %3678 }
 0x53a   : > { %3756 = vst.msk [vmem:[#allocation3 + $0x98] sm:$0xff] %vm3736_vm7, %v3679_v28 }
 0x53b   : > { %3949 = vst.msk [vmem:[#allocation3 + $0x98] sm:$0xff] %vm3929_vm9, %v3872_v26  ;;  %v6982_v26 = vld [vmem:[#allocation2 + $0x150] sm:$0xff] }
 0x53c   : > { %4142 = vst.msk [vmem:[#allocation3 + $0x98] sm:$0xff] %vm4122_vm12, %v4065_v19  ;;  %v6963_v19 = vld [vmem:[#allocation2 + $0xc1] sm:$0xff] }
 0x53d   : > { %2890 = vrot.lane.b32.xlu0 %v6702_v61, %s4983_s18 }
 0x53e   : > { %3853 = vrot.lane.b32.xlu2 %v6868_v45, %s4991_s23  ;;  %4046 = vrot.lane.b32.xlu1 %v6870_v16, %s4989_s16 }
 0x53f   : > { %v2885_v57 = vpop.permute.xlu0 %2884 }
 0x540   : > { %2973 = vst.msk [vmem:[#allocation3 + $0x40] sm:$0xff] %vm2964_vm2, %v2885_v57  ;;  %v3295_v1 = vpop.permute.xlu2 %3294 }
 0x541   : > { %3166 = vst.msk [vmem:[#allocation3 + $0x40] sm:$0xff] %vm3157_vm3, %v3078_v29  ;;  %v4041_v27 = vpop.permute.xlu1 %4040  ;;  %v6984_v29 = vld [vmem:[#allocation2 + $0x151] sm:$0xff] }
 0x542   : > { %4130 = vst.msk [vmem:[#allocation3 + $0x38] sm:$0xff] %vm4122_vm12, %v4041_v27 }
 0x543   : > { %v4174_v61 = vld [vmem:[#allocation3 + $0x98] sm:$0xff] }
 0x544   : > { %4898 = vmatmul.msk.f32.gmra.mxu2 %vm4200_vm10, %v4174_v61 }
 0x545   : > { %3107 = vrot.lane.b32.xlu0 %v3020_v31, %s4985_s20 }
 0x546   : > { %4070 = vrot.lane.b32.xlu2 %v6881_v42, %s4989_s16  ;;  %2914 = vrot.lane.b32.xlu1 %v6714_v62, %s4983_s18 }
 0x547   : > { %v3102_v49 = vpop.permute.xlu0 %3101 }
 0x548   : > { %v3657_v4 = vpop.permute.xlu2 %3656 }
 0x549   : > { %v2909_v8 = vpop.permute.xlu1 %2908  ;;  %v4162_v37 = vld [vmem:[#allocation3 + $0x38] sm:$0xff] }
 0x54a   : > { %2985 = vst.msk [vmem:[#allocation3 + $0xa0] sm:$0xff] %vm2964_vm2, %v2909_v8  ;;  %4886 = vmatmul.msk.f32.gmra.mxu1 %vm4200_vm10, %v4162_v37 }
 0x54b   : > { %3178 = vst.msk [vmem:[#allocation3 + $0xa0] sm:$0xff] %vm3157_vm3, %v3102_v49  ;;  %v6997_v49 = vld [vmem:[#allocation2 + $0xc2] sm:$0xff] }
 0x54c   : > { %3371 = vst.msk [vmem:[#allocation3 + $0xa0] sm:$0xff] %vm3350_vm5, %v3295_v1 }
 0x54d   : > { %3469 = vrot.lane.b32.xlu0 %v6821_v23, %s4988_s19 }
 0x54e   : > { %3083 = vrot.lane.b32.xlu2 %v6795_v32, %s4985_s20  ;;  %3276 = vrot.lane.b32.xlu1 %v6791_v40, %s4987_s22 }
 0x54f   : > { %v3464_v62 = vpop.permute.xlu0 %3463 }
 0x550   : > { %v3874_v20 = vpop.permute.xlu2 %3873 }
 0x551   : > { %v3271_v56 = vpop.permute.xlu1 %3270 }
 0x552   : > { %3359 = vst.msk [vmem:[#allocation3 + $0x40] sm:$0xff] %vm3350_vm5, %v3271_v56 }
 0x553   : > { %3552 = vst.msk [vmem:[#allocation3 + $0x40] sm:$0xff] %vm3543_vm6, %v3464_v62 }
 0x554   : > { %3745 = vst.msk [vmem:[#allocation3 + $0x40] sm:$0xff] %vm3736_vm7, %v3657_v4 }
 0x555   : > { %3686 = vrot.lane.b32.xlu0 %v6900_v52, %s4990_s21 }
 0x556   : > { %3300 = vrot.lane.b32.xlu2 %v6810_v46, %s4987_s22  ;;  %3493 = vrot.lane.b32.xlu1 %v6806_v39, %s4988_s19  ;;  %v4362_v18 = vpop.f32.mrf.mxu2 }
 0x557   : > { %v4326_v13 = vpop.f32.mrf.mxu1  ;;  %v4363_v11 = vadd.f32 %v6772_v7, %v4362_v18  ;;  %v3681_v14 = vpop.permute.xlu0 %3680 }
 0x558   : > { %v4327_v51 = vadd.f32 %v6772_v7, %v4326_v13  ;;  %v2887_v40 = vpop.permute.xlu2 %2886 }
 0x559   : > { %vm4426_vm11 = vcmp.ge.f32.partialorder %v4363_v11, 0.0  ;;  %v4458_v32 = vmul.f32 0.2, %v4363_v11  ;;  %2974 = vst.msk [vmem:[#allocation3 + $0x48] sm:$0xff] %vm2964_vm2, %v2887_v40  ;;  %v3488_v58 = vpop.permute.xlu1 %3487 }
 0x55a   : > { %vm4414_vm4 = vcmp.ge.f32.partialorder %v4327_v51, 0.0  ;;  %v4446_v12 = vmul.f32 0.2, %v4327_v51  ;;  %3564 = vst.msk [vmem:[#allocation3 + $0xa0] sm:$0xff] %vm3543_vm6, %v3488_v58  ;;  %v7033_v58 = vld [vmem:[#allocation2 + $0x158] sm:$0xff] }
 0x55b   : > { %v4490_v5 = vsel %vm4426_vm11, %v4363_v11, %v4458_v32  ;;  %3757 = vst.msk [vmem:[#allocation3 + $0xa0] sm:$0xff] %vm3736_vm7, %v3681_v14  ;;  %v7017_v14 = vld [vmem:[#allocation2 + $0xc8] sm:$0xff]  ;;  %v7029_v32 = vld [vmem:[#allocation2 + $0x159] sm:$0xff] }
 0x55c   : > { %v4478_v6 = vsel %vm4414_vm4, %v4327_v51, %v4446_v12  ;;  %4522 = vst.msk [vmem:[#allocation4 + $0x80] sm:$0xff] %vm2437_vm13, %v4490_v5 }
 0x55d   : > { %4510 = vst.msk [vmem:[#allocation4 + $0x20] sm:$0xff] %vm2437_vm13, %v4478_v6  ;;  %4048 = vrot.lane.b32.xlu0 %v6914_v43, %s4989_s16 }
 0x55e   : > { %3950 = vst.msk [vmem:[#allocation3 + $0xa0] sm:$0xff] %vm3929_vm9, %v3874_v20  ;;  %3662 = vrot.lane.b32.xlu2 %v6919_v59, %s4990_s21  ;;  %3855 = vrot.lane.b32.xlu1 %v6921_v22, %s4991_s23 }
 0x55f   : > { %v4043_v46 = vpop.permute.xlu0 %4042 }
 0x560   : > { %v3104_v63 = vpop.permute.xlu2 %3103 }
 0x561   : > { %v3850_v15 = vpop.permute.xlu1 %3849 }
 0x562   : > { %3938 = vst.msk [vmem:[#allocation3 + $0x40] sm:$0xff] %vm3929_vm9, %v3850_v15  ;;  %v7046_v15 = vld [vmem:[#allocation2 + $0xc9] sm:$0xff] }
 0x563   : > { %4131 = vst.msk [vmem:[#allocation3 + $0x40] sm:$0xff] %vm4122_vm12, %v4043_v46 }
 0x565   : > { %2916 = vrot.lane.b32.xlu0 %v6757_v50, %s4983_s18 }
 0x566   : > { %3879 = vrot.lane.b32.xlu2 %v6932_v17, %s4991_s23  ;;  %4072 = vrot.lane.b32.xlu1 %v6934_v60, %s4989_s16 }
 0x567   : > { %v2911_v10 = vpop.permute.xlu0 %2910 }
 0x568   : > { %2986 = vst.msk [vmem:[#allocation3 + $0xa8] sm:$0xff] %vm2964_vm2, %v2911_v10  ;;  %v3466_v3 = vpop.permute.xlu2 %3465 }
 0x569   : > { %3179 = vst.msk [vmem:[#allocation3 + $0xa8] sm:$0xff] %vm3157_vm3, %v3104_v63  ;;  %v4067_v9 = vpop.permute.xlu1 %4066 }
 0x56a   : > { %4143 = vst.msk [vmem:[#allocation3 + $0xa0] sm:$0xff] %vm4122_vm12, %v4067_v9  ;;  %v4163_v50 = vld [vmem:[#allocation3 + $0x40] sm:$0xff] }
 0x56b   : > { %4887 = vmatmul.msk.f32.gmra.mxu1 %vm4200_vm10, %v4163_v50  ;;  %v7060_v50 = vld [vmem:[#allocation2 + $0x15a] sm:$0xff] }
 0x56d   : > { %3278 = vrot.lane.b32.xlu0 %v6868_v45, %s4987_s22 }
 0x56e   : > { %2892 = vrot.lane.b32.xlu2 %v6741_v55, %s4983_s18  ;;  %3085 = vrot.lane.b32.xlu1 %v6842_v21, %s4985_s20 }
 0x56f   : > { %v3273_v0 = vpop.permute.xlu0 %3272 }
 0x570   : > { %v3683_v54 = vpop.permute.xlu2 %3682 }
 0x571   : > { %v3080_v47 = vpop.permute.xlu1 %3079  ;;  %v4175_v44 = vld [vmem:[#allocation3 + $0xa0] sm:$0xff] }
 0x572   : > { %3167 = vst.msk [vmem:[#allocation3 + $0x48] sm:$0xff] %vm3157_vm3, %v3080_v47  ;;  %4899 = vmatmul.msk.f32.gmra.mxu2 %vm4200_vm10, %v4175_v44 }
 0x573   : > { %3360 = vst.msk [vmem:[#allocation3 + $0x48] sm:$0xff] %vm3350_vm5, %v3273_v0 }
 0x574   : > { %3553 = vst.msk [vmem:[#allocation3 + $0x48] sm:$0xff] %vm3543_vm6, %v3466_v3 }
 0x575   : > { %3495 = vrot.lane.b32.xlu0 %v6881_v42, %s4988_s19 }
 0x576   : > { %3109 = vrot.lane.b32.xlu2 %v3021_v41, %s4985_s20  ;;  %3302 = vrot.lane.b32.xlu1 %v6854_v25, %s4987_s22  ;;  %v6978_v25 = vld [vmem:[#allocation2 + $0x152] sm:$0xff] }
 0x577   : > { %v4329_v55 = vpop.f32.mrf.mxu1  ;;  %v3490_v53 = vpop.permute.xlu0 %3489 }
 0x578   : > { %v4330_v30 = vadd.f32 %v6772_v7, %v4329_v55  ;;  %v4045_v24 = vpop.permute.xlu2 %4044 }
 0x579   : > { %v3297_v48 = vpop.permute.xlu1 %3296 }
 0x57a   : > { %vm4415_vm8 = vcmp.ge.f32.partialorder %v4330_v30, 0.0  ;;  %v4447_v21 = vmul.f32 0.2, %v4330_v30  ;;  %3372 = vst.msk [vmem:[#allocation3 + $0xa8] sm:$0xff] %vm3350_vm5, %v3297_v48 }
 0x57b   : > { %3565 = vst.msk [vmem:[#allocation3 + $0xa8] sm:$0xff] %vm3543_vm6, %v3490_v53  ;;  %v7079_v53 = vld [vmem:[#allocation2 + $0x168] sm:$0xff] }
 0x57c   : > { %v4479_v35 = vsel %vm4415_vm8, %v4330_v30, %v4447_v21  ;;  %3758 = vst.msk [vmem:[#allocation3 + $0xa8] sm:$0xff] %vm3736_vm7, %v3683_v54 }
 0x57d   : > { %4511 = vst.msk [vmem:[#allocation4 + $0x28] sm:$0xff] %vm2437_vm13, %v4479_v35  ;;  %3857 = vrot.lane.b32.xlu0 %v6963_v19, %s4991_s23 }
 0x57e   : > { %3471 = vrot.lane.b32.xlu2 %v6870_v16, %s4988_s19  ;;  %3664 = vrot.lane.b32.xlu1 %v6968_v36, %s4990_s21 }
 0x57f   : > { %v3852_v33 = vpop.permute.xlu0 %3851 }
 0x580   : > { %v2913_v34 = vpop.permute.xlu2 %2912 }
 0x581   : > { %2987 = vst.msk [vmem:[#allocation3 + $0xb0] sm:$0xff] %vm2964_vm2, %v2913_v34  ;;  %v3659_v2 = vpop.permute.xlu1 %3658 }
 0x582   : > { %3746 = vst.msk [vmem:[#allocation3 + $0x48] sm:$0xff] %vm3736_vm7, %v3659_v2 }
 0x583   : > { %3939 = vst.msk [vmem:[#allocation3 + $0x48] sm:$0xff] %vm3929_vm9, %v3852_v33 }
 0x584   : > { %4132 = vst.msk [vmem:[#allocation3 + $0x48] sm:$0xff] %vm4122_vm12, %v4045_v24 }
 0x585   : > { %v4365_v38 = vpop.f32.mrf.mxu2  ;;  %4074 = vrot.lane.b32.xlu0 %v6978_v25, %s4989_s16 }
 0x586   : > { %v4366_v28 = vadd.f32 %v6772_v7, %v4365_v38  ;;  %3688 = vrot.lane.b32.xlu2 %v6982_v26, %s4990_s21  ;;  %3881 = vrot.lane.b32.xlu1 %v6984_v29, %s4991_s23 }
 0x587   : > { %v4069_v45 = vpop.permute.xlu0 %4068 }
 0x588   : > { %vm4427_vm15 = vcmp.ge.f32.partialorder %v4366_v28, 0.0  ;;  %v4459_v57 = vmul.f32 0.2, %v4366_v28  ;;  %v3275_v1 = vpop.permute.xlu2 %3274 }
 0x589   : > { %v3876_v27 = vpop.permute.xlu1 %3875 }
 0x58a   : > { %v4491_v61 = vsel %vm4427_vm15, %v4366_v28, %v4459_v57  ;;  %3951 = vst.msk [vmem:[#allocation3 + $0xa8] sm:$0xff] %vm3929_vm9, %v3876_v27  ;;  %v3783_v28 = vld [vmem:[#allocation2 + $0xd9] sm:$0xff]  ;;  %v7102_v27 = vld [vmem:[#allocation2 + $0x169] sm:$0xff] }
 0x58b   : > { %4523 = vst.msk [vmem:[#allocation4 + $0x88] sm:$0xff] %vm2437_vm13, %v4491_v61  ;;  %v4164_v31 = vld [vmem:[#allocation3 + $0x48] sm:$0xff]  ;;  %v7104_v61 = vld [vmem:[#allocation2 + $0x16a] sm:$0xff] }
 0x58c   : > { %4144 = vst.msk [vmem:[#allocation3 + $0xa8] sm:$0xff] %vm4122_vm12, %v4069_v45  ;;  %4888 = vmatmul.msk.f32.gmra.mxu1 %vm4200_vm10, %v4164_v31 }
 0x58d   : > { %3087 = vrot.lane.b32.xlu0 %v6919_v59, %s4985_s20 }
 0x58e   : > { %4050 = vrot.lane.b32.xlu2 %v6997_v49, %s4989_s16  ;;  %2894 = vrot.lane.b32.xlu1 %v6821_v23, %s4983_s18 }
 0x58f   : > { %v3082_v4 = vpop.permute.xlu0 %3081 }
 0x590   : > { %v3492_v8 = vpop.permute.xlu2 %3491 }
 0x591   : > { %v2889_v37 = vpop.permute.xlu1 %2888 }
 0x592   : > { %2975 = vst.msk [vmem:[#allocation3 + $0x50] sm:$0xff] %vm2964_vm2, %v2889_v37 }
 0x593   : > { %3168 = vst.msk [vmem:[#allocation3 + $0x50] sm:$0xff] %vm3157_vm3, %v3082_v4  ;;  %v4176_v62 = vld [vmem:[#allocation3 + $0xa8] sm:$0xff] }
 0x594   : > { %3361 = vst.msk [vmem:[#allocation3 + $0x50] sm:$0xff] %vm3350_vm5, %v3275_v1  ;;  %4900 = vmatmul.msk.f32.gmra.mxu2 %vm4200_vm10, %v4176_v62 }
 0x595   : > { %3304 = vrot.lane.b32.xlu0 %v6932_v17, %s4987_s22  ;;  %v7048_v17 = vld [vmem:[#allocation2 + $0xca] sm:$0xff] }
 0x596   : > { %2918 = vrot.lane.b32.xlu2 %v6806_v39, %s4983_s18  ;;  %3111 = vrot.lane.b32.xlu1 %v6900_v52, %s4985_s20 }
 0x597   : > { %v3299_v23 = vpop.permute.xlu0 %3298 }
 0x598   : > { %v3854_v20 = vpop.permute.xlu2 %3853 }
 0x599   : > { %v3106_v56 = vpop.permute.xlu1 %3105  ;;  %v4332_v18 = vpop.f32.mrf.mxu1 }
 0x59a   : > { %3180 = vst.msk [vmem:[#allocation3 + $0xb0] sm:$0xff] %vm3157_vm3, %v3106_v56  ;;  %v4333_v13 = vadd.f32 %v6772_v7, %v4332_v18 }
 0x59b   : > { %3373 = vst.msk [vmem:[#allocation3 + $0xb0] sm:$0xff] %vm3350_vm5, %v3299_v23 }
 0x59c   : > { %3566 = vst.msk [vmem:[#allocation3 + $0xb0] sm:$0xff] %vm3543_vm6, %v3492_v8  ;;  %vm4416_vm14 = vcmp.ge.f32.partialorder %v4333_v13, 0.0  ;;  %v4448_v11 = vmul.f32 0.2, %v4333_v13 }
 0x59d   : > { %3666 = vrot.lane.b32.xlu0 %v7017_v14, %s4990_s21 }
 0x59e   : > { %v4480_v39 = vsel %vm4416_vm14, %v4333_v13, %v4448_v11  ;;  %3280 = vrot.lane.b32.xlu2 %v6921_v22, %s4987_s22  ;;  %3473 = vrot.lane.b32.xlu1 %v6914_v43, %s4988_s19 }
 0x59f   : > { %4512 = vst.msk [vmem:[#allocation4 + $0x30] sm:$0xff] %vm2437_vm13, %v4480_v39  ;;  %v3661_v52 = vpop.permute.xlu0 %3660 }
 0x5a0   : > { %v4071_v51 = vpop.permute.xlu2 %4070 }
 0x5a1   : > { %v3468_v40 = vpop.permute.xlu1 %3467 }
 0x5a2   : > { %3554 = vst.msk [vmem:[#allocation3 + $0x50] sm:$0xff] %vm3543_vm6, %v3468_v40 }
 0x5a3   : > { %3747 = vst.msk [vmem:[#allocation3 + $0x50] sm:$0xff] %vm3736_vm7, %v3661_v52  ;;  %v3591_v52 = vld [vmem:[#allocation2 + $0xe0] sm:$0xff] }
 0x5a4   : > { %3940 = vst.msk [vmem:[#allocation3 + $0x50] sm:$0xff] %vm3929_vm9, %v3854_v20 }
 0x5a5   : > { %3883 = vrot.lane.b32.xlu0 %v7029_v32, %s4991_s23 }
 0x5a6   : > { %v4368_v12 = vpop.f32.mrf.mxu2  ;;  %3497 = vrot.lane.b32.xlu2 %v6934_v60, %s4988_s19  ;;  %3690 = vrot.lane.b32.xlu1 %v7033_v58, %s4990_s21 }
 0x5a7   : > { %v4369_v5 = vadd.f32 %v6772_v7, %v4368_v12  ;;  %v3878_v6 = vpop.permute.xlu0 %3877 }
 0x5a8   : > { %v3084_v59 = vpop.permute.xlu2 %3083 }
 0x5a9   : > { %vm4428_vm0 = vcmp.ge.f32.partialorder %v4369_v5, 0.0  ;;  %v4460_v22 = vmul.f32 0.2, %v4369_v5  ;;  %v3685_v46 = vpop.permute.xlu1 %3684 }
 0x5aa   : > { %3759 = vst.msk [vmem:[#allocation3 + $0xb0] sm:$0xff] %vm3736_vm7, %v3685_v46 }
 0x5ab   : > { %v4492_v63 = vsel %vm4428_vm0, %v4369_v5, %v4460_v22  ;;  %3952 = vst.msk [vmem:[#allocation3 + $0xb0] sm:$0xff] %vm3929_vm9, %v3878_v6  ;;  %v3603_v5 = vld [vmem:[#allocation2 + $0x170] sm:$0xff] }
 0x5ac   : > { %4524 = vst.msk [vmem:[#allocation4 + $0x90] sm:$0xff] %vm2437_vm13, %v4492_v63  ;;  %v3796_v6 = vld [vmem:[#allocation2 + $0x171] sm:$0xff] }
 0x5ad   : > { %4145 = vst.msk [vmem:[#allocation3 + $0xb0] sm:$0xff] %vm4122_vm12, %v4071_v51  ;;  %2896 = vrot.lane.b32.xlu0 %v6870_v16, %s4983_s18 }
 0x5ae   : > { %3859 = vrot.lane.b32.xlu2 %v7046_v15, %s4991_s23  ;;  %4052 = vrot.lane.b32.xlu1 %v7048_v17, %s4989_s16 }
 0x5af   : > { %v2891_v10 = vpop.permute.xlu0 %2890 }
 0x5b0   : > { %2976 = vst.msk [vmem:[#allocation3 + $0x58] sm:$0xff] %vm2964_vm2, %v2891_v10  ;;  %v3301_v3 = vpop.permute.xlu2 %3300 }
 0x5b1   : > { %3169 = vst.msk [vmem:[#allocation3 + $0x58] sm:$0xff] %vm3157_vm3, %v3084_v59  ;;  %v4047_v9 = vpop.permute.xlu1 %4046 }
 0x5b2   : > { %4133 = vst.msk [vmem:[#allocation3 + $0x50] sm:$0xff] %vm4122_vm12, %v4047_v9 }
 0x5b4   : > { %v4177_v16 = vld [vmem:[#allocation3 + $0xb0] sm:$0xff] }
 0x5b5   : > { %4901 = vmatmul.msk.f32.gmra.mxu2 %vm4200_vm10, %v4177_v16  ;;  %3113 = vrot.lane.b32.xlu0 %v6982_v26, %s4985_s20  ;;  %v3976_v26 = vld [vmem:[#allocation2 + $0xda] sm:$0xff] }
 0x5b6   : > { %4076 = vrot.lane.b32.xlu2 %v7060_v50, %s4989_s16  ;;  %2920 = vrot.lane.b32.xlu1 %v6881_v42, %s4983_s18 }
 0x5b7   : > { %v3108_v0 = vpop.permute.xlu0 %3107 }
 0x5b8   : > { %v3663_v54 = vpop.permute.xlu2 %3662 }
 0x5b9   : > { %v2915_v47 = vpop.permute.xlu1 %2914  ;;  %v4165_v44 = vld [vmem:[#allocation3 + $0x50] sm:$0xff] }
 0x5ba   : > { %2988 = vst.msk [vmem:[#allocation3 + $0xb8] sm:$0xff] %vm2964_vm2, %v2915_v47  ;;  %4889 = vmatmul.msk.f32.gmra.mxu1 %vm4200_vm10, %v4165_v44  ;;  %v3797_v47 = vld [vmem:[#allocation2 + $0x181] sm:$0xff] }
 0x5bb   : > { %3181 = vst.msk [vmem:[#allocation3 + $0xb8] sm:$0xff] %vm3157_vm3, %v3108_v0 }
 0x5bc   : > { %3374 = vst.msk [vmem:[#allocation3 + $0xb8] sm:$0xff] %vm3350_vm5, %v3301_v3  ;;  %v3977_v3 = vld [vmem:[#allocation2 + $0xe2] sm:$0xff] }
 0x5bd   : > { %3475 = vrot.lane.b32.xlu0 %v6997_v49, %s4988_s19 }
 0x5be   : > { %3089 = vrot.lane.b32.xlu2 %v6968_v36, %s4985_s20  ;;  %3282 = vrot.lane.b32.xlu1 %v6963_v19, %s4987_s22 }
 0x5bf   : > { %v3470_v42 = vpop.permute.xlu0 %3469 }
 0x5c0   : > { %v3880_v41 = vpop.permute.xlu2 %3879 }
 0x5c1   : > { %v3277_v55 = vpop.permute.xlu1 %3276 }
 0x5c2   : > { %3362 = vst.msk [vmem:[#allocation3 + $0x58] sm:$0xff] %vm3350_vm5, %v3277_v55 }
 0x5c3   : > { %3555 = vst.msk [vmem:[#allocation3 + $0x58] sm:$0xff] %vm3543_vm6, %v3470_v42 }
 0x5c4   : > { %3748 = vst.msk [vmem:[#allocation3 + $0x58] sm:$0xff] %vm3736_vm7, %v3663_v54 }
 0x5c5   : > { %3692 = vrot.lane.b32.xlu0 %v7079_v53, %s4990_s21 }
 0x5c6   : > { %3306 = vrot.lane.b32.xlu2 %v6984_v29, %s4987_s22  ;;  %3499 = vrot.lane.b32.xlu1 %v6978_v25, %s4988_s19  ;;  %v3590_v29 = vld [vmem:[#allocation2 + $0xd8] sm:$0xff] }
 0x5c7   : > { %v4335_v30 = vpop.f32.mrf.mxu1  ;;  %v4371_v24 = vpop.f32.mrf.mxu2 }
 0x5c8   : > { %v4336_v48 = vadd.f32 %v6772_v7, %v4335_v30  ;;  %v4372_v21 = vadd.f32 %v6772_v7, %v4371_v24  ;;  %v3687_v35 = vpop.permute.xlu0 %3686  ;;  %v2893_v19 = vpop.permute.xlu2 %2892  ;;  %v3990_v24 = vld [vmem:[#allocation2 + $0x182] sm:$0xff] }
 0x5c9   : > { %2977 = vst.msk [vmem:[#allocation3 + $0x60] sm:$0xff] %vm2964_vm2, %v2893_v19  ;;  %v3494_v36 = vpop.permute.xlu1 %3493 }
 0x5ca   : > { %vm4417_vm1 = vcmp.ge.f32.partialorder %v4336_v48, 0.0  ;;  %v4449_v33 = vmul.f32 0.2, %v4336_v48  ;;  %vm4429_vm11 = vcmp.ge.f32.partialorder %v4372_v21, 0.0  ;;  %v4461_v34 = vmul.f32 0.2, %v4372_v21 }
 0x5cb   : > { %3567 = vst.msk [vmem:[#allocation3 + $0xb8] sm:$0xff] %vm3543_vm6, %v3494_v36  ;;  %v3605_v36 = vld [vmem:[#allocation2 + $0x188] sm:$0xff] }
 0x5cc   : > { %v4481_v2 = vsel %vm4417_vm1, %v4336_v48, %v4449_v33  ;;  %v4493_v38 = vsel %vm4429_vm11, %v4372_v21, %v4461_v34  ;;  %3760 = vst.msk [vmem:[#allocation3 + $0xb8] sm:$0xff] %vm3736_vm7, %v3687_v35 }
 0x5cd   : > { %4513 = vst.msk [vmem:[#allocation4 + $0x38] sm:$0xff] %vm2437_vm13, %v4481_v2  ;;  %4054 = vrot.lane.b32.xlu0 %v3976_v26, %s4989_s16 }
 0x5ce   : > { %4525 = vst.msk [vmem:[#allocation4 + $0x98] sm:$0xff] %vm2437_vm13, %v4493_v38  ;;  %3668 = vrot.lane.b32.xlu2 %v3590_v29, %s4990_s21  ;;  %3861 = vrot.lane.b32.xlu1 %v3783_v28, %s4991_s23 }
 0x5cf   : > { %3953 = vst.msk [vmem:[#allocation3 + $0xb8] sm:$0xff] %vm3929_vm9, %v3880_v41 }
 0x5d0   : > { %v4049_v45 = vpop.permute.xlu0 %4048  ;;  %v3110_v57 = vpop.permute.xlu2 %3109 }
 0x5d1   : > { %v3856_v1 = vpop.permute.xlu1 %3855 }
 0x5d2   : > { %3941 = vst.msk [vmem:[#allocation3 + $0x58] sm:$0xff] %vm3929_vm9, %v3856_v1 }
 0x5d3   : > { %4134 = vst.msk [vmem:[#allocation3 + $0x58] sm:$0xff] %vm4122_vm12, %v4049_v45 }
 0x5d5   : > { %2922 = vrot.lane.b32.xlu0 %v6934_v60, %s4983_s18 }
 0x5d6   : > { %3885 = vrot.lane.b32.xlu2 %v7102_v27, %s4991_s23  ;;  %4078 = vrot.lane.b32.xlu1 %v7104_v61, %s4989_s16 }
 0x5d8   : > { %v2917_v31 = vpop.permute.xlu0 %2916  ;;  %v3472_v49 = vpop.permute.xlu2 %3471 }
 0x5d9   : > { %2989 = vst.msk [vmem:[#allocation3 + $0xc0] sm:$0xff] %vm2964_vm2, %v2917_v31  ;;  %v4073_v4 = vpop.permute.xlu1 %4072 }
 0x5da   : > { %3182 = vst.msk [vmem:[#allocation3 + $0xc0] sm:$0xff] %vm3157_vm3, %v3110_v57  ;;  %v4166_v8 = vld [vmem:[#allocation3 + $0x58] sm:$0xff] }
 0x5db   : > { %4146 = vst.msk [vmem:[#allocation3 + $0xb8] sm:$0xff] %vm4122_vm12, %v4073_v4  ;;  %4890 = vmatmul.msk.f32.gmra.mxu1 %vm4200_vm10, %v4166_v8 }
 0x5dd   : > { %3284 = vrot.lane.b32.xlu0 %v7046_v15, %s4987_s22 }
 0x5de   : > { %2898 = vrot.lane.b32.xlu2 %v6914_v43, %s4983_s18  ;;  %3091 = vrot.lane.b32.xlu1 %v7017_v14, %s4985_s20  ;;  %v3784_v14 = vld [vmem:[#allocation2 + $0xe1] sm:$0xff] }
 0x5e0   : > { %v3279_v60 = vpop.permute.xlu0 %3278  ;;  %v3689_v37 = vpop.permute.xlu2 %3688 }
 0x5e1   : > { %v3086_v62 = vpop.permute.xlu1 %3085 }
 0x5e2   : > { %3170 = vst.msk [vmem:[#allocation3 + $0x60] sm:$0xff] %vm3157_vm3, %v3086_v62  ;;  %v4178_v23 = vld [vmem:[#allocation3 + $0xb8] sm:$0xff]  ;;  %v3799_v62 = vld [vmem:[#allocation2 + $0x199] sm:$0xff] }
 0x5e3   : > { %3363 = vst.msk [vmem:[#allocation3 + $0x60] sm:$0xff] %vm3350_vm5, %v3279_v60  ;;  %4902 = vmatmul.msk.f32.gmra.mxu2 %vm4200_vm10, %v4178_v23  ;;  %v3606_v23 = vld [vmem:[#allocation2 + $0x198] sm:$0xff] }
 0x5e4   : > { %3556 = vst.msk [vmem:[#allocation3 + $0x60] sm:$0xff] %vm3543_vm6, %v3472_v49 }
 0x5e5   : > { %3501 = vrot.lane.b32.xlu0 %v7060_v50, %s4988_s19 }
 0x5e6   : > { %3115 = vrot.lane.b32.xlu2 %v7033_v58, %s4985_s20  ;;  %3308 = vrot.lane.b32.xlu1 %v7029_v32, %s4987_s22  ;;  %v7142_v58 = vld [vmem:[#allocation2 + $0x172] sm:$0xff] }
 0x5e8   : > { %v4338_v43 = vpop.f32.mrf.mxu1  ;;  %v3496_v20 = vpop.permute.xlu0 %3495 }
 0x5e9   : > { %v4339_v56 = vadd.f32 %v6772_v7, %v4338_v43  ;;  %v4051_v18 = vpop.permute.xlu2 %4050  ;;  %v3303_v13 = vpop.permute.xlu1 %3302 }
 0x5ea   : > { %3375 = vst.msk [vmem:[#allocation3 + $0xc0] sm:$0xff] %vm3350_vm5, %v3303_v13 }
 0x5eb   : > { %vm4418_vm4 = vcmp.ge.f32.partialorder %v4339_v56, 0.0  ;;  %v4450_v11 = vmul.f32 0.2, %v4339_v56  ;;  %3568 = vst.msk [vmem:[#allocation3 + $0xc0] sm:$0xff] %vm3543_vm6, %v3496_v20  ;;  %v7217_v20 = vld [vmem:[%s7564_s4] ss:$0 sm:$0xff] }
 0x5ec   : > { %3761 = vst.msk [vmem:[#allocation3 + $0xc0] sm:$0xff] %vm3736_vm7, %v3689_v37 }
 0x5ed   : > { %v4482_v39 = vsel %vm4418_vm4, %v4339_v56, %v4450_v11  ;;  %3863 = vrot.lane.b32.xlu0 %v3784_v14, %s4991_s23 }
 0x5ee   : > { %4514 = vst.msk [vmem:[#allocation4 + $0x40] sm:$0xff] %vm2437_vm13, %v4482_v39  ;;  %3477 = vrot.lane.b32.xlu2 %v7048_v17, %s4988_s19  ;;  %3670 = vrot.lane.b32.xlu1 %v3591_v52, %s4990_s21 }
 0x5f0   : > { %v3858_v51 = vpop.permute.xlu0 %3857 }
 0x5f1   : > { %v2919_v40 = vpop.permute.xlu2 %2918  ;;  %v3665_v32 = vpop.permute.xlu1 %3664 }
 0x5f2   : > { %2990 = vst.msk [vmem:[#allocation3 + $0xc8] sm:$0xff] %vm2964_vm2, %v2919_v40 }
 0x5f3   : > { %3749 = vst.msk [vmem:[#allocation3 + $0x60] sm:$0xff] %vm3736_vm7, %v3665_v32  ;;  %v3800_v32 = vld [vmem:[#allocation2 + $0x1a1] sm:$0xff] }
 0x5f4   : > { %3942 = vst.msk [vmem:[#allocation3 + $0x60] sm:$0xff] %vm3929_vm9, %v3858_v51 }
 0x5f5   : > { %4135 = vst.msk [vmem:[#allocation3 + $0x60] sm:$0xff] %vm4122_vm12, %v4051_v18  ;;  %v4374_v12 = vpop.f32.mrf.mxu2  ;;  %4080 = vrot.lane.b32.xlu0 %v7142_v58, %s4989_s16 }
 0x5f6   : > { %v4375_v59 = vadd.f32 %v6772_v7, %v4374_v12  ;;  %3694 = vrot.lane.b32.xlu2 %v3603_v5, %s4990_s21  ;;  %3887 = vrot.lane.b32.xlu1 %v3796_v6, %s4991_s23  ;;  %v3607_v12 = vld [vmem:[#allocation2 + $0x1a0] sm:$0xff] }
 0x5f8   : > { %vm4430_vm8 = vcmp.ge.f32.partialorder %v4375_v59, 0.0  ;;  %v4462_v22 = vmul.f32 0.2, %v4375_v59  ;;  %v4075_v46 = vpop.permute.xlu0 %4074 }
 0x5f9   : > { %v3281_v63 = vpop.permute.xlu2 %3280  ;;  %v3882_v15 = vpop.permute.xlu1 %3881 }
 0x5fa   : > { %v4494_v17 = vsel %vm4430_vm8, %v4375_v59, %v4462_v22  ;;  %3954 = vst.msk [vmem:[#allocation3 + $0xc0] sm:$0xff] %vm3929_vm9, %v3882_v15  ;;  %v3992_v22 = vld [vmem:[#allocation2 + $0x19a] sm:$0xff] }
 0x5fb   : > { %4526 = vst.msk [vmem:[#allocation4 + $0xa0] sm:$0xff] %vm2437_vm13, %v4494_v17 }
 0x5fc   : > { %4147 = vst.msk [vmem:[#allocation3 + $0xc0] sm:$0xff] %vm4122_vm12, %v4075_v46  ;;  %v4167_v10 = vld [vmem:[#allocation3 + $0x60] sm:$0xff]  ;;  %v3993_v46 = vld [vmem:[#allocation2 + $0x1a2] sm:$0xff] }
 0x5fd   : > { %4891 = vmatmul.msk.f32.gmra.mxu1 %vm4200_vm10, %v4167_v10  ;;  %3310 = vrot.lane.b32.xlu0 %v7102_v27, %s4987_s22  ;;  %v3991_v27 = vld [vmem:[#allocation2 + $0x18a] sm:$0xff] }
 0x5fe   : > { %4056 = vrot.lane.b32.xlu2 %v3977_v3, %s4989_s16  ;;  %2924 = vrot.lane.b32.xlu1 %v6978_v25, %s4983_s18 }
 0x600   : > { %v3088_v9 = vpop.permute.xlu0 %3087 }
 0x601   : > { %v3498_v16 = vpop.permute.xlu2 %3497  ;;  %v2895_v0 = vpop.permute.xlu1 %2894 }
 0x602   : > { %2978 = vst.msk [vmem:[#allocation3 + $0x68] sm:$0xff] %vm2964_vm2, %v2895_v0 }
 0x603   : > { %3171 = vst.msk [vmem:[#allocation3 + $0x68] sm:$0xff] %vm3157_vm3, %v3088_v9  ;;  %v4179_v54 = vld [vmem:[#allocation3 + $0xc0] sm:$0xff] }
 0x604   : > { %3364 = vst.msk [vmem:[#allocation3 + $0x68] sm:$0xff] %vm3350_vm5, %v3281_v63  ;;  %4903 = vmatmul.msk.f32.gmra.mxu2 %vm4200_vm10, %v4179_v54 }
 0x605   : > { %3889 = vrot.lane.b32.xlu0 %v3797_v47, %s4991_s23 }
 0x606   : > { %3117 = vrot.lane.b32.xlu2 %v7079_v53, %s4985_s20  ;;  %3503 = vrot.lane.b32.xlu1 %v7104_v61, %s4988_s19  ;;  %v3604_v53 = vld [vmem:[#allocation2 + $0x180] sm:$0xff] }
 0x608   : > { %v3305_v25 = vpop.permute.xlu0 %3304 }
 0x609   : > { %v3860_v44 = vpop.permute.xlu2 %3859  ;;  %v3112_v42 = vpop.permute.xlu1 %3111 }
 0x60a   : > { %3183 = vst.msk [vmem:[#allocation3 + $0xc8] sm:$0xff] %vm3157_vm3, %v3112_v42  ;;  %v4341_v41 = vpop.f32.mrf.mxu1 }
 0x60b   : > { %3376 = vst.msk [vmem:[#allocation3 + $0xc8] sm:$0xff] %vm3350_vm5, %v3305_v25  ;;  %v4342_v55 = vadd.f32 %v6772_v7, %v4341_v41 }
 0x60c   : > { %3569 = vst.msk [vmem:[#allocation3 + $0xc8] sm:$0xff] %vm3543_vm6, %v3498_v16 }
 0x60d   : > { %vm4419_vm15 = vcmp.ge.f32.partialorder %v4342_v55, 0.0  ;;  %v4451_v30 = vmul.f32 0.2, %v4342_v55  ;;  %3119 = vrot.lane.b32.xlu0 %v3603_v5, %s4985_s20 }
 0x60e   : > { %3696 = vrot.lane.b32.xlu2 %v3604_v53, %s4990_s21  ;;  %4082 = vrot.lane.b32.xlu1 %v3990_v24, %s4989_s16 }
 0x60f   : > { %v4483_v48 = vsel %vm4419_vm15, %v4342_v55, %v4451_v30 }
 0x610   : > { %4515 = vst.msk [vmem:[#allocation4 + $0x48] sm:$0xff] %vm2437_vm13, %v4483_v48  ;;  %v3667_v21 = vpop.permute.xlu0 %3666 }
 0x611   : > { %v4077_v35 = vpop.permute.xlu2 %4076  ;;  %v3474_v19 = vpop.permute.xlu1 %3473 }
 0x612   : > { %3557 = vst.msk [vmem:[#allocation3 + $0x68] sm:$0xff] %vm3543_vm6, %v3474_v19 }
 0x613   : > { %3750 = vst.msk [vmem:[#allocation3 + $0x68] sm:$0xff] %vm3736_vm7, %v3667_v21 }
 0x614   : > { %3943 = vst.msk [vmem:[#allocation3 + $0x68] sm:$0xff] %vm3929_vm9, %v3860_v44 }
 0x615   : > { %3698 = vrot.lane.b32.xlu0 %v3605_v36, %s4990_s21 }
 0x616   : > { %2926 = vrot.lane.b32.xlu2 %v7060_v50, %s4983_s18  ;;  %3312 = vrot.lane.b32.xlu1 %v3796_v6, %s4987_s22  ;;  %v3798_v50 = vld [vmem:[#allocation2 + $0x189] sm:$0xff] }
 0x617   : > { %v4377_v33 = vpop.f32.mrf.mxu2 }
 0x618   : > { %v4378_v34 = vadd.f32 %v6772_v7, %v4377_v33  ;;  %v3884_v2 = vpop.permute.xlu0 %3883 }
 0x619   : > { %v3090_v38 = vpop.permute.xlu2 %3089  ;;  %v3691_v26 = vpop.permute.xlu1 %3690 }
 0x61a   : > { %vm4431_vm14 = vcmp.ge.f32.partialorder %v4378_v34, 0.0  ;;  %v4463_v29 = vmul.f32 0.2, %v4378_v34  ;;  %3762 = vst.msk [vmem:[#allocation3 + $0xc8] sm:$0xff] %vm3736_vm7, %v3691_v26 }
 0x61b   : > { %3955 = vst.msk [vmem:[#allocation3 + $0xc8] sm:$0xff] %vm3929_vm9, %v3884_v2 }
 0x61c   : > { %v4495_v28 = vsel %vm4431_vm14, %v4378_v34, %v4463_v29  ;;  %4148 = vst.msk [vmem:[#allocation3 + $0xc8] sm:$0xff] %vm4122_vm12, %v4077_v35 }
 0x61d   : > { %4527 = vst.msk [vmem:[#allocation4 + $0xa8] sm:$0xff] %vm2437_vm13, %v4495_v28  ;;  %2928 = vrot.lane.b32.xlu0 %v7104_v61, %s4983_s18 }
 0x61e   : > { %3505 = vrot.lane.b32.xlu2 %v7142_v58, %s4988_s19  ;;  %3891 = vrot.lane.b32.xlu1 %v3798_v50, %s4991_s23 }
 0x620   : > { %v2897_v7 = vpop.permute.xlu0 %2896 }
 0x621   : > { %2979 = vst.msk [vmem:[#allocation3 + $0x70] sm:$0xff] %vm2964_vm2, %v2897_v7  ;;  %v3307_v45 = vpop.permute.xlu2 %3306  ;;  %v4053_v57 = vpop.permute.xlu1 %4052 }
 0x622   : > { %3172 = vst.msk [vmem:[#allocation3 + $0x70] sm:$0xff] %vm3157_vm3, %v3090_v38 }
 0x623   : > { %4136 = vst.msk [vmem:[#allocation3 + $0x68] sm:$0xff] %vm4122_vm12, %v4053_v57  ;;  %v4180_v1 = vld [vmem:[#allocation3 + $0xc8] sm:$0xff] }
 0x624   : > { %4904 = vmatmul.msk.f32.gmra.mxu2 %vm4200_vm10, %v4180_v1 }
 0x625   : > { %3314 = vrot.lane.b32.xlu0 %v3797_v47, %s4987_s22 }
 0x626   : > { %4084 = vrot.lane.b32.xlu2 %v3991_v27, %s4989_s16  ;;  %3121 = vrot.lane.b32.xlu1 %v3604_v53, %s4985_s20 }
 0x628   : > { %v3114_v61 = vpop.permute.xlu0 %3113 }
 0x629   : > { %v3669_v31 = vpop.permute.xlu2 %3668  ;;  %v2921_v49 = vpop.permute.xlu1 %2920 }
 0x62a   : > { %2991 = vst.msk [vmem:[#allocation3 + $0xd0] sm:$0xff] %vm2964_vm2, %v2921_v49  ;;  %v4168_v4 = vld [vmem:[#allocation3 + $0x68] sm:$0xff] }
 0x62b   : > { %3184 = vst.msk [vmem:[#allocation3 + $0xd0] sm:$0xff] %vm3157_vm3, %v3114_v61  ;;  %4892 = vmatmul.msk.f32.gmra.mxu1 %vm4200_vm10, %v4168_v4 }
 0x62c   : > { %3377 = vst.msk [vmem:[#allocation3 + $0xd0] sm:$0xff] %vm3350_vm5, %v3307_v45 }
 0x62d   : > { %3316 = vrot.lane.b32.xlu0 %v3798_v50, %s4987_s22 }
 0x62e   : > { %2930 = vrot.lane.b32.xlu2 %v7142_v58, %s4983_s18  ;;  %3123 = vrot.lane.b32.xlu1 %v3605_v36, %s4985_s20 }
 0x630   : > { %v3476_v8 = vpop.permute.xlu0 %3475 }
 0x631   : > { %v3886_v60 = vpop.permute.xlu2 %3885  ;;  %v3283_v37 = vpop.permute.xlu1 %3282 }
 0x632   : > { %3365 = vst.msk [vmem:[#allocation3 + $0x70] sm:$0xff] %vm3350_vm5, %v3283_v37 }
 0x633   : > { %3558 = vst.msk [vmem:[#allocation3 + $0x70] sm:$0xff] %vm3543_vm6, %v3476_v8 }
 0x634   : > { %3751 = vst.msk [vmem:[#allocation3 + $0x70] sm:$0xff] %vm3736_vm7, %v3669_v31 }
 0x635   : > { %3893 = vrot.lane.b32.xlu0 %v3799_v62, %s4991_s23 }
 0x636   : > { %3507 = vrot.lane.b32.xlu2 %v3990_v24, %s4988_s19  ;;  %3700 = vrot.lane.b32.xlu1 %v3606_v23, %s4990_s21 }
 0x637   : > { %v4344_v43 = vpop.f32.mrf.mxu1 }
 0x638   : > { %v4345_v56 = vadd.f32 %v7217_v20, %v4344_v43  ;;  %v4380_v18 = vpop.f32.mrf.mxu2  ;;  %v3693_v13 = vpop.permute.xlu0 %3692 }
 0x639   : > { %v4381_v11 = vadd.f32 %v7217_v20, %v4380_v18  ;;  %v2899_v14 = vpop.permute.xlu2 %2898  ;;  %v3500_v39 = vpop.permute.xlu1 %3499 }
 0x63a   : > { %vm4420_vm0 = vcmp.ge.f32.partialorder %v4345_v56, 0.0  ;;  %v4452_v52 = vmul.f32 0.2, %v4345_v56  ;;  %2980 = vst.msk [vmem:[#allocation3 + $0x78] sm:$0xff] %vm2964_vm2, %v2899_v14 }
 0x63b   : > { %vm4432_vm1 = vcmp.ge.f32.partialorder %v4381_v11, 0.0  ;;  %v4464_v51 = vmul.f32 0.2, %v4381_v11  ;;  %3570 = vst.msk [vmem:[#allocation3 + $0xd0] sm:$0xff] %vm3543_vm6, %v3500_v39 }
 0x63c   : > { %v4484_v40 = vsel %vm4420_vm0, %v4345_v56, %v4452_v52  ;;  %3763 = vst.msk [vmem:[#allocation3 + $0xd0] sm:$0xff] %vm3736_vm7, %v3693_v13 }
 0x63d   : > { %4516 = vst.msk [vmem:[#allocation4 + $0x50] sm:$0xff] %vm2437_vm13, %v4484_v40  ;;  %v4496_v58 = vsel %vm4432_vm1, %v4381_v11, %v4464_v51  ;;  %3895 = vrot.lane.b32.xlu0 %v3800_v32, %s4991_s23 }
 0x63e   : > { %4528 = vst.msk [vmem:[#allocation4 + $0xb0] sm:$0xff] %vm2437_vm13, %v4496_v58  ;;  %3509 = vrot.lane.b32.xlu2 %v3991_v27, %s4988_s19  ;;  %3702 = vrot.lane.b32.xlu1 %v3607_v12, %s4990_s21 }
 0x63f   : > { %3956 = vst.msk [vmem:[#allocation3 + $0xd0] sm:$0xff] %vm3929_vm9, %v3886_v60 }
 0x640   : > { %v4055_v5 = vpop.permute.xlu0 %4054 }
 0x641   : > { %v3116_v6 = vpop.permute.xlu2 %3115  ;;  %v3862_v59 = vpop.permute.xlu1 %3861 }
 0x642   : > { %3944 = vst.msk [vmem:[#allocation3 + $0x70] sm:$0xff] %vm3929_vm9, %v3862_v59 }
 0x643   : > { %4137 = vst.msk [vmem:[#allocation3 + $0x70] sm:$0xff] %vm4122_vm12, %v4055_v5 }
 0x646   : > { %4086 = vrot.lane.b32.xlu2 %v3992_v22, %s4989_s16  ;;  %4088 = vrot.lane.b32.xlu1 %v3993_v46, %s4989_s16 }
 0x648   : > { %v2923_v63 = vpop.permute.xlu0 %2922 }
 0x649   : > { %2992 = vst.msk [vmem:[#allocation3 + $0xd8] sm:$0xff] %vm2964_vm2, %v2923_v63  ;;  %v3478_v15 = vpop.permute.xlu2 %3477  ;;  %v4079_v17 = vpop.permute.xlu1 %4078 }
 0x64a   : > { %3185 = vst.msk [vmem:[#allocation3 + $0xd8] sm:$0xff] %vm3157_vm3, %v3116_v6  ;;  %v4169_v10 = vld [vmem:[#allocation3 + $0x70] sm:$0xff] }
 0x64b   : > { %4149 = vst.msk [vmem:[#allocation3 + $0xd0] sm:$0xff] %vm4122_vm12, %v4079_v17  ;;  %4893 = vmatmul.msk.f32.gmra.mxu1 %vm4200_vm10, %v4169_v10 }
 0x650   : > { %v3285_v3 = vpop.permute.xlu0 %3284 }
 0x651   : > { %v3695_v9 = vpop.permute.xlu2 %3694  ;;  %v3092_v16 = vpop.permute.xlu1 %3091 }
 0x652   : > { %3173 = vst.msk [vmem:[#allocation3 + $0x78] sm:$0xff] %vm3157_vm3, %v3092_v16  ;;  %v4181_v0 = vld [vmem:[#allocation3 + $0xd0] sm:$0xff] }
 0x653   : > { %3366 = vst.msk [vmem:[#allocation3 + $0x78] sm:$0xff] %vm3350_vm5, %v3285_v3  ;;  %4905 = vmatmul.msk.f32.gmra.mxu2 %vm4200_vm10, %v4181_v0 }
 0x654   : > { %3559 = vst.msk [vmem:[#allocation3 + $0x78] sm:$0xff] %vm3543_vm6, %v3478_v15 }
 0x658   : > { %v4347_v54 = vpop.f32.mrf.mxu1  ;;  %v3502_v47 = vpop.permute.xlu0 %3501 }
 0x659   : > { %v4348_v25 = vadd.f32 %v7217_v20, %v4347_v54  ;;  %v4057_v44 = vpop.permute.xlu2 %4056  ;;  %v3309_v42 = vpop.permute.xlu1 %3308 }
 0x65a   : > { %3378 = vst.msk [vmem:[#allocation3 + $0xd8] sm:$0xff] %vm3350_vm5, %v3309_v42 }
 0x65b   : > { %vm4421_vm11 = vcmp.ge.f32.partialorder %v4348_v25, 0.0  ;;  %v4453_v41 = vmul.f32 0.2, %v4348_v25  ;;  %3571 = vst.msk [vmem:[#allocation3 + $0xd8] sm:$0xff] %vm3543_vm6, %v3502_v47 }
 0x65c   : > { %3764 = vst.msk [vmem:[#allocation3 + $0xd8] sm:$0xff] %vm3736_vm7, %v3695_v9 }
 0x65d   : > { %v4485_v55 = vsel %vm4421_vm11, %v4348_v25, %v4453_v41 }
 0x65e   : > { %4517 = vst.msk [vmem:[#allocation4 + $0x58] sm:$0xff] %vm2437_vm13, %v4485_v55 }
 0x660   : > { %v3864_v30 = vpop.permute.xlu0 %3863 }
 0x661   : > { %v3118_v53 = vpop.permute.xlu2 %3117  ;;  %v3671_v24 = vpop.permute.xlu1 %3670 }
 0x662   : > { %3752 = vst.msk [vmem:[#allocation3 + $0x78] sm:$0xff] %vm3736_vm7, %v3671_v24  ;;  %v4647_v24 = vld [vmem:[%s7565_s5] sm:$0xff] }
 0x663   : > { %3945 = vst.msk [vmem:[#allocation3 + $0x78] sm:$0xff] %vm3929_vm9, %v3864_v30  ;;  %4667 = vmatpush.msrb.mxu2 %v4647_v24 }
 0x664   : > { %4138 = vst.msk [vmem:[#allocation3 + $0x78] sm:$0xff] %vm4122_vm12, %v4057_v44 }
 0x666   : > { %v4383_v48 = vpop.f32.mrf.mxu2 }
 0x667   : > { %v4384_v21 = vadd.f32 %v7217_v20, %v4383_v48 }
 0x668   : > { %v4081_v35 = vpop.permute.xlu0 %4080 }
 0x669   : > { %vm4433_vm4 = vcmp.ge.f32.partialorder %v4384_v21, 0.0  ;;  %v4465_v19 = vmul.f32 0.2, %v4384_v21  ;;  %v3697_v36 = vpop.permute.xlu2 %3696  ;;  %v3888_v33 = vpop.permute.xlu1 %3887 }
 0x66a   : > { %3957 = vst.msk [vmem:[#allocation3 + $0xd8] sm:$0xff] %vm3929_vm9, %v3888_v33 }
 0x66b   : > { %v4497_v34 = vsel %vm4433_vm4, %v4384_v21, %v4465_v19  ;;  %4150 = vst.msk [vmem:[#allocation3 + $0xd8] sm:$0xff] %vm4122_vm12, %v4081_v35  ;;  %v4170_v2 = vld [vmem:[#allocation3 + $0x78] sm:$0xff] }
 0x66c   : > { %4529 = vst.msk [vmem:[#allocation4 + $0xb8] sm:$0xff] %vm2437_vm13, %v4497_v34  ;;  %4894 = vmatmul.msk.f32.gmra.mxu1 %vm4200_vm10, %v4170_v2 }
 0x670   : > { %v3311_v38 = vpop.permute.xlu0 %3310 }
 0x671   : > { %v2927_v26 = vpop.permute.xlu2 %2926  ;;  %v2925_v29 = vpop.permute.xlu1 %2924 }
 0x672   : > { %2994 = vst.msk [vmem:[#allocation3 + $0xe8] sm:$0xff] %vm2964_vm2, %v2927_v26  ;;  %v4182_v28 = vld [vmem:[#allocation3 + $0xd8] sm:$0xff] }
 0x673   : > { %2993 = vst.msk [vmem:[#allocation3 + $0xe0] sm:$0xff] %vm2964_vm2, %v2925_v29  ;;  %4906 = vmatmul.msk.f32.gmra.mxu2 %vm4200_vm10, %v4182_v28  ;;  %v7308_v29 = vld [vmem:[#allocation4] sm:$0xff]  ;;  %v7310_v28 = vld [vmem:[#allocation4 + $0x10] sm:$0xff] }
 0x674   : > { %3186 = vst.msk [vmem:[#allocation3 + $0xe0] sm:$0xff] %vm3157_vm3, %v3118_v53 }
 0x675   : > { %3379 = vst.msk [vmem:[#allocation3 + $0xe0] sm:$0xff] %vm3350_vm5, %v3311_v38  ;;  %v7306_v38 = vld [vmem:[#allocation4 + $0x8] sm:$0xff] }
 0x678   : > { %v3890_v50 = vpop.permute.xlu0 %3889 }
 0x679   : > { %v3506_v7 = vpop.permute.xlu2 %3505  ;;  %v3504_v45 = vpop.permute.xlu1 %3503 }
 0x67a   : > { %3572 = vst.msk [vmem:[#allocation3 + $0xe0] sm:$0xff] %vm3543_vm6, %v3504_v45  ;;  %v4350_v57 = vpop.f32.mrf.mxu1  ;;  %v4570_v45 = vsel %vm2437_vm13, %v7308_v29, 0.0 }
 0x67b   : > { %3765 = vst.msk [vmem:[#allocation3 + $0xe0] sm:$0xff] %vm3736_vm7, %v3697_v36  ;;  %v4351_v1 = vadd.f32 %v7217_v20, %v4350_v57  ;;  %v4573_v57 = vsel %vm2437_vm13, %v7310_v28, 0.0 }
 0x67c   : > { %3958 = vst.msk [vmem:[#allocation3 + $0xe0] sm:$0xff] %vm3929_vm9, %v3890_v50  ;;  %v4571_v50 = vsel %vm2437_vm13, %v7306_v38, 0.0 }
 0x67d   : > { %vm4422_vm8 = vcmp.ge.f32.partialorder %v4351_v1, 0.0  ;;  %v4454_v27 = vmul.f32 0.2, %v4351_v1 }
 0x67f   : > { %v4486_v61 = vsel %vm4422_vm8, %v4351_v1, %v4454_v27  ;;  %v4572_v1 = vadd.f32 %v4571_v50, %v4570_v45  ;;  %v7321_v27 = vld [vmem:[#allocation4 + $0x20] sm:$0xff]  ;;  %v7387_v50 = vld [vmem:[#allocation4 + $0x98] sm:$0xff] }
 0x680   : > { %4518 = vst.msk [vmem:[#allocation4 + $0x60] sm:$0xff] %vm2437_vm13, %v4486_v61  ;;  %v3120_v31 = vpop.permute.xlu0 %3119 }
 0x681   : > { %3187 = vst.msk [vmem:[#allocation3 + $0xe8] sm:$0xff] %vm3157_vm3, %v3120_v31  ;;  %v4085_v49 = vpop.permute.xlu2 %4084  ;;  %v4083_v4 = vpop.permute.xlu1 %4082  ;;  %v4574_v31 = vadd.f32 %v4573_v57, %v4572_v1  ;;  %v4607_v57 = vsel %vm2437_vm13, %v7387_v50, 0.0  ;;  %v7391_v1 = vld [vmem:[#allocation4 + $0xa0] sm:$0xff] }
 0x682   : > { %4151 = vst.msk [vmem:[#allocation3 + $0xe0] sm:$0xff] %vm4122_vm12, %v4083_v4  ;;  %v4577_v4 = vsel %vm2437_vm13, %v7321_v27, 0.0 }
 0x687   : > { %v4386_v8 = vpop.f32.mrf.mxu2 }
 0x688   : > { %v4387_v60 = vadd.f32 %v7217_v20, %v4386_v8  ;;  %v3699_v37 = vpop.permute.xlu0 %3698 }
 0x689   : > { %v2931_v62 = vpop.permute.xlu2 %2930  ;;  %v3313_v23 = vpop.permute.xlu1 %3312  ;;  %v4183_v43 = vld [vmem:[#allocation3 + $0xe0] sm:$0xff] }
 0x68a   : > { %vm4434_vm15 = vcmp.ge.f32.partialorder %v4387_v60, 0.0  ;;  %v4466_v56 = vmul.f32 0.2, %v4387_v60  ;;  %2996 = vst.msk [vmem:[#allocation3 + $0xf8] sm:$0xff] %vm2964_vm2, %v2931_v62  ;;  %4907 = vmatmul.msk.f32.gmra.mxu2 %vm4200_vm10, %v4183_v43 }
 0x68b   : > { %3380 = vst.msk [vmem:[#allocation3 + $0xe8] sm:$0xff] %vm3350_vm5, %v3313_v23  ;;  %v7333_v23 = vld [vmem:[#allocation4 + $0x38] sm:$0xff] }
 0x68c   : > { %v4498_v18 = vsel %vm4434_vm15, %v4387_v60, %v4466_v56  ;;  %3573 = vst.msk [vmem:[#allocation3 + $0xe8] sm:$0xff] %vm3543_vm6, %v3506_v7  ;;  %v7315_v7 = vld [vmem:[#allocation4 + $0x18] sm:$0xff]  ;;  %v7329_v60 = vld [vmem:[#allocation4 + $0x30] sm:$0xff] }
 0x68d   : > { %4530 = vst.msk [vmem:[#allocation4 + $0xc0] sm:$0xff] %vm2437_vm13, %v4498_v18  ;;  %v4575_v61 = vsel %vm2437_vm13, %v7315_v7, 0.0  ;;  %v4581_v43 = vsel %vm2437_vm13, %v7329_v60, 0.0  ;;  %v7337_v18 = vld [vmem:[#allocation4 + $0x40] sm:$0xff] }
 0x68e   : > { %3766 = vst.msk [vmem:[#allocation3 + $0xe8] sm:$0xff] %vm3736_vm7, %v3699_v37  ;;  %v4576_v8 = vadd.f32 %v4575_v61, %v4574_v31  ;;  %v4609_v31 = vsel %vm2437_vm13, %v7391_v1, 0.0 }
 0x690   : > { %v2929_v13 = vpop.permute.xlu0 %2928  ;;  %v4578_v62 = vadd.f32 %v4577_v4, %v4576_v8  ;;  %v7395_v4 = vld [vmem:[#allocation4 + $0xa8] sm:$0xff] }
 0x691   : > { %2995 = vst.msk [vmem:[#allocation3 + $0xf0] sm:$0xff] %vm2964_vm2, %v2929_v13  ;;  %v3892_v11 = vpop.permute.xlu1 %3891  ;;  %v3508_v14 = vpop.permute.xlu2 %3507  ;;  %v4583_v13 = vsel %vm2437_vm13, %v7333_v23, 0.0 }
 0x692   : > { %3959 = vst.msk [vmem:[#allocation3 + $0xe8] sm:$0xff] %vm3929_vm9, %v3892_v11 }
 0x693   : > { %4152 = vst.msk [vmem:[#allocation3 + $0xe8] sm:$0xff] %vm4122_vm12, %v4085_v49  ;;  %v7325_v49 = vld [vmem:[#allocation4 + $0x28] sm:$0xff] }
 0x694   : > { %v4579_v37 = vsel %vm2437_vm13, %v7325_v49, 0.0 }
 0x695   : > { %v4580_v56 = vadd.f32 %v4579_v37, %v4578_v62  ;;  %v4611_v37 = vsel %vm2437_vm13, %v7395_v4, 0.0  ;;  %v7399_v62 = vld [vmem:[#allocation4 + $0xb0] sm:$0xff] }
 0x697   : > { %v4582_v11 = vadd.f32 %v4581_v43, %v4580_v56 }
 0x698   : > { %v3315_v39 = vpop.permute.xlu0 %3314 }
 0x699   : > { %v3122_v52 = vpop.permute.xlu1 %3121  ;;  %v3510_v32 = vpop.permute.xlu2 %3509 }
 0x69a   : > { %3188 = vst.msk [vmem:[#allocation3 + $0xf0] sm:$0xff] %vm3157_vm3, %v3122_v52  ;;  %v4184_v51 = vld [vmem:[#allocation3 + $0xe8] sm:$0xff]  ;;  %v4584_v52 = vadd.f32 %v4583_v13, %v4582_v11  ;;  %v4613_v13 = vsel %vm2437_vm13, %v7399_v62, 0.0 }
 0x69b   : > { %3381 = vst.msk [vmem:[#allocation3 + $0xf0] sm:$0xff] %vm3350_vm5, %v3315_v39  ;;  %4908 = vmatmul.msk.f32.gmra.mxu2 %vm4200_vm10, %v4184_v51  ;;  %v4585_v39 = vsel %vm2437_vm13, %v7337_v18, 0.0  ;;  %v7345_v51 = vld [vmem:[#allocation4 + $0x50] sm:$0xff] }
 0x69c   : > { %3574 = vst.msk [vmem:[#allocation3 + $0xf0] sm:$0xff] %vm3543_vm6, %v3508_v14  ;;  %v7341_v14 = vld [vmem:[#allocation4 + $0x48] sm:$0xff] }
 0x6a0   : > { %v3317_v40 = vpop.permute.xlu0 %3316 }
 0x6a1   : > { %v3124_v58 = vpop.permute.xlu1 %3123  ;;  %v4087_v15 = vpop.permute.xlu2 %4086 }
 0x6a2   : > { %3189 = vst.msk [vmem:[#allocation3 + $0xf8] sm:$0xff] %vm3157_vm3, %v3124_v58  ;;  %v4586_v58 = vadd.f32 %v4585_v39, %v4584_v52  ;;  %v7404_v39 = vld [vmem:[#allocation4 + $0xb8] sm:$0xff] }
 0x6a3   : > { %3382 = vst.msk [vmem:[#allocation3 + $0xf8] sm:$0xff] %vm3350_vm5, %v3317_v40  ;;  %v4587_v40 = vsel %vm2437_vm13, %v7341_v14, 0.0 }
 0x6a4   : > { %3575 = vst.msk [vmem:[#allocation3 + $0xf8] sm:$0xff] %vm3543_vm6, %v3510_v32 }
 0x6a7   : > { %v4389_v12 = vpop.f32.mrf.mxu2 }
 0x6a8   : > { %v4353_v5 = vpop.f32.mrf.mxu1  ;;  %v4390_v6 = vadd.f32 %v7217_v20, %v4389_v12  ;;  %v3894_v59 = vpop.permute.xlu0 %3893  ;;  %v7349_v12 = vld [vmem:[#allocation4 + $0x58] sm:$0xff] }
 0x6a9   : > { %v4354_v22 = vadd.f32 %v7217_v20, %v4353_v5  ;;  %v3701_v46 = vpop.permute.xlu1 %3700 }
 0x6aa   : > { %vm4435_vm2 = vcmp.ge.f32.partialorder %v4390_v6, 0.0  ;;  %v4467_v63 = vmul.f32 0.2, %v4390_v6  ;;  %3767 = vst.msk [vmem:[#allocation3 + $0xf0] sm:$0xff] %vm3736_vm7, %v3701_v46 }
 0x6ab   : > { %vm4423_vm14 = vcmp.ge.f32.partialorder %v4354_v22, 0.0  ;;  %v4455_v17 = vmul.f32 0.2, %v4354_v22  ;;  %3960 = vst.msk [vmem:[#allocation3 + $0xf0] sm:$0xff] %vm3929_vm9, %v3894_v59  ;;  %v4588_v59 = vadd.f32 %v4587_v40, %v4586_v58 }
 0x6ac   : > { %v4499_v10 = vsel %vm4435_vm2, %v4390_v6, %v4467_v63  ;;  %4153 = vst.msk [vmem:[#allocation3 + $0xf0] sm:$0xff] %vm4122_vm12, %v4087_v15  ;;  %v4589_v6 = vsel %vm2437_vm13, %v7345_v51, 0.0  ;;  %v4591_v63 = vsel %vm2437_vm13, %v7349_v12, 0.0 }
 0x6ad   : > { %v4487_v3 = vsel %vm4423_vm14, %v4354_v22, %v4455_v17  ;;  %4531 = vst.msk [vmem:[#allocation4 + $0xc8] sm:$0xff] %vm2437_vm13, %v4499_v10  ;;  %v7354_v22 = vld [vmem:[#allocation4 + $0x60] sm:$0xff]  ;;  %v4590_v15 = vadd.f32 %v4589_v6, %v4588_v59 }
 0x6ae   : > { %4519 = vst.msk [vmem:[#allocation4 + $0x68] sm:$0xff] %vm2437_vm13, %v4487_v3  ;;  %v4593_v3 = vsel %vm2437_vm13, %v7354_v22, 0.0 }
 0x6b0   : > { %v3896_v9 = vpop.permute.xlu0 %3895 }
 0x6b1   : > { %v3703_v16 = vpop.permute.xlu1 %3702 }
 0x6b2   : > { %3768 = vst.msk [vmem:[#allocation3 + $0xf8] sm:$0xff] %vm3736_vm7, %v3703_v16 }
 0x6b3   : > { %3961 = vst.msk [vmem:[#allocation3 + $0xf8] sm:$0xff] %vm3929_vm9, %v3896_v9  ;;  %v4185_v0 = vld [vmem:[#allocation3 + $0xf0] sm:$0xff]  ;;  %v4592_v9 = vadd.f32 %v4591_v63, %v4590_v15 }
 0x6b4   : > { %4909 = vmatmul.msk.f32.gmra.mxu2 %vm4200_vm10, %v4185_v0 }
 0x6b5   : > { %v7358_v17 = vld [vmem:[#allocation4 + $0x68] sm:$0xff] }
 0x6b6   : > { %v4595_v0 = vsel %vm2437_vm13, %v7358_v17, 0.0 }
 0x6b9   : > { %v4089_v54 = vpop.permute.xlu1 %4088 }
 0x6ba   : > { %4154 = vst.msk [vmem:[#allocation3 + $0xf8] sm:$0xff] %vm4122_vm12, %v4089_v54  ;;  %v4594_v54 = vadd.f32 %v4593_v3, %v4592_v9  ;;  %v4673_v9 = vld [vmem:[%s7567_s7] sm:$0xff] }
 0x6bb   : > { %4693 = vmatpush.msra.mxu3 %v4673_v9 }
 0x6c1   : > { %v4186_v47 = vld [vmem:[#allocation3 + $0xf8] sm:$0xff] }
 0x6c2   : > { %4910 = vmatmul.msk.f32.vlgmr.msrb.gmra.mxu3 %vm4200_vm10, %v4186_v47 }
 0x6c8   : > { %v4356_v25 = vpop.f32.mrf.mxu1 }
 0x6c9   : > { %v4357_v44 = vadd.f32 %v7217_v20, %v4356_v25 }
 0x6cb   : > { %vm4424_vm3 = vcmp.ge.f32.partialorder %v4357_v44, 0.0  ;;  %v4456_v42 = vmul.f32 0.2, %v4357_v44 }
 0x6cd   : > { %v4488_v41 = vsel %vm4424_vm3, %v4357_v44, %v4456_v42  ;;  %v4596_v44 = vadd.f32 %v4595_v0, %v4594_v54 }
 0x6ce   : > { %4520 = vst.msk [vmem:[#allocation4 + $0x70] sm:$0xff] %vm2437_vm13, %v4488_v41 }
 0x6d5   : > { %v7363_v16 = vld [vmem:[#allocation4 + $0x70] sm:$0xff] }
 0x6d6   : > { %v4392_v55 = vpop.f32.mrf.mxu2  ;;  %v4597_v25 = vsel %vm2437_vm13, %v7363_v16, 0.0 }
 0x6d7   : > { %v4393_v30 = vadd.f32 %v7217_v20, %v4392_v55  ;;  %v4598_v41 = vadd.f32 %v4597_v25, %v4596_v44  ;;  %v7373_v55 = vld [vmem:[#allocation4 + $0x80] sm:$0xff]  ;;  %v4992_v25 = vmov 256.0  }
 0x6d8   : > { %v4601_v24 = vsel %vm2437_vm13, %v7373_v55, 0.0  ;;  %4964 = vrcp.f32 %v4992_v25  ;;  %v4674_v25 = vld [vmem:[%s7568_s8] sm:$0x1] }
 0x6d9   : > { %vm4436_vm5 = vcmp.ge.f32.partialorder %v4393_v30, 0.0  ;;  %v4468_v53 = vmul.f32 0.2, %v4393_v30 }
 0x6db   : > { %v4500_v48 = vsel %vm4436_vm5, %v4393_v30, %v4468_v53 }
 0x6dc   : > { %4532 = vst.msk [vmem:[#allocation4 + $0xd0] sm:$0xff] %vm2437_vm13, %v4500_v48 }
 0x6e9   : > { %v4359_v21 = vpop.f32.mrf.mxu1 }
 0x6ea   : > { %v4360_v35 = vadd.f32 %v7217_v20, %v4359_v21  ;;  %v7378_v21 = vld [vmem:[#allocation4 + $0x88] sm:$0xff] }
 0x6ec   : > { %vm4425_vm6 = vcmp.ge.f32.partialorder %v4360_v35, 0.0  ;;  %v4457_v19 = vmul.f32 0.2, %v4360_v35 }
 0x6ee   : > { %v4489_v36 = vsel %vm4425_vm6, %v4360_v35, %v4457_v19 }
 0x6ef   : > { %4521 = vst.msk [vmem:[#allocation4 + $0x78] sm:$0xff] %vm2437_vm13, %v4489_v36  ;;  %v4603_v36 = vsel %vm2437_vm13, %v7378_v21, 0.0 }
 0x6f6   : > { %v4395_v33 = vpop.f32.mrf.mxu2  ;;  %v7367_v47 = vld [vmem:[#allocation4 + $0x78] sm:$0xff] }
 0x6f7   : > { %v4396_v34 = vadd.f32 %v7217_v20, %v4395_v33  ;;  %v4599_v42 = vsel %vm2437_vm13, %v7367_v47, 0.0 }
 0x6f8   : > { %v4600_v30 = vadd.f32 %v4599_v42, %v4598_v41 }
 0x6f9   : > { %vm4437_vm7 = vcmp.ge.f32.partialorder %v4396_v34, 0.0  ;;  %v4469_v2 = vmul.f32 0.2, %v4396_v34 }
 0x6fa   : > { %v4602_v35 = vadd.f32 %v4601_v24, %v4600_v30 }
 0x6fb   : > { %v4501_v26 = vsel %vm4437_vm7, %v4396_v34, %v4469_v2  ;;  %v7382_v34 = vld [vmem:[#allocation4 + $0x90] sm:$0xff] }
 0x6fc   : > { %4533 = vst.msk [vmem:[#allocation4 + $0xd8] sm:$0xff] %vm2437_vm13, %v4501_v26  ;;  %v4604_v2 = vadd.f32 %v4603_v36, %v4602_v35  ;;  %v4605_v26 = vsel %vm2437_vm13, %v7382_v34, 0.0 }
 0x6fe   : > { %v4606_v45 = vadd.f32 %v4605_v26, %v4604_v2 }
 0x700   : > { %v4608_v61 = vadd.f32 %v4607_v57, %v4606_v45 }
 0x702   : > { %v4610_v8 = vadd.f32 %v4609_v31, %v4608_v61 }
 0x703   : > { %v7425_v41 = vld [vmem:[#allocation4 + $0xd8] sm:$0xff] }
 0x704   : > { %v4612_v43 = vadd.f32 %v4611_v37, %v4610_v8 }
 0x706   : > { %v4614_v52 = vadd.f32 %v4613_v13, %v4612_v43 }
 0x70d   : > { %v4398_v32 = vpop.f32.mrf.mxu2 }
 0x70e   : > { %v4399_v5 = vadd.f32 %v7217_v20, %v4398_v32  ;;  %v4615_v32 = vsel %vm2437_vm13, %v7404_v39, 0.0 }
 0x70f   : > { %v4616_v6 = vadd.f32 %v4615_v32, %v4614_v52 }
 0x710   : > { %vm4438_vm9 = vcmp.ge.f32.partialorder %v4399_v5, 0.0  ;;  %v4470_v46 = vmul.f32 0.2, %v4399_v5 }
 0x712   : > { %v4502_v10 = vsel %vm4438_vm9, %v4399_v5, %v4470_v46  ;;  %v7408_v5 = vld [vmem:[#allocation4 + $0xc0] sm:$0xff]  ;;  %v7413_v46 = vld [vmem:[#allocation4 + $0xc8] sm:$0xff] }
 0x713   : > { %4534 = vst.msk [vmem:[#allocation4 + $0xe0] sm:$0xff] %vm2437_vm13, %v4502_v10  ;;  %v4617_v59 = vsel %vm2437_vm13, %v7408_v5, 0.0  ;;  %v4619_v15 = vsel %vm2437_vm13, %v7413_v46, 0.0  ;;  %v7417_v10 = vld [vmem:[#allocation4 + $0xd0] sm:$0xff] }
 0x714   : > { %v4618_v63 = vadd.f32 %v4617_v59, %v4616_v6  ;;  %v4621_v44 = vsel %vm2437_vm13, %v7417_v10, 0.0 }
 0x716   : > { %v4620_v3 = vadd.f32 %v4619_v15, %v4618_v63 }
 0x71a   : > { %v7427_v30 = vld [vmem:[#allocation4 + $0xe0] sm:$0xff] }
 0x71b   : > { %v4625_v35 = vsel %vm2437_vm13, %v7427_v30, 0.0 }
 0x71e   : > { %v4401_v53 = vpop.f32.mrf.mxu2 }
 0x71f   : > { %v4402_v48 = vadd.f32 %v7217_v20, %v4401_v53  ;;  %v4622_v53 = vadd.f32 %v4621_v44, %v4620_v3  ;;  %v4648_v3 = vld [vmem:[%s7566_s6] sm:$0x1] }
 0x721   : > { %vm4439_vm12 = vcmp.ge.f32.partialorder %v4402_v48, 0.0  ;;  %v4471_v19 = vmul.f32 0.2, %v4402_v48 }
 0x723   : > { %v4503_v33 = vsel %vm4439_vm12, %v4402_v48, %v4471_v19  ;;  %v4965_v19 = vpop.eup %4964 }
 0x724   : > { %4535 = vst.msk [vmem:[#allocation4 + $0xe8] sm:$0xff] %vm2437_vm13, %v4503_v33  ;;  %v4640_v57 = vmul.f32 256.0, %v4965_v19  ;;  %vm4644_vm1 = vweird.f32 %v4965_v19 }
 0x726   : > { %v4641_v43 = vsub.f32 1.0, %v4640_v57 }
 0x72b   : > { %v7429_v48 = vld [vmem:[#allocation4 + $0xe8] sm:$0xff] }
 0x72c   : > { %v4627_v2 = vsel %vm2437_vm13, %v7429_v48, 0.0 }
 0x737   : > { %v4404_v56 = vpop.f32.mrf.mxu2 }
 0x738   : > { %v4405_v11 = vadd.f32 %v7217_v20, %v4404_v56 }
 0x73a   : > { %vm4440_vm10 = vcmp.ge.f32.partialorder %v4405_v11, 0.0  ;;  %v4472_v40 = vmul.f32 0.2, %v4405_v11 }
 0x73c   : > { %v4504_v58 = vsel %vm4440_vm10, %v4405_v11, %v4472_v40  ;;  %v4642_v11 = vmul.f32 %v4965_v19, %v4641_v43 }
 0x73d   : > { %4536 = vst.msk [vmem:[#allocation4 + $0xf0] sm:$0xff] %vm2437_vm13, %v4504_v58 }
 0x73e   : > { %v4643_v32 = vadd.f32 %v4965_v19, %v4642_v11 }
 0x740   : > { %v4645_v59 = vsel %vm4644_vm1, %v4965_v19, %v4643_v32 }
 0x744   : > { %v7436_v36 = vld [vmem:[#allocation4 + $0xf0] sm:$0xff] }
 0x745   : > { %v4407_v0 = vpop.f32.mrf.mxu3  ;;  %v4629_v45 = vsel %vm2437_vm13, %v7436_v36, 0.0 }
 0x746   : > { %v4408_v54 = vadd.f32 %v7217_v20, %v4407_v0  ;;  %v4623_v20 = vsel %vm2437_vm13, %v7425_v41, 0.0 }
 0x747   : > { %v4624_v33 = vadd.f32 %v4623_v20, %v4622_v53 }
 0x748   : > { %vm4441_vm0 = vcmp.ge.f32.partialorder %v4408_v54, 0.0  ;;  %v4473_v42 = vmul.f32 0.2, %v4408_v54 }
 0x749   : > { %v4626_v26 = vadd.f32 %v4625_v35, %v4624_v33 }
 0x74a   : > { %v4505_v24 = vsel %vm4441_vm0, %v4408_v54, %v4473_v42 }
 0x74b   : > { %4537 = vst.msk [vmem:[#allocation4 + $0xf8] sm:$0xff] %vm2437_vm13, %v4505_v24  ;;  %v4628_v61 = vadd.f32 %v4627_v2, %v4626_v26 }
 0x74d   : > { %v4630_v8 = vadd.f32 %v4629_v45, %v4628_v61 }
 0x752   : > { %v7442_v31 = vld [vmem:[#allocation4 + $0xf8] sm:$0xff] }
 0x753   : > { %v4631_v37 = vsel %vm2437_vm13, %v7442_v31, 0.0 }
 0x754   : > { %v4632_v56 = vadd.f32 %v4631_v37, %v4630_v8 }
 0x756   : > { %v4633_v13 = vrot.slane %v4632_v56, 4 }
 0x758   : > { %v4634_v52 = vadd.f32 %v4633_v13, %v4632_v56 }
 0x75a   : > { %v4635_v40 = vrot.slane %v4634_v52, 2 }
 0x75c   : > { %v4636_v58 = vadd.f32 %v4635_v40, %v4634_v52 }
 0x75e   : > { %v4637_v6 = vrot.slane %v4636_v58, 1 }
 0x760   : > { %v4638_v63 = vadd.f32 %v4637_v6, %v4636_v58 }
 0x762   : > { %v4646_v15 = vmul.f32 %v4645_v59, %v4638_v63 }
 0x764   : > { %4911 = vmatmul.msk.f32.vlgmr.msrb.gmra.mxu2 %vm2437_vm13, %v4646_v15 }
 0x7e7   : > { %v4669_v9 = vpop.f32.mrf.mxu2 }
 0x7e8   : > { %v4670_v0 = vadd.f32 %v4669_v9, %v4648_v3 }
 0x7ea   : > { %v4672_v54 = vmax.f32 %v4670_v0, 0.0 }
 0x7ec   : > { %4912 = vmatmul.msk.f32.vlgmr.msra.gmra.mxu3 %vm2437_vm13, %v4672_v54 }
 0x86f   : > { %v4695_v44 = vpop.f32.mrf.mxu3 }
 0x870   : > { %v4696_v42 = vadd.f32 %v4695_v44, %v4674_v25 }
 0x872   : > { %v4913_v53 = vmul.f32 -1.442695, %v4696_v42 }
 0x874   : > { %4966 = vpow2.f32 %v4913_v53 }
 0x87a   : > { %v4967_v24 = vpop.eup %4966 }
 0x87b   : > { %v4701_v20 = vadd.f32 1.0, %v4967_v24 }
 0x87d   : > { %4968 = vrcp.f32 %v4701_v20  ;;  %v4713_v2 = vand.u32 2147483648, %v4701_v20  ;;  %v4711_v45 = vand.u32 2147483647, %v4701_v20  ;;  %vm4707_vm4 = vweird.f32 %v4701_v20 }
 0x87f   : > { %v4714_v61 = vor.u32 1.1754944e-38, %v4713_v2  ;;  %vm4712_vm15 = vcmp.eq.f32.partialorder %v4711_v45, 8.507059e+37 }
 0x883   : > { %v4969_v35 = vpop.eup %4968 }
 0x884   : > { %v4703_v19 = vmul.f32 %v4969_v35, %v4701_v20  ;;  %vm4708_vm11 = vweird.f32 %v4969_v35 }
 0x885   : > { %vm4709_vm8 = vmor %vm4707_vm4, %vm4708_vm11 }
 0x886   : > { %v4704_v33 = vsub.f32 1.0, %v4703_v19 }
 0x888   : > { %v4705_v26 = vmul.f32 %v4969_v35, %v4704_v33 }
 0x88a   : > { %v4706_v57 = vadd.f32 %v4969_v35, %v4705_v26 }
 0x88c   : > { %v4710_v8 = vsel %vm4709_vm8, %v4969_v35, %v4706_v57 }
 0x88d   : > { %v4715_v37 = vsel %vm4712_vm15, %v4714_v61, %v4710_v8 }
 0x88e   : > { %v4717_v43 = vperm.slane %v4715_v37, 0 }
 0x890   : > { %v4718_v56 = vmul.f32 %v4717_v43, %v7308_v29  ;;  %v4719_v13 = vmul.f32 %v4717_v43, %v7306_v38  ;;  %v4720_v11 = vmul.f32 %v4717_v43, %v7310_v28  ;;  %v4721_v52 = vmul.f32 %v4717_v43, %v7315_v7 }
 0x891   : > { %v4722_v40 = vmul.f32 %v4717_v43, %v7321_v27  ;;  %v4723_v32 = vmul.f32 %v4717_v43, %v7325_v49  ;;  %v4724_v29 = vmul.f32 %v4717_v43, %v7329_v60  ;;  %v4725_v38 = vmul.f32 %v4717_v43, %v7333_v23 }
 0x892   : > { %4750 = vst.msk [vmem:[%s7459_s29] sm:$0xff] %vm2437_vm13, %v4718_v56  ;;  %v4726_v28 = vmul.f32 %v4717_v43, %v7337_v18  ;;  %v4727_v7 = vmul.f32 %v4717_v43, %v7341_v14  ;;  %v4728_v27 = vmul.f32 %v4717_v43, %v7345_v51  ;;  %v4729_v49 = vmul.f32 %v4717_v43, %v7349_v12 }
 0x893   : > { %4751 = vst.msk [vmem:[%s7459_s29 + $0x8] sm:$0xff] %vm2437_vm13, %v4719_v13  ;;  %v4730_v60 = vmul.f32 %v4717_v43, %v7354_v22  ;;  %v4731_v23 = vmul.f32 %v4717_v43, %v7358_v17  ;;  %v4732_v18 = vmul.f32 %v4717_v43, %v7363_v16  ;;  %v4733_v14 = vmul.f32 %v4717_v43, %v7367_v47 }
 0x894   : > { %4752 = vst.msk [vmem:[%s7459_s29 + $0x10] sm:$0xff] %vm2437_vm13, %v4720_v11  ;;  %v4734_v51 = vmul.f32 %v4717_v43, %v7373_v55  ;;  %v4735_v12 = vmul.f32 %v4717_v43, %v7378_v21  ;;  %v4736_v22 = vmul.f32 %v4717_v43, %v7382_v34  ;;  %v4737_v17 = vmul.f32 %v4717_v43, %v7387_v50 }
 0x895   : > { %4753 = vst.msk [vmem:[%s7459_s29 + $0x18] sm:$0xff] %vm2437_vm13, %v4721_v52  ;;  %v4738_v16 = vmul.f32 %v4717_v43, %v7391_v1  ;;  %v4739_v47 = vmul.f32 %v4717_v43, %v7395_v4  ;;  %v4740_v55 = vmul.f32 %v4717_v43, %v7399_v62  ;;  %v4741_v21 = vmul.f32 %v4717_v43, %v7404_v39 }
 0x896   : > { %4754 = vst.msk [vmem:[%s7459_s29 + $0x20] sm:$0xff] %vm2437_vm13, %v4722_v40  ;;  %v4742_v34 = vmul.f32 %v4717_v43, %v7408_v5  ;;  %v4743_v50 = vmul.f32 %v4717_v43, %v7413_v46  ;;  %v4744_v1 = vmul.f32 %v4717_v43, %v7417_v10  ;;  %v4745_v4 = vmul.f32 %v4717_v43, %v7425_v41 }
 0x897   : > { %4755 = vst.msk [vmem:[%s7459_s29 + $0x28] sm:$0xff] %vm2437_vm13, %v4723_v32  ;;  %v4746_v62 = vmul.f32 %v4717_v43, %v7427_v30  ;;  %v4747_v39 = vmul.f32 %v4717_v43, %v7429_v48  ;;  %v4748_v5 = vmul.f32 %v4717_v43, %v7436_v36  ;;  %v4749_v46 = vmul.f32 %v4717_v43, %v7442_v31 }
 0x898   : > { %4756 = vst.msk [vmem:[%s7459_s29 + $0x30] sm:$0xff] %vm2437_vm13, %v4724_v29 }
 0x899   : > { %4757 = vst.msk [vmem:[%s7459_s29 + $0x38] sm:$0xff] %vm2437_vm13, %v4725_v38 }
 0x89a   : > { %4758 = vst.msk [vmem:[%s7459_s29 + $0x40] sm:$0xff] %vm2437_vm13, %v4726_v28 }
 0x89b   : > { %4759 = vst.msk [vmem:[%s7459_s29 + $0x48] sm:$0xff] %vm2437_vm13, %v4727_v7 }
 0x89c   : > { %4760 = vst.msk [vmem:[%s7459_s29 + $0x50] sm:$0xff] %vm2437_vm13, %v4728_v27 }
 0x89d   : > { %4761 = vst.msk [vmem:[%s7459_s29 + $0x58] sm:$0xff] %vm2437_vm13, %v4729_v49 }
 0x89e   : > { %4762 = vst.msk [vmem:[%s7459_s29 + $0x60] sm:$0xff] %vm2437_vm13, %v4730_v60 }
 0x89f   : > { %4763 = vst.msk [vmem:[%s7459_s29 + $0x68] sm:$0xff] %vm2437_vm13, %v4731_v23 }
 0x8a0   : > { %4764 = vst.msk [vmem:[%s7459_s29 + $0x70] sm:$0xff] %vm2437_vm13, %v4732_v18 }
 0x8a1   : > { %4765 = vst.msk [vmem:[%s7459_s29 + $0x78] sm:$0xff] %vm2437_vm13, %v4733_v14 }
 0x8a2   : > { %4766 = vst.msk [vmem:[%s7459_s29 + $0x80] sm:$0xff] %vm2437_vm13, %v4734_v51 }
 0x8a3   : > { %4767 = vst.msk [vmem:[%s7459_s29 + $0x88] sm:$0xff] %vm2437_vm13, %v4735_v12 }
 0x8a4   : > { %4768 = vst.msk [vmem:[%s7459_s29 + $0x90] sm:$0xff] %vm2437_vm13, %v4736_v22 }
 0x8a5   : > { %4769 = vst.msk [vmem:[%s7459_s29 + $0x98] sm:$0xff] %vm2437_vm13, %v4737_v17 }
 0x8a6   : > { %4770 = vst.msk [vmem:[%s7459_s29 + $0xa0] sm:$0xff] %vm2437_vm13, %v4738_v16 }
 0x8a7   : > { %4771 = vst.msk [vmem:[%s7459_s29 + $0xa8] sm:$0xff] %vm2437_vm13, %v4739_v47 }
 0x8a8   : > { %4772 = vst.msk [vmem:[%s7459_s29 + $0xb0] sm:$0xff] %vm2437_vm13, %v4740_v55 }
 0x8a9   : > { %4773 = vst.msk [vmem:[%s7459_s29 + $0xb8] sm:$0xff] %vm2437_vm13, %v4741_v21 }
 0x8aa   : > { %4774 = vst.msk [vmem:[%s7459_s29 + $0xc0] sm:$0xff] %vm2437_vm13, %v4742_v34 }
 0x8ab   : > { %4775 = vst.msk [vmem:[%s7459_s29 + $0xc8] sm:$0xff] %vm2437_vm13, %v4743_v50 }
 0x8ac   : > { %4776 = vst.msk [vmem:[%s7459_s29 + $0xd0] sm:$0xff] %vm2437_vm13, %v4744_v1 }
 0x8ad   : > { %4777 = vst.msk [vmem:[%s7459_s29 + $0xd8] sm:$0xff] %vm2437_vm13, %v4745_v4 }
 0x8ae   : > { %4778 = vst.msk [vmem:[%s7459_s29 + $0xe0] sm:$0xff] %vm2437_vm13, %v4746_v62 }
 0x8af   : > { %4779 = vst.msk [vmem:[%s7459_s29 + $0xe8] sm:$0xff] %vm2437_vm13, %v4747_v39 }
 0x8b0   : > { %4780 = vst.msk [vmem:[%s7459_s29 + $0xf0] sm:$0xff] %vm2437_vm13, %v4748_v5 }
 0x8b1   : > { %4781 = vst.msk [vmem:[%s7459_s29 + $0xf8] sm:$0xff] %vm2437_vm13, %v4749_v46 }
 0x8b2 PF: > { %s19_s30 = sadd.s32 1, %s4978_s30  }
 0x8b3   : > { %p16_p4 = scmp.ge.s32.totalorder %s19_s30, 4  }
 0x8b5   :  { %18 = sbr.rel (!%p16_p4) target bundleno = 1 (0x1), region = 89 }

</bundles_post_ra>
